<compile_context>
chip_gen: v6e
topology: v6e:2x2x1
jax: 0.10.0
libtpu: 0.0.40
codegen_flags: <defaults>
</compile_context>

<pallas_src>
import functools
import math

import jax
import jax.numpy as jnp
from jax.experimental import pallas as pl
from jax.experimental.pallas import tpu as pltpu

_VMEM = pl.BlockSpec(memory_space=pltpu.MemorySpace.VMEM)

MAX_TILE_M = 1024            # rows per matmul tile
MAX_TILE_P = 2048            # positions per fused-GAP reduction tile
VMEM_LIMIT_BYTES = 32 * 1024 * 1024   # safe on v5e / v6e / v7x


def _round_up(v, m):
    return ((v + m - 1) // m) * m


# ---------------------------------------------------------------------------
# Kernel 1: fused stem matmul + bneck1 pointwise conv (M-tiled, 2 outputs)
#   stem = relu(cols @ w0 + b0)   (kept for the residual skip)
#   a    = relu(stem @ w1 + b1)   (input to the 3x3x3 conv)
# ---------------------------------------------------------------------------

def _stem_bneck1_kernel(x_ref, w0_ref, b0_ref, w1_ref, b1_ref, s_ref, a_ref):
    h = jnp.dot(x_ref[...], w0_ref[...], preferred_element_type=jnp.float32)
    h = jnp.maximum(h + b0_ref[...], 0.0)
    s_ref[...] = h.astype(s_ref.dtype)
    a = jnp.dot(h.astype(jnp.bfloat16), w1_ref[...],
                preferred_element_type=jnp.float32)
    a = jnp.maximum(a + b1_ref[...], 0.0)
    a_ref[...] = a.astype(a_ref.dtype)


def pallas_stem_bneck1(cols, w0, b0, w1, b1):
    m, k0 = cols.shape
    n0 = w0.shape[1]
    n1 = w1.shape[1]
    tile_m = m if m <= MAX_TILE_M else MAX_TILE_M
    grid = (pl.cdiv(m, tile_m),)
    return pl.pallas_call(
        _stem_bneck1_kernel,
        out_shape=(jax.ShapeDtypeStruct((m, n0), jnp.bfloat16),
                   jax.ShapeDtypeStruct((m, n1), jnp.bfloat16)),
        grid=grid,
        in_specs=[
            pl.BlockSpec((tile_m, k0), lambda i: (i, 0)),
            pl.BlockSpec((k0, n0), lambda i: (0, 0)),
            pl.BlockSpec((1, n0), lambda i: (0, 0)),
            pl.BlockSpec((n0, n1), lambda i: (0, 0)),
            pl.BlockSpec((1, n1), lambda i: (0, 0)),
        ],
        out_specs=(pl.BlockSpec((tile_m, n0), lambda i: (i, 0)),
                   pl.BlockSpec((tile_m, n1), lambda i: (i, 0))),
        compiler_params=pltpu.CompilerParams(
            dimension_semantics=("parallel",),
            vmem_limit_bytes=VMEM_LIMIT_BYTES),
    )(cols.astype(jnp.bfloat16),
      w0.astype(jnp.bfloat16), b0.reshape(1, n0).astype(jnp.float32),
      w1.astype(jnp.bfloat16), b1.reshape(1, n1).astype(jnp.float32))


# ---------------------------------------------------------------------------
# Kernel 2: direct 3x3x3 conv (stride 1, "same" padding), no HBM im2col.
# Grid = (B, T, kt); temporal tap kt is the innermost "arbitrary" reduction
# axis; spatial taps accumulate into a VMEM scratch accumulator.
# ---------------------------------------------------------------------------

def _conv3x3x3_kernel(x_ref, w_ref, b_ref, o_ref, acc_ref, *, ho, wo, kh, kw, relu):
    dt = pl.program_id(2)

    @pl.when(dt == 0)
    def _():
        acc_ref[...] = jnp.zeros_like(acc_ref)

    cin = x_ref.shape[-1]
    x = x_ref[...]                       # (1, Hp, Wp, C)
    acc = acc_ref[...]
    for dh in range(kh):
        for dw in range(kw):
            patch = x[0, dh:dh + ho, dw:dw + wo, :].reshape(ho * wo, cin)
            tap = dh * kw + dw
            wt = w_ref[0, tap * cin:(tap + 1) * cin, :]
            acc = acc + jnp.dot(patch, wt, preferred_element_type=jnp.float32)
    acc_ref[...] = acc

    @pl.when(dt == pl.num_programs(2) - 1)
    def _():
        y = acc_ref[...] + b_ref[...]
        if relu:
            y = jnp.maximum(y, 0.0)
        o_ref[...] = y.reshape(1, ho, wo, -1).astype(o_ref.dtype)


def pallas_conv3d_3x3x3(x, w, b, relu=True):
    """x: (B,T,H,W,C) channels-last; w: (27*C_in, C_out) with (dt,dh,dw,c) rows."""
    B, T, H, W, C = x.shape
    kt = kh = kw = 3
    cout = w.shape[-1]
    tp = T + 2

    xp = jnp.pad(x, ((0, 0), (1, 1), (1, 1), (1, 1), (0, 0))).astype(jnp.bfloat16)
    xp = xp.reshape(B * tp, H + 2, W + 2, C)
    w3 = w.reshape(kt, kh * kw * C, cout).astype(jnp.bfloat16)
    b2 = b.reshape(1, cout).astype(jnp.float32)

    out = pl.pallas_call(
        functools.partial(_conv3x3x3_kernel, ho=H, wo=W, kh=kh, kw=kw, relu=relu),
        out_shape=jax.ShapeDtypeStruct((B * T, H, W, cout), jnp.bfloat16),
        grid=(B, T, kt),
        in_specs=[
            pl.BlockSpec((1, H + 2, W + 2, C),
                         lambda bb, tt, dt: (bb * tp + tt + dt, 0, 0, 0)),
            pl.BlockSpec((1, kh * kw * C, cout), lambda bb, tt, dt: (dt, 0, 0)),
            pl.BlockSpec((1, cout), lambda bb, tt, dt: (0, 0)),
        ],
        out_specs=pl.BlockSpec((1, H, W, cout),
                               lambda bb, tt, dt: (bb * T + tt, 0, 0, 0)),
        scratch_shapes=[pltpu.VMEM((H * W, cout), jnp.float32)],
        compiler_params=pltpu.CompilerParams(
            dimension_semantics=("parallel", "parallel", "arbitrary"),
            vmem_limit_bytes=VMEM_LIMIT_BYTES),
    )(xp, w3, b2)
    return out.reshape(B, T, H, W, cout)


# ---------------------------------------------------------------------------
# Kernel 3: fused bneck3 pointwise conv + residual + ReLU + global avg pool.
#   feat[b] = mean_p relu(a[b,p] @ w + b + identity[b,p])
# Grid = (B, P-tiles); post-block activation never leaves VMEM.
# ---------------------------------------------------------------------------

def _bneck3_gap_kernel(a_ref, r_ref, w_ref, b_ref, o_ref, *, p_total, tile_p):
    pt = pl.program_id(1)

    @pl.when(pt == 0)
    def _():
        o_ref[...] = jnp.zeros_like(o_ref)

    y = jnp.dot(a_ref[0], w_ref[...], preferred_element_type=jnp.float32)
    y = y + b_ref[...] + r_ref[0].astype(jnp.float32)
    y = jnp.maximum(y, 0.0)
    if p_total % tile_p != 0:
        # mask ragged last tile (OOB rows hold garbage)
        idx = jax.lax.broadcasted_iota(jnp.int32, y.shape, 0) + pt * tile_p
        y = jnp.where(idx < p_total, y, 0.0)
    o_ref[...] = o_ref[...] + jnp.sum(y, axis=0, keepdims=True)[None]

    @pl.when(pt == pl.num_programs(1) - 1)
    def _():
        o_ref[...] = o_ref[...] * (1.0 / p_total)


def pallas_bneck3_gap(a, identity, w, b):
    """a: (B,P,C_mid), identity: (B,P,C_out) -> pooled feature (B,C_out) f32."""
    B, P, cmid = a.shape
    cout = w.shape[1]
    tile_p = P if P <= MAX_TILE_P else MAX_TILE_P
    grid = (B, pl.cdiv(P, tile_p))
    out = pl.pallas_call(
        functools.partial(_bneck3_gap_kernel, p_total=P, tile_p=tile_p),
        out_shape=jax.ShapeDtypeStruct((B, 1, cout), jnp.float32),
        grid=grid,
        in_specs=[
            pl.BlockSpec((1, tile_p, cmid), lambda b_, pt: (b_, pt, 0)),
            pl.BlockSpec((1, tile_p, cout), lambda b_, pt: (b_, pt, 0)),
            pl.BlockSpec((cmid, cout), lambda b_, pt: (0, 0)),
            pl.BlockSpec((1, cout), lambda b_, pt: (0, 0)),
        ],
        out_specs=pl.BlockSpec((1, 1, cout), lambda b_, pt: (b_, 0, 0)),
        compiler_params=pltpu.CompilerParams(
            dimension_semantics=("parallel", "arbitrary"),
            vmem_limit_bytes=VMEM_LIMIT_BYTES),
    )(a.astype(jnp.bfloat16), identity.astype(jnp.bfloat16),
      w.astype(jnp.bfloat16), b.reshape(1, cout).astype(jnp.float32))
    return out.reshape(B, cout)


# ---------------------------------------------------------------------------
# Kernel 4: fused MLP head: proj(C->400), Linear(400,200)+ReLU,
# 5x(Linear(200,200)+ReLU), Linear(200,2).  All weights VMEM-resident,
# lane-padded to multiples of 128; activations never leave VMEM.
# ---------------------------------------------------------------------------

def _head_kernel(*refs, n_layers, relu_flags):
    x_ref = refs[0]
    o_ref = refs[-1]
    y = x_ref[...]
    for i in range(n_layers):
        w = refs[1 + 2 * i][...]
        bb = refs[2 + 2 * i][...]
        y = jnp.dot(y.astype(jnp.bfloat16), w,
                    preferred_element_type=jnp.float32) + bb
        if relu_flags[i]:
            y = jnp.maximum(y, 0.0)
    o_ref[...] = y.astype(o_ref.dtype)


def pallas_mlp_head(x, layers, relu_flags):
    """x: (B, C) f32; layers: list of (w_bf16 (Kp,Np), b_f32 (1,Np)), lane-padded."""
    b_, _ = x.shape
    n_out = layers[-1][0].shape[1]
    args = [x.astype(jnp.bfloat16)]
    for wl, bl in layers:
        args += [wl, bl]
    return pl.pallas_call(
        functools.partial(_head_kernel, n_layers=len(layers),
                          relu_flags=tuple(relu_flags)),
        out_shape=jax.ShapeDtypeStruct((b_, n_out), jnp.float32),
        in_specs=[_VMEM] * len(args),
        out_specs=_VMEM,
        compiler_params=pltpu.CompilerParams(vmem_limit_bytes=VMEM_LIMIT_BYTES),
    )(*args)


# ---------------------------------------------------------------------------
# im2col (JAX glue) -- only used for the tiny 3-channel stem conv
# ---------------------------------------------------------------------------

def _im2col_3d(x, ksize, stride, pad):
    """x: (B,T,H,W,C) -> (B*To*Ho*Wo, kt*kh*kw*C)."""
    b, t, h, w, c = x.shape
    kt, kh, kw = ksize
    st, sh, sw = stride
    pt, ph, pw = pad
    xp = jnp.pad(x, ((0, 0), (pt, pt), (ph, ph), (pw, pw), (0, 0)))
    to = (t + 2 * pt - kt) // st + 1
    ho = (h + 2 * ph - kh) // sh + 1
    wo = (w + 2 * pw - kw) // sw + 1
    cols = []
    for dt in range(kt):
        for dh in range(kh):
            for dw in range(kw):
                cols.append(xp[:, dt:dt + to * st:st, dh:dh + ho * sh:sh,
                               dw:dw + wo * sw:sw, :])
    cols = jnp.concatenate(cols, axis=-1)
    return cols.reshape(b * to * ho * wo, kt * kh * kw * c), (b, to, ho, wo)


# ---------------------------------------------------------------------------
# Parameters (deterministic, in-script).  Backbone widths chosen lane-dense.
# ---------------------------------------------------------------------------

C_IN = 3        # RGB video
C_STEM = 128    # stem width (lane-dense)
C_MID = 128     # bottleneck mid width (lane-dense)
FEAT = 400      # slow_r50 classification output dim
HID = 200
FC_DEPTH = 5    # module default
OUT = 2


def _dense_init(key, k, n):
    scale = 1.0 / math.sqrt(k)
    wk, bk = jax.random.split(key)
    w = jax.random.normal(wk, (k, n), jnp.float32) * scale
    b = jax.random.normal(bk, (n,), jnp.float32) * scale
    return w, b


def init_params(key):
    keys = jax.random.split(key, 5 + 1 + FC_DEPTH + 1)
    p = {}
    p["stem"] = _dense_init(keys[0], 1 * 3 * 3 * C_IN, C_STEM)     # (1,3,3) conv
    p["bneck1"] = _dense_init(keys[1], C_STEM, C_MID)              # 1x1x1 conv
    p["bneck2"] = _dense_init(keys[2], 3 * 3 * 3 * C_MID, C_MID)   # 3x3x3 conv
    p["bneck3"] = _dense_init(keys[3], C_MID, C_STEM)              # 1x1x1 conv
    p["proj"] = _dense_init(keys[4], C_STEM, FEAT)                 # -> 400
    fc = [_dense_init(keys[5], FEAT, HID)]                         # Linear(400,200)
    for i in range(FC_DEPTH):
        fc.append(_dense_init(keys[6 + i], HID, HID))              # Linear(200,200)
    fc.append(_dense_init(keys[6 + FC_DEPTH], HID, OUT))           # Linear(200,2)
    p["fc"] = fc
    return p


# ---------------------------------------------------------------------------
# Forward pass
# ---------------------------------------------------------------------------

def cnn3d_resnet_forward(params, x_ncthw):
    # NCTHW -> channels-last NTHWC
    x = jnp.transpose(x_ncthw, (0, 2, 3, 4, 1)).astype(jnp.float32)

    # --- stem: spatial (1,3,3) conv, stride (1,2,2), ReLU, fused with the
    #     bottleneck 1x1x1 conv (one M-tiled kernel, two outputs) ---
    w0, b0 = params["stem"]
    w1, b1 = params["bneck1"]
    cols, (B, To, Ho, Wo) = _im2col_3d(x.astype(jnp.bfloat16),
                                       (1, 3, 3), (1, 2, 2), (0, 1, 1))
    identity, a = pallas_stem_bneck1(cols, w0, b0, w1, b1)

    # --- 3x3x3 bottleneck conv (direct, no HBM im2col) ---
    a = a.reshape(B, To, Ho, Wo, C_MID)
    w2, b2 = params["bneck2"]
    a = pallas_conv3d_3x3x3(a, w2, b2, relu=True)

    # --- bneck3 pointwise + residual + ReLU + global avg pool, fused ---
    w3, b3 = params["bneck3"]
    P = To * Ho * Wo
    feat = pallas_bneck3_gap(a.reshape(B, P, C_MID),
                             identity.reshape(B, P, C_STEM), w3, b3)

    # --- fused backbone proj (->400) + linear_layers MLP head, one kernel ---
    layers = [params["proj"]] + params["fc"]
    relu_flags = [False] + [True] * (FC_DEPTH + 1) + [False]
    padded = []
    k_pad = C_STEM
    for wl, bl in layers:
        k_true, n_true = wl.shape
        n_pad = _round_up(n_true, 128)
        wl_p = jnp.pad(wl, ((0, k_pad - k_true), (0, n_pad - n_true)))
        bl_p = jnp.pad(bl, (0, n_pad - n_true)).reshape(1, n_pad)
        padded.append((wl_p.astype(jnp.bfloat16), bl_p.astype(jnp.float32)))
        k_pad = n_pad
    y = pallas_mlp_head(feat, padded, relu_flags)       # (B, 128) f32, lane-padded
    return y[:, :OUT]                                   # (B, 2)


# ---------------------------------------------------------------------------

if __name__ == "__main__":
    key = jax.random.PRNGKey(0)
    pkey, xkey = jax.random.split(key)
    params = init_params(pkey)

    # small example video batch: (B, C, T, H, W)
    x = jax.random.normal(xkey, (2, 3, 4, 16, 16), jnp.float32)

    fwd = jax.jit(cnn3d_resnet_forward)
    out = fwd(params, x)
    out = jax.block_until_ready(out)

    assert out.shape == (2, 2), out.shape
    assert out.dtype == jnp.float32
    assert bool(jnp.all(jnp.isfinite(out)))
    print("KERNEL_OK")
</pallas_src>

<mosaic_0001>
module attributes {stable_mosaic.version = 11 : i64} {
  func.func @_stem_bneck1_kernel(%arg0: i32, %arg1: memref<512x27xbf16, #tpu.memory_space<vmem>>, %arg2: memref<27x128xbf16, #tpu.memory_space<vmem>>, %arg3: memref<1x128xf32, #tpu.memory_space<vmem>>, %arg4: memref<128x128xbf16, #tpu.memory_space<vmem>>, %arg5: memref<1x128xf32, #tpu.memory_space<vmem>>, %arg6: memref<512x128xbf16, #tpu.memory_space<vmem>>, %arg7: memref<512x128xbf16, #tpu.memory_space<vmem>>) attributes {dimension_semantics = [#tpu.dimension_semantics<parallel>], iteration_bounds = array<i64: 1>, scalar_prefetch = 0 : i64, scratch_operands = 0 : i64, tpu.core_type = #tpu.core_type<tc>, window_params = [{transform_indices = @transform_0, window_bounds = array<i64: 512, 27>}, {pipeline_mode = #tpu.pipeline_mode<synchronous>, transform_indices = @transform_1, window_bounds = array<i64: 27, 128>}, {pipeline_mode = #tpu.pipeline_mode<synchronous>, transform_indices = @transform_2, window_bounds = array<i64: 1, 128>}, {pipeline_mode = #tpu.pipeline_mode<synchronous>, transform_indices = @transform_3, window_bounds = array<i64: 128, 128>}, {pipeline_mode = #tpu.pipeline_mode<synchronous>, transform_indices = @transform_4, window_bounds = array<i64: 1, 128>}, {transform_indices = @transform_5, window_bounds = array<i64: 512, 128>}, {transform_indices = @transform_6, window_bounds = array<i64: 512, 128>}]} {
    %c0 = arith.constant 0 : index
    %c0_0 = arith.constant 0 : index
    %0 = vector.load %arg1[%c0, %c0_0] : memref<512x27xbf16, #tpu.memory_space<vmem>>, vector<512x27xbf16>
    %c0_1 = arith.constant 0 : index
    %c0_2 = arith.constant 0 : index
    %1 = vector.load %arg2[%c0_1, %c0_2] : memref<27x128xbf16, #tpu.memory_space<vmem>>, vector<27x128xbf16>
    %cst = arith.constant dense<0.000000e+00> : vector<512x128xf32>
    %2 = tpu.matmul %0, %1, %cst {dimension_numbers = #tpu.dot_dimension_numbers<[1], [0], [0], [1], [0, 0, 1, 1], [], []>} : vector<512x27xbf16>, vector<27x128xbf16>, vector<512x128xf32> -> vector<512x128xf32>
    %c0_3 = arith.constant 0 : index
    %c0_4 = arith.constant 0 : index
    %3 = vector.load %arg3[%c0_3, %c0_4] : memref<1x128xf32, #tpu.memory_space<vmem>>, vector<1x128xf32>
    %4 = vector.broadcast %3 : vector<1x128xf32> to vector<512x128xf32>
    %5 = arith.addf %2, %4 : vector<512x128xf32>
    %cst_5 = arith.constant 0.000000e+00 : f32
    %6 = vector.broadcast %cst_5 : f32 to vector<512x128xf32>
    %7 = arith.maximumf %5, %6 : vector<512x128xf32>
    %8 = arith.truncf %7 : vector<512x128xf32> to vector<512x128xbf16>
    %c0_6 = arith.constant 0 : index
    %c0_7 = arith.constant 0 : index
    %9 = vector.load %arg6[%c0_6, %c0_7] : memref<512x128xbf16, #tpu.memory_space<vmem>>, vector<512x128xbf16>
    tpu.vector_store %arg6[%c0_6, %c0_7], %8 {strides = array<i32>} : memref<512x128xbf16, #tpu.memory_space<vmem>>, vector<512x128xbf16>,
    %10 = arith.truncf %7 : vector<512x128xf32> to vector<512x128xbf16>
    %c0_8 = arith.constant 0 : index
    %c0_9 = arith.constant 0 : index
    %11 = vector.load %arg4[%c0_8, %c0_9] : memref<128x128xbf16, #tpu.memory_space<vmem>>, vector<128x128xbf16>
    %cst_10 = arith.constant dense<0.000000e+00> : vector<512x128xf32>
    %12 = tpu.matmul %10, %11, %cst_10 {dimension_numbers = #tpu.dot_dimension_numbers<[1], [0], [0], [1], [0, 0, 1, 1], [], []>} : vector<512x128xbf16>, vector<128x128xbf16>, vector<512x128xf32> -> vector<512x128xf32>
    %c0_11 = arith.constant 0 : index
    %c0_12 = arith.constant 0 : index
    %13 = vector.load %arg5[%c0_11, %c0_12] : memref<1x128xf32, #tpu.memory_space<vmem>>, vector<1x128xf32>
    %14 = vector.broadcast %13 : vector<1x128xf32> to vector<512x128xf32>
    %15 = arith.addf %12, %14 : vector<512x128xf32>
    %cst_13 = arith.constant 0.000000e+00 : f32
    %16 = vector.broadcast %cst_13 : f32 to vector<512x128xf32>
    %17 = arith.maximumf %15, %16 : vector<512x128xf32>
    %18 = arith.truncf %17 : vector<512x128xf32> to vector<512x128xbf16>
    %c0_14 = arith.constant 0 : index
    %c0_15 = arith.constant 0 : index
    %19 = vector.load %arg7[%c0_14, %c0_15] : memref<512x128xbf16, #tpu.memory_space<vmem>>, vector<512x128xbf16>
    tpu.vector_store %arg7[%c0_14, %c0_15], %18 {strides = array<i32>} : memref<512x128xbf16, #tpu.memory_space<vmem>>, vector<512x128xbf16>,
    return
  }
  func.func @transform_0(%arg0: i32) -> (i32, i32) {
    %c0_i32 = arith.constant 0 : i32
    %c0_i32_0 = arith.constant 0 : i32
    return %arg0, %c0_i32 : i32, i32
  }
  func.func @transform_1(%arg0: i32) -> (i32, i32) {
    %c0_i32 = arith.constant 0 : i32
    %c0_i32_0 = arith.constant 0 : i32
    %c0_i32_1 = arith.constant 0 : i32
    return %c0_i32, %c0_i32_0 : i32, i32
  }
  func.func @transform_2(%arg0: i32) -> (i32, i32) {
    %c0_i32 = arith.constant 0 : i32
    %c0_i32_0 = arith.constant 0 : i32
    %c0_i32_1 = arith.constant 0 : i32
    return %c0_i32, %c0_i32_0 : i32, i32
  }
  func.func @transform_3(%arg0: i32) -> (i32, i32) {
    %c0_i32 = arith.constant 0 : i32
    %c0_i32_0 = arith.constant 0 : i32
    %c0_i32_1 = arith.constant 0 : i32
    return %c0_i32, %c0_i32_0 : i32, i32
  }
  func.func @transform_4(%arg0: i32) -> (i32, i32) {
    %c0_i32 = arith.constant 0 : i32
    %c0_i32_0 = arith.constant 0 : i32
    %c0_i32_1 = arith.constant 0 : i32
    return %c0_i32, %c0_i32_0 : i32, i32
  }
  func.func @transform_5(%arg0: i32) -> (i32, i32) {
    %c0_i32 = arith.constant 0 : i32
    %c0_i32_0 = arith.constant 0 : i32
    return %arg0, %c0_i32 : i32, i32
  }
  func.func @transform_6(%arg0: i32) -> (i32, i32) {
    %c0_i32 = arith.constant 0 : i32
    %c0_i32_0 = arith.constant 0 : i32
    return %arg0, %c0_i32 : i32, i32
  }
}

module attributes {stable_mosaic.version = 11 : i64} {
  func.func @_conv3x3x3_kernel(%arg0: i32, %arg1: i32, %arg2: i32, %arg3: memref<1x10x10x128xbf16, #tpu.memory_space<vmem>>, %arg4: memref<1x1152x128xbf16, #tpu.memory_space<vmem>>, %arg5: memref<1x128xf32, #tpu.memory_space<vmem>>, %arg6: memref<1x8x8x128xbf16, #tpu.memory_space<vmem>>, %arg7: memref<64x128xf32, #tpu.memory_space<vmem>>) attributes {dimension_semantics = [#tpu.dimension_semantics<parallel>, #tpu.dimension_semantics<parallel>, #tpu.dimension_semantics<arbitrary>], iteration_bounds = array<i64: 2, 4, 3>, scalar_prefetch = 0 : i64, scratch_operands = 1 : i64, tpu.core_type = #tpu.core_type<tc>, window_params = [{transform_indices = @transform_0, window_bounds = array<i64: 1, 10, 10, 128>}, {transform_indices = @transform_1, window_bounds = array<i64: 1, 1152, 128>}, {pipeline_mode = #tpu.pipeline_mode<synchronous>, transform_indices = @transform_2, window_bounds = array<i64: 1, 128>}, {transform_indices = @transform_3, window_bounds = array<i64: 1, 8, 8, 128>}]} {
    %c0_i32 = arith.constant 0 : i32
    %0 = arith.cmpi eq, %arg2, %c0_i32 : i32
    %1 = arith.extui %0 : i1 to i32
    %c0_i32_0 = arith.constant 0 : i32
    %2 = arith.cmpi ne, %1, %c0_i32_0 : i32
    scf.if %2 {
      %cst_36 = arith.constant 0.000000e+00 : f32
      %72 = vector.broadcast %cst_36 : f32 to vector<64x128xf32>
      %c0_37 = arith.constant 0 : index
      %c0_38 = arith.constant 0 : index
      %73 = vector.load %arg7[%c0_37, %c0_38] : memref<64x128xf32, #tpu.memory_space<vmem>>, vector<64x128xf32>
      tpu.vector_store %arg7[%c0_37, %c0_38], %72 {strides = array<i32>} : memref<64x128xf32, #tpu.memory_space<vmem>>, vector<64x128xf32>,
    } else {
    }
    %c0 = arith.constant 0 : index
    %c0_1 = arith.constant 0 : index
    %c0_2 = arith.constant 0 : index
    %c0_3 = arith.constant 0 : index
    %3 = vector.load %arg3[%c0, %c0_1, %c0_2, %c0_3] : memref<1x10x10x128xbf16, #tpu.memory_space<vmem>>, vector<1x10x10x128xbf16>
    %c0_4 = arith.constant 0 : index
    %c0_5 = arith.constant 0 : index
    %4 = vector.load %arg7[%c0_4, %c0_5] : memref<64x128xf32, #tpu.memory_space<vmem>>, vector<64x128xf32>
    %5 = vector.extract_strided_slice %3 {offsets = [0, 0, 0, 0], sizes = [1, 8, 8, 128], strides = [1, 1, 1, 1]} : vector<1x10x10x128xbf16> to vector<1x8x8x128xbf16>
    %6 = vector.shape_cast %5 : vector<1x8x8x128xbf16> to vector<8x8x128xbf16>
    %7 = vector.shape_cast %6 : vector<8x8x128xbf16> to vector<64x128xbf16>
    %c0_6 = arith.constant 0 : index
    %c0_7 = arith.constant 0 : index
    %c0_8 = arith.constant 0 : index
    %8 = vector.load %arg4[%c0_6, %c0_7, %c0_8] : memref<1x1152x128xbf16, #tpu.memory_space<vmem>>, vector<1x128x128xbf16>
    %9 = vector.shape_cast %8 : vector<1x128x128xbf16> to vector<128x128xbf16>
    %cst = arith.constant dense<0.000000e+00> : vector<64x128xf32>
    %10 = tpu.matmul %7, %9, %cst {dimension_numbers = #tpu.dot_dimension_numbers<[1], [0], [0], [1], [0, 0, 1, 1], [], []>} : vector<64x128xbf16>, vector<128x128xbf16>, vector<64x128xf32> -> vector<64x128xf32>
    %11 = arith.addf %4, %10 : vector<64x128xf32>
    %12 = vector.extract_strided_slice %3 {offsets = [0, 0, 1, 0], sizes = [1, 8, 8, 128], strides = [1, 1, 1, 1]} : vector<1x10x10x128xbf16> to vector<1x8x8x128xbf16>
    %13 = vector.shape_cast %12 : vector<1x8x8x128xbf16> to vector<8x8x128xbf16>
    %14 = vector.shape_cast %13 : vector<8x8x128xbf16> to vector<64x128xbf16>
    %c0_9 = arith.constant 0 : index
    %c128 = arith.constant 128 : index
    %c0_10 = arith.constant 0 : index
    %15 = vector.load %arg4[%c0_9, %c128, %c0_10] : memref<1x1152x128xbf16, #tpu.memory_space<vmem>>, vector<1x128x128xbf16>
    %16 = vector.shape_cast %15 : vector<1x128x128xbf16> to vector<128x128xbf16>
    %cst_11 = arith.constant dense<0.000000e+00> : vector<64x128xf32>
    %17 = tpu.matmul %14, %16, %cst_11 {dimension_numbers = #tpu.dot_dimension_numbers<[1], [0], [0], [1], [0, 0, 1, 1], [], []>} : vector<64x128xbf16>, vector<128x128xbf16>, vector<64x128xf32> -> vector<64x128xf32>
    %18 = arith.addf %11, %17 : vector<64x128xf32>
    %19 = vector.extract_strided_slice %3 {offsets = [0, 0, 2, 0], sizes = [1, 8, 8, 128], strides = [1, 1, 1, 1]} : vector<1x10x10x128xbf16> to vector<1x8x8x128xbf16>
    %20 = vector.shape_cast %19 : vector<1x8x8x128xbf16> to vector<8x8x128xbf16>
    %21 = vector.shape_cast %20 : vector<8x8x128xbf16> to vector<64x128xbf16>
    %c0_12 = arith.constant 0 : index
    %c256 = arith.constant 256 : index
    %c0_13 = arith.constant 0 : index
    %22 = vector.load %arg4[%c0_12, %c256, %c0_13] : memref<1x1152x128xbf16, #tpu.memory_space<vmem>>, vector<1x128x128xbf16>
    %23 = vector.shape_cast %22 : vector<1x128x128xbf16> to vector<128x128xbf16>
    %cst_14 = arith.constant dense<0.000000e+00> : vector<64x128xf32>
    %24 = tpu.matmul %21, %23, %cst_14 {dimension_numbers = #tpu.dot_dimension_numbers<[1], [0], [0], [1], [0, 0, 1, 1], [], []>} : vector<64x128xbf16>, vector<128x128xbf16>, vector<64x128xf32> -> vector<64x128xf32>
    %25 = arith.addf %18, %24 : vector<64x128xf32>
    %26 = vector.extract_strided_slice %3 {offsets = [0, 1, 0, 0], sizes = [1, 8, 8, 128], strides = [1, 1, 1, 1]} : vector<1x10x10x128xbf16> to vector<1x8x8x128xbf16>
    %27 = vector.shape_cast %26 : vector<1x8x8x128xbf16> to vector<8x8x128xbf16>
    %28 = vector.shape_cast %27 : vector<8x8x128xbf16> to vector<64x128xbf16>
    %c0_15 = arith.constant 0 : index
    %c384 = arith.constant 384 : index
    %c0_16 = arith.constant 0 : index
    %29 = vector.load %arg4[%c0_15, %c384, %c0_16] : memref<1x1152x128xbf16, #tpu.memory_space<vmem>>, vector<1x128x128xbf16>
    %30 = vector.shape_cast %29 : vector<1x128x128xbf16> to vector<128x128xbf16>
    %cst_17 = arith.constant dense<0.000000e+00> : vector<64x128xf32>
    %31 = tpu.matmul %28, %30, %cst_17 {dimension_numbers = #tpu.dot_dimension_numbers<[1], [0], [0], [1], [0, 0, 1, 1], [], []>} : vector<64x128xbf16>, vector<128x128xbf16>, vector<64x128xf32> -> vector<64x128xf32>
    %32 = arith.addf %25, %31 : vector<64x128xf32>
    %33 = vector.extract_strided_slice %3 {offsets = [0, 1, 1, 0], sizes = [1, 8, 8, 128], strides = [1, 1, 1, 1]} : vector<1x10x10x128xbf16> to vector<1x8x8x128xbf16>
    %34 = vector.shape_cast %33 : vector<1x8x8x128xbf16> to vector<8x8x128xbf16>
    %35 = vector.shape_cast %34 : vector<8x8x128xbf16> to vector<64x128xbf16>
    %c0_18 = arith.constant 0 : index
    %c512 = arith.constant 512 : index
    %c0_19 = arith.constant 0 : index
    %36 = vector.load %arg4[%c0_18, %c512, %c0_19] : memref<1x1152x128xbf16, #tpu.memory_space<vmem>>, vector<1x128x128xbf16>
    %37 = vector.shape_cast %36 : vector<1x128x128xbf16> to vector<128x128xbf16>
    %cst_20 = arith.constant dense<0.000000e+00> : vector<64x128xf32>
    %38 = tpu.matmul %35, %37, %cst_20 {dimension_numbers = #tpu.dot_dimension_numbers<[1], [0], [0], [1], [0, 0, 1, 1], [], []>} : vector<64x128xbf16>, vector<128x128xbf16>, vector<64x128xf32> -> vector<64x128xf32>
    %39 = arith.addf %32, %38 : vector<64x128xf32>
    %40 = vector.extract_strided_slice %3 {offsets = [0, 1, 2, 0], sizes = [1, 8, 8, 128], strides = [1, 1, 1, 1]} : vector<1x10x10x128xbf16> to vector<1x8x8x128xbf16>
    %41 = vector.shape_cast %40 : vector<1x8x8x128xbf16> to vector<8x8x128xbf16>
    %42 = vector.shape_cast %41 : vector<8x8x128xbf16> to vector<64x128xbf16>
    %c0_21 = arith.constant 0 : index
    %c640 = arith.constant 640 : index
    %c0_22 = arith.constant 0 : index
    %43 = vector.load %arg4[%c0_21, %c640, %c0_22] : memref<1x1152x128xbf16, #tpu.memory_space<vmem>>, vector<1x128x128xbf16>
    %44 = vector.shape_cast %43 : vector<1x128x128xbf16> to vector<128x128xbf16>
    %cst_23 = arith.constant dense<0.000000e+00> : vector<64x128xf32>
    %45 = tpu.matmul %42, %44, %cst_23 {dimension_numbers = #tpu.dot_dimension_numbers<[1], [0], [0], [1], [0, 0, 1, 1], [], []>} : vector<64x128xbf16>, vector<128x128xbf16>, vector<64x128xf32> -> vector<64x128xf32>
    %46 = arith.addf %39, %45 : vector<64x128xf32>
    %47 = vector.extract_strided_slice %3 {offsets = [0, 2, 0, 0], sizes = [1, 8, 8, 128], strides = [1, 1, 1, 1]} : vector<1x10x10x128xbf16> to vector<1x8x8x128xbf16>
    %48 = vector.shape_cast %47 : vector<1x8x8x128xbf16> to vector<8x8x128xbf16>
    %49 = vector.shape_cast %48 : vector<8x8x128xbf16> to vector<64x128xbf16>
    %c0_24 = arith.constant 0 : index
    %c768 = arith.constant 768 : index
    %c0_25 = arith.constant 0 : index
    %50 = vector.load %arg4[%c0_24, %c768, %c0_25] : memref<1x1152x128xbf16, #tpu.memory_space<vmem>>, vector<1x128x128xbf16>
    %51 = vector.shape_cast %50 : vector<1x128x128xbf16> to vector<128x128xbf16>
    %cst_26 = arith.constant dense<0.000000e+00> : vector<64x128xf32>
    %52 = tpu.matmul %49, %51, %cst_26 {dimension_numbers = #tpu.dot_dimension_numbers<[1], [0], [0], [1], [0, 0, 1, 1], [], []>} : vector<64x128xbf16>, vector<128x128xbf16>, vector<64x128xf32> -> vector<64x128xf32>
    %53 = arith.addf %46, %52 : vector<64x128xf32>
    %54 = vector.extract_strided_slice %3 {offsets = [0, 2, 1, 0], sizes = [1, 8, 8, 128], strides = [1, 1, 1, 1]} : vector<1x10x10x128xbf16> to vector<1x8x8x128xbf16>
    %55 = vector.shape_cast %54 : vector<1x8x8x128xbf16> to vector<8x8x128xbf16>
    %56 = vector.shape_cast %55 : vector<8x8x128xbf16> to vector<64x128xbf16>
    %c0_27 = arith.constant 0 : index
    %c896 = arith.constant 896 : index
    %c0_28 = arith.constant 0 : index
    %57 = vector.load %arg4[%c0_27, %c896, %c0_28] : memref<1x1152x128xbf16, #tpu.memory_space<vmem>>, vector<1x128x128xbf16>
    %58 = vector.shape_cast %57 : vector<1x128x128xbf16> to vector<128x128xbf16>
    %cst_29 = arith.constant dense<0.000000e+00> : vector<64x128xf32>
    %59 = tpu.matmul %56, %58, %cst_29 {dimension_numbers = #tpu.dot_dimension_numbers<[1], [0], [0], [1], [0, 0, 1, 1], [], []>} : vector<64x128xbf16>, vector<128x128xbf16>, vector<64x128xf32> -> vector<64x128xf32>
    %60 = arith.addf %53, %59 : vector<64x128xf32>
    %61 = vector.extract_strided_slice %3 {offsets = [0, 2, 2, 0], sizes = [1, 8, 8, 128], strides = [1, 1, 1, 1]} : vector<1x10x10x128xbf16> to vector<1x8x8x128xbf16>
    %62 = vector.shape_cast %61 : vector<1x8x8x128xbf16> to vector<8x8x128xbf16>
    %63 = vector.shape_cast %62 : vector<8x8x128xbf16> to vector<64x128xbf16>
    %c0_30 = arith.constant 0 : index
    %c1024 = arith.constant 1024 : index
    %c0_31 = arith.constant 0 : index
    %64 = vector.load %arg4[%c0_30, %c1024, %c0_31] : memref<1x1152x128xbf16, #tpu.memory_space<vmem>>, vector<1x128x128xbf16>
    %65 = vector.shape_cast %64 : vector<1x128x128xbf16> to vector<128x128xbf16>
    %cst_32 = arith.constant dense<0.000000e+00> : vector<64x128xf32>
    %66 = tpu.matmul %63, %65, %cst_32 {dimension_numbers = #tpu.dot_dimension_numbers<[1], [0], [0], [1], [0, 0, 1, 1], [], []>} : vector<64x128xbf16>, vector<128x128xbf16>, vector<64x128xf32> -> vector<64x128xf32>
    %67 = arith.addf %60, %66 : vector<64x128xf32>
    %c0_33 = arith.constant 0 : index
    %c0_34 = arith.constant 0 : index
    %68 = vector.load %arg7[%c0_33, %c0_34] : memref<64x128xf32, #tpu.memory_space<vmem>>, vector<64x128xf32>
    tpu.vector_store %arg7[%c0_33, %c0_34], %67 {strides = array<i32>} : memref<64x128xf32, #tpu.memory_space<vmem>>, vector<64x128xf32>,
    %c2_i32 = arith.constant 2 : i32
    %69 = arith.cmpi eq, %arg2, %c2_i32 : i32
    %70 = arith.extui %69 : i1 to i32
    %c0_i32_35 = arith.constant 0 : i32
    %71 = arith.cmpi ne, %70, %c0_i32_35 : i32
    scf.if %71 {
      %c0_36 = arith.constant 0 : index
      %c0_37 = arith.constant 0 : index
      %72 = vector.load %arg7[%c0_36, %c0_37] : memref<64x128xf32, #tpu.memory_space<vmem>>, vector<64x128xf32>
      %c0_38 = arith.constant 0 : index
      %c0_39 = arith.constant 0 : index
      %73 = vector.load %arg5[%c0_38, %c0_39] : memref<1x128xf32, #tpu.memory_space<vmem>>, vector<1x128xf32>
      %74 = vector.broadcast %73 : vector<1x128xf32> to vector<64x128xf32>
      %75 = arith.addf %72, %74 : vector<64x128xf32>
      %cst_40 = arith.constant 0.000000e+00 : f32
      %76 = vector.broadcast %cst_40 : f32 to vector<64x128xf32>
      %77 = arith.maximumf %75, %76 : vector<64x128xf32>
      %78 = vector.shape_cast %77 : vector<64x128xf32> to vector<1x8x8x128xf32>
      %79 = arith.truncf %78 : vector<1x8x8x128xf32> to vector<1x8x8x128xbf16>
      %c0_41 = arith.constant 0 : index
      %c0_42 = arith.constant 0 : index
      %c0_43 = arith.constant 0 : index
      %c0_44 = arith.constant 0 : index
      %80 = vector.load %arg6[%c0_41, %c0_42, %c0_43, %c0_44] : memref<1x8x8x128xbf16, #tpu.memory_space<vmem>>, vector<1x8x8x128xbf16>
      tpu.vector_store %arg6[%c0_41, %c0_42, %c0_43, %c0_44], %79 {strides = array<i32>} : memref<1x8x8x128xbf16, #tpu.memory_space<vmem>>, vector<1x8x8x128xbf16>,
    } else {
    }
    return
  }
  func.func @transform_0(%arg0: i32, %arg1: i32, %arg2: i32) -> (i32, i32, i32, i32) {
    %c6_i32 = arith.constant 6 : i32
    %0 = arith.muli %arg0, %c6_i32 : i32
    %1 = arith.addi %0, %arg1 : i32
    %2 = arith.addi %1, %arg2 : i32
    %c0_i32 = arith.constant 0 : i32
    %c0_i32_0 = arith.constant 0 : i32
    %c0_i32_1 = arith.constant 0 : i32
    %c0_i32_2 = arith.constant 0 : i32
    return %2, %c0_i32, %c0_i32_0, %c0_i32_1 : i32, i32, i32, i32
  }
  func.func @transform_1(%arg0: i32, %arg1: i32, %arg2: i32) -> (i32, i32, i32) {
    %c0_i32 = arith.constant 0 : i32
    %c0_i32_0 = arith.constant 0 : i32
    %c0_i32_1 = arith.constant 0 : i32
    return %arg2, %c0_i32, %c0_i32_0 : i32, i32, i32
  }
  func.func @transform_2(%arg0: i32, %arg1: i32, %arg2: i32) -> (i32, i32) {
    %c0_i32 = arith.constant 0 : i32
    %c0_i32_0 = arith.constant 0 : i32
    %c0_i32_1 = arith.constant 0 : i32
    return %c0_i32, %c0_i32_0 : i32, i32
  }
  func.func @transform_3(%arg0: i32, %arg1: i32, %arg2: i32) -> (i32, i32, i32, i32) {
    %c4_i32 = arith.constant 4 : i32
    %0 = arith.muli %arg0, %c4_i32 : i32
    %1 = arith.addi %0, %arg1 : i32
    %c0_i32 = arith.constant 0 : i32
    %c0_i32_0 = arith.constant 0 : i32
    %c0_i32_1 = arith.constant 0 : i32
    %c0_i32_2 = arith.constant 0 : i32
    return %1, %c0_i32, %c0_i32_0, %c0_i32_1 : i32, i32, i32, i32
  }
}

module attributes {stable_mosaic.version = 11 : i64} {
  func.func @_bneck3_gap_kernel(%arg0: i32, %arg1: i32, %arg2: memref<1x256x128xbf16, #tpu.memory_space<vmem>>, %arg3: memref<1x256x128xbf16, #tpu.memory_space<vmem>>, %arg4: memref<128x128xbf16, #tpu.memory_space<vmem>>, %arg5: memref<1x128xf32, #tpu.memory_space<vmem>>, %arg6: memref<1x1x128xf32, #tpu.memory_space<vmem>>) attributes {dimension_semantics = [#tpu.dimension_semantics<parallel>, #tpu.dimension_semantics<arbitrary>], iteration_bounds = array<i64: 2, 1>, scalar_prefetch = 0 : i64, scratch_operands = 0 : i64, tpu.core_type = #tpu.core_type<tc>, window_params = [{transform_indices = @transform_0, window_bounds = array<i64: 1, 256, 128>}, {transform_indices = @transform_1, window_bounds = array<i64: 1, 256, 128>}, {pipeline_mode = #tpu.pipeline_mode<synchronous>, transform_indices = @transform_2, window_bounds = array<i64: 128, 128>}, {pipeline_mode = #tpu.pipeline_mode<synchronous>, transform_indices = @transform_3, window_bounds = array<i64: 1, 128>}, {transform_indices = @transform_4, window_bounds = array<i64: 1, 1, 128>}]} {
    %c0_i32 = arith.constant 0 : i32
    %0 = arith.cmpi eq, %arg1, %c0_i32 : i32
    %1 = arith.extui %0 : i1 to i32
    %c0_i32_0 = arith.constant 0 : i32
    %2 = arith.cmpi ne, %1, %c0_i32_0 : i32
    scf.if %2 {
      %cst_20 = arith.constant 0.000000e+00 : f32
      %25 = vector.broadcast %cst_20 : f32 to vector<1x1x128xf32>
      %c0_21 = arith.constant 0 : index
      %c0_22 = arith.constant 0 : index
      %c0_23 = arith.constant 0 : index
      %26 = vector.load %arg6[%c0_21, %c0_22, %c0_23] : memref<1x1x128xf32, #tpu.memory_space<vmem>>, vector<1x1x128xf32>
      tpu.vector_store %arg6[%c0_21, %c0_22, %c0_23], %25 {strides = array<i32>} : memref<1x1x128xf32, #tpu.memory_space<vmem>>, vector<1x1x128xf32>,
    } else {
    }
    %c0 = arith.constant 0 : index
    %c0_1 = arith.constant 0 : index
    %c0_2 = arith.constant 0 : index
    %3 = vector.load %arg2[%c0, %c0_1, %c0_2] : memref<1x256x128xbf16, #tpu.memory_space<vmem>>, vector<1x256x128xbf16>
    %4 = vector.shape_cast %3 : vector<1x256x128xbf16> to vector<256x128xbf16>
    %c0_3 = arith.constant 0 : index
    %c0_4 = arith.constant 0 : index
    %5 = vector.load %arg4[%c0_3, %c0_4] : memref<128x128xbf16, #tpu.memory_space<vmem>>, vector<128x128xbf16>
    %cst = arith.constant dense<0.000000e+00> : vector<256x128xf32>
    %6 = tpu.matmul %4, %5, %cst {dimension_numbers = #tpu.dot_dimension_numbers<[1], [0], [0], [1], [0, 0, 1, 1], [], []>} : vector<256x128xbf16>, vector<128x128xbf16>, vector<256x128xf32> -> vector<256x128xf32>
    %c0_5 = arith.constant 0 : index
    %c0_6 = arith.constant 0 : index
    %7 = vector.load %arg5[%c0_5, %c0_6] : memref<1x128xf32, #tpu.memory_space<vmem>>, vector<1x128xf32>
    %8 = vector.broadcast %7 : vector<1x128xf32> to vector<256x128xf32>
    %9 = arith.addf %6, %8 : vector<256x128xf32>
    %c0_7 = arith.constant 0 : index
    %c0_8 = arith.constant 0 : index
    %c0_9 = arith.constant 0 : index
    %10 = vector.load %arg3[%c0_7, %c0_8, %c0_9] : memref<1x256x128xbf16, #tpu.memory_space<vmem>>, vector<1x256x128xbf16>
    %11 = vector.shape_cast %10 : vector<1x256x128xbf16> to vector<256x128xbf16>
    %12 = arith.extf %11 : vector<256x128xbf16> to vector<256x128xf32>
    %13 = arith.addf %9, %12 : vector<256x128xf32>
    %cst_10 = arith.constant 0.000000e+00 : f32
    %14 = vector.broadcast %cst_10 : f32 to vector<256x128xf32>
    %15 = arith.maximumf %13, %14 : vector<256x128xf32>
    %c0_11 = arith.constant 0 : index
    %c0_12 = arith.constant 0 : index
    %c0_13 = arith.constant 0 : index
    %16 = vector.load %arg6[%c0_11, %c0_12, %c0_13] : memref<1x1x128xf32, #tpu.memory_space<vmem>>, vector<1x1x128xf32>
    %cst_14 = arith.constant dense<0.000000e+00> : vector<128xf32>
    %17 = vector.multi_reduction <add>, %15, %cst_14 [0] : vector<256x128xf32> to vector<128xf32>
    %18 = vector.shape_cast %17 : vector<128xf32> to vector<1x128xf32>
    %19 = vector.shape_cast %18 : vector<1x128xf32> to vector<1x1x128xf32>
    %20 = arith.addf %16, %19 : vector<1x1x128xf32>
    %c0_15 = arith.constant 0 : index
    %c0_16 = arith.constant 0 : index
    %c0_17 = arith.constant 0 : index
    %21 = vector.load %arg6[%c0_15, %c0_16, %c0_17] : memref<1x1x128xf32, #tpu.memory_space<vmem>>, vector<1x1x128xf32>
    tpu.vector_store %arg6[%c0_15, %c0_16, %c0_17], %20 {strides = array<i32>} : memref<1x1x128xf32, #tpu.memory_space<vmem>>, vector<1x1x128xf32>,
    %c0_i32_18 = arith.constant 0 : i32
    %22 = arith.cmpi eq, %arg1, %c0_i32_18 : i32
    %23 = arith.extui %22 : i1 to i32
    %c0_i32_19 = arith.constant 0 : i32
    %24 = arith.cmpi ne, %23, %c0_i32_19 : i32
    scf.if %24 {
      %c0_20 = arith.constant 0 : index
      %c0_21 = arith.constant 0 : index
      %c0_22 = arith.constant 0 : index
      %25 = vector.load %arg6[%c0_20, %c0_21, %c0_22] : memref<1x1x128xf32, #tpu.memory_space<vmem>>, vector<1x1x128xf32>
      %cst_23 = arith.constant 3.906250e-03 : f32
      %26 = vector.broadcast %cst_23 : f32 to vector<1x1x128xf32>
      %27 = arith.mulf %25, %26 : vector<1x1x128xf32>
      %c0_24 = arith.constant 0 : index
      %c0_25 = arith.constant 0 : index
      %c0_26 = arith.constant 0 : index
      %28 = vector.load %arg6[%c0_24, %c0_25, %c0_26] : memref<1x1x128xf32, #tpu.memory_space<vmem>>, vector<1x1x128xf32>
      tpu.vector_store %arg6[%c0_24, %c0_25, %c0_26], %27 {strides = array<i32>} : memref<1x1x128xf32, #tpu.memory_space<vmem>>, vector<1x1x128xf32>,
    } else {
    }
    return
  }
  func.func @transform_0(%arg0: i32, %arg1: i32) -> (i32, i32, i32) {
    %c0_i32 = arith.constant 0 : i32
    %c0_i32_0 = arith.constant 0 : i32
    return %arg0, %arg1, %c0_i32 : i32, i32, i32
  }
  func.func @transform_1(%arg0: i32, %arg1: i32) -> (i32, i32, i32) {
    %c0_i32 = arith.constant 0 : i32
    %c0_i32_0 = arith.constant 0 : i32
    return %arg0, %arg1, %c0_i32 : i32, i32, i32
  }
  func.func @transform_2(%arg0: i32, %arg1: i32) -> (i32, i32) {
    %c0_i32 = arith.constant 0 : i32
    %c0_i32_0 = arith.constant 0 : i32
    %c0_i32_1 = arith.constant 0 : i32
    return %c0_i32, %c0_i32_0 : i32, i32
  }
  func.func @transform_3(%arg0: i32, %arg1: i32) -> (i32, i32) {
    %c0_i32 = arith.constant 0 : i32
    %c0_i32_0 = arith.constant 0 : i32
    %c0_i32_1 = arith.constant 0 : i32
    return %c0_i32, %c0_i32_0 : i32, i32
  }
  func.func @transform_4(%arg0: i32, %arg1: i32) -> (i32, i32, i32) {
    %c0_i32 = arith.constant 0 : i32
    %c0_i32_0 = arith.constant 0 : i32
    %c0_i32_1 = arith.constant 0 : i32
    return %arg0, %c0_i32, %c0_i32_0 : i32, i32, i32
  }
}

module attributes {stable_mosaic.version = 11 : i64} {
  func.func @_head_kernel(%arg0: memref<2x128xbf16, #tpu.memory_space<vmem>>, %arg1: memref<128x512xbf16, #tpu.memory_space<vmem>>, %arg2: memref<1x512xf32, #tpu.memory_space<vmem>>, %arg3: memref<512x256xbf16, #tpu.memory_space<vmem>>, %arg4: memref<1x256xf32, #tpu.memory_space<vmem>>, %arg5: memref<256x256xbf16, #tpu.memory_space<vmem>>, %arg6: memref<1x256xf32, #tpu.memory_space<vmem>>, %arg7: memref<256x256xbf16, #tpu.memory_space<vmem>>, %arg8: memref<1x256xf32, #tpu.memory_space<vmem>>, %arg9: memref<256x256xbf16, #tpu.memory_space<vmem>>, %arg10: memref<1x256xf32, #tpu.memory_space<vmem>>, %arg11: memref<256x256xbf16, #tpu.memory_space<vmem>>, %arg12: memref<1x256xf32, #tpu.memory_space<vmem>>, %arg13: memref<256x256xbf16, #tpu.memory_space<vmem>>, %arg14: memref<1x256xf32, #tpu.memory_space<vmem>>, %arg15: memref<256x128xbf16, #tpu.memory_space<vmem>>, %arg16: memref<1x128xf32, #tpu.memory_space<vmem>>, %arg17: memref<2x128xf32, #tpu.memory_space<vmem>>) attributes {dimension_semantics = [], scalar_prefetch = 0 : i64, scratch_operands = 0 : i64, tpu.core_type = #tpu.core_type<tc>} {
    %c0 = arith.constant 0 : index
    %c0_0 = arith.constant 0 : index
    %0 = vector.load %arg0[%c0, %c0_0] : memref<2x128xbf16, #tpu.memory_space<vmem>>, vector<2x128xbf16>
    %c0_1 = arith.constant 0 : index
    %c0_2 = arith.constant 0 : index
    %1 = vector.load %arg1[%c0_1, %c0_2] : memref<128x512xbf16, #tpu.memory_space<vmem>>, vector<128x512xbf16>
    %c0_3 = arith.constant 0 : index
    %c0_4 = arith.constant 0 : index
    %2 = vector.load %arg2[%c0_3, %c0_4] : memref<1x512xf32, #tpu.memory_space<vmem>>, vector<1x512xf32>
    %cst = arith.constant dense<0.000000e+00> : vector<2x512xf32>
    %3 = tpu.matmul %0, %1, %cst {dimension_numbers = #tpu.dot_dimension_numbers<[1], [0], [0], [1], [0, 0, 1, 1], [], []>} : vector<2x128xbf16>, vector<128x512xbf16>, vector<2x512xf32> -> vector<2x512xf32>
    %4 = vector.broadcast %2 : vector<1x512xf32> to vector<2x512xf32>
    %5 = arith.addf %3, %4 : vector<2x512xf32>
    %c0_5 = arith.constant 0 : index
    %c0_6 = arith.constant 0 : index
    %6 = vector.load %arg3[%c0_5, %c0_6] : memref<512x256xbf16, #tpu.memory_space<vmem>>, vector<512x256xbf16>
    %c0_7 = arith.constant 0 : index
    %c0_8 = arith.constant 0 : index
    %7 = vector.load %arg4[%c0_7, %c0_8] : memref<1x256xf32, #tpu.memory_space<vmem>>, vector<1x256xf32>
    %8 = arith.truncf %5 : vector<2x512xf32> to vector<2x512xbf16>
    %cst_9 = arith.constant dense<0.000000e+00> : vector<2x256xf32>
    %9 = tpu.matmul %8, %6, %cst_9 {dimension_numbers = #tpu.dot_dimension_numbers<[1], [0], [0], [1], [0, 0, 1, 1], [], []>} : vector<2x512xbf16>, vector<512x256xbf16>, vector<2x256xf32> -> vector<2x256xf32>
    %10 = vector.broadcast %7 : vector<1x256xf32> to vector<2x256xf32>
    %11 = arith.addf %9, %10 : vector<2x256xf32>
    %cst_10 = arith.constant 0.000000e+00 : f32
    %12 = vector.broadcast %cst_10 : f32 to vector<2x256xf32>
    %13 = arith.maximumf %11, %12 : vector<2x256xf32>
    %c0_11 = arith.constant 0 : index
    %c0_12 = arith.constant 0 : index
    %14 = vector.load %arg5[%c0_11, %c0_12] : memref<256x256xbf16, #tpu.memory_space<vmem>>, vector<256x256xbf16>
    %c0_13 = arith.constant 0 : index
    %c0_14 = arith.constant 0 : index
    %15 = vector.load %arg6[%c0_13, %c0_14] : memref<1x256xf32, #tpu.memory_space<vmem>>, vector<1x256xf32>
    %16 = arith.truncf %13 : vector<2x256xf32> to vector<2x256xbf16>
    %cst_15 = arith.constant dense<0.000000e+00> : vector<2x256xf32>
    %17 = tpu.matmul %16, %14, %cst_15 {dimension_numbers = #tpu.dot_dimension_numbers<[1], [0], [0], [1], [0, 0, 1, 1], [], []>} : vector<2x256xbf16>, vector<256x256xbf16>, vector<2x256xf32> -> vector<2x256xf32>
    %18 = vector.broadcast %15 : vector<1x256xf32> to vector<2x256xf32>
    %19 = arith.addf %17, %18 : vector<2x256xf32>
    %cst_16 = arith.constant 0.000000e+00 : f32
    %20 = vector.broadcast %cst_16 : f32 to vector<2x256xf32>
    %21 = arith.maximumf %19, %20 : vector<2x256xf32>
    %c0_17 = arith.constant 0 : index
    %c0_18 = arith.constant 0 : index
    %22 = vector.load %arg7[%c0_17, %c0_18] : memref<256x256xbf16, #tpu.memory_space<vmem>>, vector<256x256xbf16>
    %c0_19 = arith.constant 0 : index
    %c0_20 = arith.constant 0 : index
    %23 = vector.load %arg8[%c0_19, %c0_20] : memref<1x256xf32, #tpu.memory_space<vmem>>, vector<1x256xf32>
    %24 = arith.truncf %21 : vector<2x256xf32> to vector<2x256xbf16>
    %cst_21 = arith.constant dense<0.000000e+00> : vector<2x256xf32>
    %25 = tpu.matmul %24, %22, %cst_21 {dimension_numbers = #tpu.dot_dimension_numbers<[1], [0], [0], [1], [0, 0, 1, 1], [], []>} : vector<2x256xbf16>, vector<256x256xbf16>, vector<2x256xf32> -> vector<2x256xf32>
    %26 = vector.broadcast %23 : vector<1x256xf32> to vector<2x256xf32>
    %27 = arith.addf %25, %26 : vector<2x256xf32>
    %cst_22 = arith.constant 0.000000e+00 : f32
    %28 = vector.broadcast %cst_22 : f32 to vector<2x256xf32>
    %29 = arith.maximumf %27, %28 : vector<2x256xf32>
    %c0_23 = arith.constant 0 : index
    %c0_24 = arith.constant 0 : index
    %30 = vector.load %arg9[%c0_23, %c0_24] : memref<256x256xbf16, #tpu.memory_space<vmem>>, vector<256x256xbf16>
    %c0_25 = arith.constant 0 : index
    %c0_26 = arith.constant 0 : index
    %31 = vector.load %arg10[%c0_25, %c0_26] : memref<1x256xf32, #tpu.memory_space<vmem>>, vector<1x256xf32>
    %32 = arith.truncf %29 : vector<2x256xf32> to vector<2x256xbf16>
    %cst_27 = arith.constant dense<0.000000e+00> : vector<2x256xf32>
    %33 = tpu.matmul %32, %30, %cst_27 {dimension_numbers = #tpu.dot_dimension_numbers<[1], [0], [0], [1], [0, 0, 1, 1], [], []>} : vector<2x256xbf16>, vector<256x256xbf16>, vector<2x256xf32> -> vector<2x256xf32>
    %34 = vector.broadcast %31 : vector<1x256xf32> to vector<2x256xf32>
    %35 = arith.addf %33, %34 : vector<2x256xf32>
    %cst_28 = arith.constant 0.000000e+00 : f32
    %36 = vector.broadcast %cst_28 : f32 to vector<2x256xf32>
    %37 = arith.maximumf %35, %36 : vector<2x256xf32>
    %c0_29 = arith.constant 0 : index
    %c0_30 = arith.constant 0 : index
    %38 = vector.load %arg11[%c0_29, %c0_30] : memref<256x256xbf16, #tpu.memory_space<vmem>>, vector<256x256xbf16>
    %c0_31 = arith.constant 0 : index
    %c0_32 = arith.constant 0 : index
    %39 = vector.load %arg12[%c0_31, %c0_32] : memref<1x256xf32, #tpu.memory_space<vmem>>, vector<1x256xf32>
    %40 = arith.truncf %37 : vector<2x256xf32> to vector<2x256xbf16>
    %cst_33 = arith.constant dense<0.000000e+00> : vector<2x256xf32>
    %41 = tpu.matmul %40, %38, %cst_33 {dimension_numbers = #tpu.dot_dimension_numbers<[1], [0], [0], [1], [0, 0, 1, 1], [], []>} : vector<2x256xbf16>, vector<256x256xbf16>, vector<2x256xf32> -> vector<2x256xf32>
    %42 = vector.broadcast %39 : vector<1x256xf32> to vector<2x256xf32>
    %43 = arith.addf %41, %42 : vector<2x256xf32>
    %cst_34 = arith.constant 0.000000e+00 : f32
    %44 = vector.broadcast %cst_34 : f32 to vector<2x256xf32>
    %45 = arith.maximumf %43, %44 : vector<2x256xf32>
    %c0_35 = arith.constant 0 : index
    %c0_36 = arith.constant 0 : index
    %46 = vector.load %arg13[%c0_35, %c0_36] : memref<256x256xbf16, #tpu.memory_space<vmem>>, vector<256x256xbf16>
    %c0_37 = arith.constant 0 : index
    %c0_38 = arith.constant 0 : index
    %47 = vector.load %arg14[%c0_37, %c0_38] : memref<1x256xf32, #tpu.memory_space<vmem>>, vector<1x256xf32>
    %48 = arith.truncf %45 : vector<2x256xf32> to vector<2x256xbf16>
    %cst_39 = arith.constant dense<0.000000e+00> : vector<2x256xf32>
    %49 = tpu.matmul %48, %46, %cst_39 {dimension_numbers = #tpu.dot_dimension_numbers<[1], [0], [0], [1], [0, 0, 1, 1], [], []>} : vector<2x256xbf16>, vector<256x256xbf16>, vector<2x256xf32> -> vector<2x256xf32>
    %50 = vector.broadcast %47 : vector<1x256xf32> to vector<2x256xf32>
    %51 = arith.addf %49, %50 : vector<2x256xf32>
    %cst_40 = arith.constant 0.000000e+00 : f32
    %52 = vector.broadcast %cst_40 : f32 to vector<2x256xf32>
    %53 = arith.maximumf %51, %52 : vector<2x256xf32>
    %c0_41 = arith.constant 0 : index
    %c0_42 = arith.constant 0 : index
    %54 = vector.load %arg15[%c0_41, %c0_42] : memref<256x128xbf16, #tpu.memory_space<vmem>>, vector<256x128xbf16>
    %c0_43 = arith.constant 0 : index
    %c0_44 = arith.constant 0 : index
    %55 = vector.load %arg16[%c0_43, %c0_44] : memref<1x128xf32, #tpu.memory_space<vmem>>, vector<1x128xf32>
    %56 = arith.truncf %53 : vector<2x256xf32> to vector<2x256xbf16>
    %cst_45 = arith.constant dense<0.000000e+00> : vector<2x128xf32>
    %57 = tpu.matmul %56, %54, %cst_45 {dimension_numbers = #tpu.dot_dimension_numbers<[1], [0], [0], [1], [0, 0, 1, 1], [], []>} : vector<2x256xbf16>, vector<256x128xbf16>, vector<2x128xf32> -> vector<2x128xf32>
    %58 = vector.broadcast %55 : vector<1x128xf32> to vector<2x128xf32>
    %59 = arith.addf %57, %58 : vector<2x128xf32>
    %c0_46 = arith.constant 0 : index
    %c0_47 = arith.constant 0 : index
    %60 = vector.load %arg17[%c0_46, %c0_47] : memref<2x128xf32, #tpu.memory_space<vmem>>, vector<2x128xf32>
    tpu.vector_store %arg17[%c0_46, %c0_47], %59 {strides = array<i32>} : memref<2x128xf32, #tpu.memory_space<vmem>>, vector<2x128xf32>,
    return
  }
}

</mosaic_0001>

<bundles_post_ra>
// kernel: cnn3d_resnet_forward.4
= control target key start
LH: loop header
LB: loop body
LE: loop exit
PB: predicated region body
PF: predicated region fallthrough
CT: control target
= control target key end

     0   :  { %vm366_vm0 = vcmask 1044480   ;;  %vm367_vm1 = vcmask 1045504   ;;  %v2793_v1 = vmov 65535   ;;  %vm269_vm2 = vcmask 220160   ;;  %s3317_s1 = inlined_call_operand.vmem [shape: bf16[27,128], index: 1, kind: input, shape index: {}]   ;;  %s3318_s0 = inlined_call_operand.vmem [shape: bf16[512,27], index: 0, kind: input, shape index: {}]   ;;  %s3319_s3 = inlined_call_operand.vmem [shape: bf16[128,128], index: 3, kind: input, shape index: {}]   ;;  %s3320_s2 = inlined_call_operand.vmem [shape: f32[1,128], index: 2, kind: input, shape index: {}]   ;;  %s3321_s5 = inlined_call_operand.vmem [shape: bf16[512,128], index: 5, kind: output, shape index: {0}]   ;;  %s3322_s4 = inlined_call_operand.vmem [shape: f32[1,128], index: 4, kind: input, shape index: {}]   ;;  %s3323_s6 = inlined_call_operand.vmem [shape: bf16[512,128], index: 6, kind: output, shape index: {1}]  }
   0x1   :  { %v2751_v0 = vld [vmem:[%s3317_s1 + $0x8] sm:$0x3f]   ;;  %v368_v2 = vsel %vm366_vm0, 4294967295, %v2793_v1  ;;  %v2753_v4 = vld [vmem:[%s3318_s0] sm:$0xff]   ;;  %v2755_v8 = vld [vmem:[%s3318_s0 + $0x10] sm:$0xff]  }
   0x2   :  { %v369_v3 = vsel %vm367_vm1, %v368_v2, 0  ;;  %v2752_v6 = vld [vmem:[%s3317_s1] sm:$0xff]   ;;  %2590 = vmatprep.mubr.msk.bf16.mxu0 %vm269_vm2, %v2753_v4  ;;  %v2754_v7 = vld [vmem:[%s3318_s0 + $0x8] sm:$0xff]   ;;  %v2756_v9 = vld [vmem:[%s3318_s0 + $0x18] sm:$0xff]  }
   0x3   :  { %v371_v5 = vand.u32 %v2751_v0, %v369_v3  ;;  %v2757_v10 = vld [vmem:[%s3318_s0 + $0x20] sm:$0xff]   ;;  %v2758_v11 = vld [vmem:[%s3318_s0 + $0x28] sm:$0xff]   ;;  %v2759_v12 = vld [vmem:[%s3318_s0 + $0x30] sm:$0xff]  }
   0x4   :  { %v2760_v13 = vld [vmem:[%s3318_s0 + $0x38] sm:$0xff]   ;;  %v2761_v14 = vld [vmem:[%s3318_s0 + $0x40] sm:$0xff]   ;;  %v2786_v16 = vld [vmem:[%s3319_s3 + $0x30] sm:$0xff]  }
   0x5   :  { %2586 = vmatprep.subr.bf16.mxu0 %v371_v5  ;;  %v2785_v15 = vld [vmem:[%s3319_s3 + $0x38] sm:$0xff]   ;;  %v2787_v17 = vld [vmem:[%s3319_s3 + $0x28] sm:$0xff]   ;;  %v2763_v19 = vld [vmem:[%s3318_s0 + $0x50] sm:$0xff]  }
   0x6   :  { %2587 = vmatpush3.bf16.msra.mxu0 %v371_v5  ;;  %2734 = vmatprep.subr.bf16.mxu1 %v2785_v15  ;;  %v2762_v18 = vld [vmem:[%s3318_s0 + $0x48] sm:$0xff]   ;;  %v2788_v20 = vld [vmem:[%s3319_s3 + $0x20] sm:$0xff]   ;;  %v2789_v21 = vld [vmem:[%s3319_s3 + $0x18] sm:$0xff]  }
   0x7   :  { %2588 = vmatprep.subr.bf16.mxu0 %v2752_v6  ;;  %2742 = vmatpush3.bf16.msra.mxu1 %v2785_v15  ;;  %v2764_v22 = vld [vmem:[%s3318_s0 + $0x58] sm:$0xff]   ;;  %v2765_v23 = vld [vmem:[%s3318_s0 + $0x60] sm:$0xff]   ;;  %v2766_v24 = vld [vmem:[%s3318_s0 + $0x68] sm:$0xff]  }
   0x8   :  { %2735 = vmatprep.subr.bf16.mxu1 %v2786_v16  ;;  %v2767_v25 = vld [vmem:[%s3318_s0 + $0x70] sm:$0xff]   ;;  %v2768_v26 = vld [vmem:[%s3318_s0 + $0x78] sm:$0xff]   ;;  %v2769_v27 = vld [vmem:[%s3318_s0 + $0x80] sm:$0xff]  }
   0x9   :  { %v2770_v28 = vld [vmem:[%s3318_s0 + $0x88] sm:$0xff]   ;;  %v2771_v29 = vld [vmem:[%s3318_s0 + $0x90] sm:$0xff]   ;;  %v2772_v31 = vld [vmem:[%s3318_s0 + $0x98] sm:$0xff]  }
   0xa   :  { %2589 = vmatpush3.bf16.msra.mxu0 %v2752_v6  ;;  %v2790_v30 = vld [vmem:[%s3319_s3 + $0x10] sm:$0xff]   ;;  %v2791_v32 = vld [vmem:[%s3319_s3 + $0x8] sm:$0xff]   ;;  %v2773_v33 = vld [vmem:[%s3318_s0 + $0xa0] sm:$0xff]  }
   0xb   :  { %2654 = vmatprep.subr.bf16.mxu0 %v2785_v15  ;;  %2743 = vmatpush3.bf16.msra.mxu1 %v2786_v16  ;;  %v2792_v34 = vld [vmem:[%s3319_s3] sm:$0xff]   ;;  %v2774_v35 = vld [vmem:[%s3318_s0 + $0xa8] sm:$0xff]   ;;  %v2775_v36 = vld [vmem:[%s3318_s0 + $0xb0] sm:$0xff]  }
   0xc   :  { %2736 = vmatprep.subr.bf16.mxu1 %v2787_v17  ;;  %v2776_v37 = vld [vmem:[%s3318_s0 + $0xb8] sm:$0xff]   ;;  %v2777_v38 = vld [vmem:[%s3318_s0 + $0xc0] sm:$0xff]   ;;  %v2778_v39 = vld [vmem:[%s3318_s0 + $0xc8] sm:$0xff]  }
   0xd   :  { %2591 = vmatmul.mubr.msk.bf16.vlgmr.msra.gmra.mxu0 %vm269_vm2, %v2754_v7  ;;  %v2779_v40 = vld [vmem:[%s3318_s0 + $0xd0] sm:$0xff]   ;;  %v2780_v41 = vld [vmem:[%s3318_s0 + $0xd8] sm:$0xff]   ;;  %v2781_v42 = vld [vmem:[%s3318_s0 + $0xe0] sm:$0xff]  }
   0xe   :  { %2594 = vmatprep.mubr.msk.bf16.mxu0 %vm269_vm2, %v2755_v8  ;;  %2655 = vmatpush3.bf16.msra.mxu0 %v2785_v15  ;;  %v2782_v43 = vld [vmem:[%s3318_s0 + $0xe8] sm:$0xff]   ;;  %v2783_v44 = vld [vmem:[%s3318_s0 + $0xf0] sm:$0xff]   ;;  %v2784_v45 = vld [vmem:[%s3318_s0 + $0xf8] sm:$0xff]  }
   0xf   :  { %2656 = vmatprep.subr.bf16.mxu0 %v2786_v16  ;;  %2744 = vmatpush3.bf16.msra.mxu1 %v2787_v17  ;;  %v2990_v47 = vld [vmem:[%s3320_s2] ss:$0 sm:$0xff] }
  0x10   :  { %2737 = vmatprep.subr.bf16.mxu1 %v2788_v20 }
  0x12   :  { %2657 = vmatpush3.bf16.msra.mxu0 %v2786_v16 }
  0x13   :  { %2658 = vmatprep.subr.bf16.mxu0 %v2787_v17  ;;  %2745 = vmatpush3.bf16.msra.mxu1 %v2788_v20 }
  0x14   :  { %2738 = vmatprep.subr.bf16.mxu1 %v2789_v21 }
  0x15   :  { %2595 = vmatmul.mubr.msk.bf16.gmra.mxu0 %vm269_vm2, %v2756_v9 }
  0x16   :  { %2598 = vmatprep.mubr.msk.bf16.mxu0 %vm269_vm2, %v2757_v10  ;;  %2659 = vmatpush3.bf16.msra.mxu0 %v2787_v17 }
  0x17   :  { %2660 = vmatprep.subr.bf16.mxu0 %v2788_v20  ;;  %2746 = vmatpush3.bf16.msra.mxu1 %v2789_v21 }
  0x18   :  { %2739 = vmatprep.subr.bf16.mxu1 %v2790_v30 }
  0x1a   :  { %2661 = vmatpush3.bf16.msra.mxu0 %v2788_v20 }
  0x1b   :  { %2662 = vmatprep.subr.bf16.mxu0 %v2789_v21  ;;  %2747 = vmatpush3.bf16.msra.mxu1 %v2790_v30 }
  0x1c   :  { %2740 = vmatprep.subr.bf16.mxu1 %v2791_v32 }
  0x1d   :  { %2599 = vmatmul.mubr.msk.bf16.gmra.mxu0 %vm269_vm2, %v2758_v11 }
  0x1e   :  { %2602 = vmatprep.mubr.msk.bf16.mxu0 %vm269_vm2, %v2759_v12  ;;  %2663 = vmatpush3.bf16.msra.mxu0 %v2789_v21 }
  0x1f   :  { %2664 = vmatprep.subr.bf16.mxu0 %v2790_v30  ;;  %2748 = vmatpush3.bf16.msra.mxu1 %v2791_v32 }
  0x20   :  { %2741 = vmatprep.subr.bf16.mxu1 %v2792_v34 }
  0x22   :  { %2665 = vmatpush3.bf16.msra.mxu0 %v2790_v30 }
  0x23   :  { %2666 = vmatprep.subr.bf16.mxu0 %v2791_v32  ;;  %2749 = vmatpush3.bf16.msra.mxu1 %v2792_v34 }
  0x25   :  { %2603 = vmatmul.mubr.msk.bf16.gmra.mxu0 %vm269_vm2, %v2760_v13 }
  0x26   :  { %2606 = vmatprep.mubr.msk.bf16.mxu0 %vm269_vm2, %v2761_v14  ;;  %2667 = vmatpush3.bf16.msra.mxu0 %v2791_v32 }
  0x27   :  { %2668 = vmatprep.subr.bf16.mxu0 %v2792_v34 }
  0x2a   :  { %2669 = vmatpush3.bf16.msra.mxu0 %v2792_v34 }
  0x2d   :  { %2607 = vmatmul.mubr.msk.bf16.gmra.mxu0 %vm269_vm2, %v2762_v18 }
  0x2e   :  { %2610 = vmatprep.mubr.msk.bf16.mxu0 %vm269_vm2, %v2763_v19 }
  0x35   :  { %2611 = vmatmul.mubr.msk.bf16.gmra.mxu0 %vm269_vm2, %v2764_v22 }
  0x36   :  { %2614 = vmatprep.mubr.msk.bf16.mxu0 %vm269_vm2, %v2765_v23 }
  0x3d   :  { %2615 = vmatmul.mubr.msk.bf16.gmra.mxu0 %vm269_vm2, %v2766_v24 }
  0x3e   :  { %2618 = vmatprep.mubr.msk.bf16.mxu0 %vm269_vm2, %v2767_v25 }
  0x45   :  { %2619 = vmatmul.mubr.msk.bf16.gmra.mxu0 %vm269_vm2, %v2768_v26 }
  0x46   :  { %2622 = vmatprep.mubr.msk.bf16.mxu0 %vm269_vm2, %v2769_v27 }
  0x4d   :  { %2623 = vmatmul.mubr.msk.bf16.gmra.mxu0 %vm269_vm2, %v2770_v28 }
  0x4e   :  { %2626 = vmatprep.mubr.msk.bf16.mxu0 %vm269_vm2, %v2771_v29 }
  0x55   :  { %2627 = vmatmul.mubr.msk.bf16.gmra.mxu0 %vm269_vm2, %v2772_v31 }
  0x56   :  { %2630 = vmatprep.mubr.msk.bf16.mxu0 %vm269_vm2, %v2773_v33 }
  0x5d   :  { %2631 = vmatmul.mubr.msk.bf16.gmra.mxu0 %vm269_vm2, %v2774_v35 }
  0x5e   :  { %2634 = vmatprep.mubr.msk.bf16.mxu0 %vm269_vm2, %v2775_v36 }
  0x65   :  { %2635 = vmatmul.mubr.msk.bf16.gmra.mxu0 %vm269_vm2, %v2776_v37 }
  0x66   :  { %2638 = vmatprep.mubr.msk.bf16.mxu0 %vm269_vm2, %v2777_v38 }
  0x6d   :  { %2639 = vmatmul.mubr.msk.bf16.gmra.mxu0 %vm269_vm2, %v2778_v39 }
  0x6e   :  { %2642 = vmatprep.mubr.msk.bf16.mxu0 %vm269_vm2, %v2779_v40 }
  0x75   :  { %2643 = vmatmul.mubr.msk.bf16.gmra.mxu0 %vm269_vm2, %v2780_v41 }
  0x76   :  { %2646 = vmatprep.mubr.msk.bf16.mxu0 %vm269_vm2, %v2781_v42 }
  0x7d   :  { %2647 = vmatmul.mubr.msk.bf16.gmra.mxu0 %vm269_vm2, %v2782_v43 }
  0x7e   :  { %2650 = vmatprep.mubr.msk.bf16.mxu0 %vm269_vm2, %v2783_v44 }
  0x85   :  { %2651 = vmatmul.mubr.msk.bf16.gmra.mxu0 %vm269_vm2, %v2784_v45 }
  0xcd   :  { %v2592_v46 = vpop.f32.mrf.mxu0 }
  0xce   :  { %v416_v49 = vadd.f32 %v2592_v46, %v2990_v47 }
  0xcf   :  { %v407_v48 = vpop.f32.mrf.mxu0 }
  0xd0   :  { %v408_v51 = vadd.f32 %v2990_v47, %v407_v48  ;;  %v664_v54 = vmax.f32 %v416_v49, 0.0 }
  0xd1   :  { %v2593_v50 = vpop.f32.mrf.mxu0 }
  0xd2   :  { %v419_v52 = vadd.f32 %v2593_v50, %v2990_v47  ;;  %v662_v58 = vmax.f32 %v408_v51, 0.0 }
  0xd3   :  { %v410_v53 = vpop.f32.mrf.mxu0 }
  0xd4   :  { %v665_v55 = vmax.f32 %v419_v52, 0.0  ;;  %v411_v56 = vadd.f32 %v2990_v47, %v410_v53 }
  0xd5   :  { %v2596_v57 = vpop.f32.mrf.mxu0 }
  0xd6   :  { %v727_v59 = vpack.c.bf16 %v665_v55, %v664_v54  ;;  %v663_v60 = vmax.f32 %v411_v56, 0.0  ;;  %v432_v63 = vadd.f32 %v2596_v57, %v2990_v47 }
  0xd7   :  { %v423_v61 = vpop.f32.mrf.mxu0 }
  0xd8   :  { %2450 = vst [vmem:[%s3321_s5 + $0x8] sm:$0xff] %v727_v59   ;;  %v726_v62 = vpack.c.bf16 %v663_v60, %v662_v58  ;;  %v424_v1 = vadd.f32 %v2990_v47, %v423_v61  ;;  %v668_v4 = vmax.f32 %v432_v63, 0.0 }
  0xd9   :  { %v2597_v0 = vpop.f32.mrf.mxu0 }
  0xda   :  { %2134 = vst [vmem:[%s3321_s5] sm:$0xff] %v726_v62   ;;  %v435_v2 = vadd.f32 %v2597_v0, %v2990_v47  ;;  %2670 = vmatprep.mubr.bf16.mxu0 %v726_v62  ;;  %v666_v8 = vmax.f32 %v424_v1, 0.0 }
  0xdb   :  { %v426_v3 = vpop.f32.mrf.mxu0  ;;  %2671 = vmatmul.mubr.bf16.vlgmr.msra.gmra.mxu0 %v727_v59 }
  0xdc   :  { %v669_v5 = vmax.f32 %v435_v2, 0.0  ;;  %v427_v6 = vadd.f32 %v2990_v47, %v426_v3 }
  0xdd   :  { %v2600_v7 = vpop.f32.mrf.mxu0 }
  0xde   :  { %v729_v9 = vpack.c.bf16 %v669_v5, %v668_v4  ;;  %v667_v10 = vmax.f32 %v427_v6, 0.0  ;;  %v448_v12 = vadd.f32 %v2600_v7, %v2990_v47 }
  0xdf   :  { %v439_v11 = vpop.f32.mrf.mxu0 }
  0xe0   :  { %2452 = vst [vmem:[%s3321_s5 + $0x18] sm:$0xff] %v729_v9   ;;  %v728_v13 = vpack.c.bf16 %v667_v10, %v666_v8  ;;  %v440_v15 = vadd.f32 %v2990_v47, %v439_v11  ;;  %v672_v18 = vmax.f32 %v448_v12, 0.0 }
  0xe1   :  { %v2601_v14 = vpop.f32.mrf.mxu0 }
  0xe2   :  { %v451_v16 = vadd.f32 %v2601_v14, %v2990_v47  ;;  %2451 = vst [vmem:[%s3321_s5 + $0x10] sm:$0xff] %v728_v13   ;;  %2674 = vmatprep.mubr.bf16.mxu1 %v728_v13  ;;  %v670_v22 = vmax.f32 %v440_v15, 0.0 }
  0xe3   :  { %v442_v17 = vpop.f32.mrf.mxu0  ;;  %2675 = vmatmul.mubr.bf16.vlgmr.msra.gmra.mxu1 %v729_v9 }
  0xe4   :  { %v673_v19 = vmax.f32 %v451_v16, 0.0  ;;  %v443_v20 = vadd.f32 %v2990_v47, %v442_v17 }
  0xe5   :  { %v2604_v21 = vpop.f32.mrf.mxu0 }
  0xe6   :  { %v731_v23 = vpack.c.bf16 %v673_v19, %v672_v18  ;;  %v671_v24 = vmax.f32 %v443_v20, 0.0  ;;  %v464_v27 = vadd.f32 %v2604_v21, %v2990_v47 }
  0xe7   :  { %v455_v25 = vpop.f32.mrf.mxu0 }
  0xe8   :  { %2454 = vst [vmem:[%s3321_s5 + $0x28] sm:$0xff] %v731_v23   ;;  %v730_v26 = vpack.c.bf16 %v671_v24, %v670_v22  ;;  %v456_v29 = vadd.f32 %v2990_v47, %v455_v25  ;;  %v676_v32 = vmax.f32 %v464_v27, 0.0 }
  0xe9   :  { %v2605_v28 = vpop.f32.mrf.mxu0 }
  0xea   :  { %2453 = vst [vmem:[%s3321_s5 + $0x20] sm:$0xff] %v730_v26   ;;  %v467_v30 = vadd.f32 %v2605_v28, %v2990_v47  ;;  %2678 = vmatprep.mubr.bf16.mxu1 %v730_v26  ;;  %v674_v36 = vmax.f32 %v456_v29, 0.0 }
  0xeb   :  { %v458_v31 = vpop.f32.mrf.mxu0  ;;  %2679 = vmatmul.mubr.bf16.gmra.mxu1 %v731_v23 }
  0xec   :  { %v677_v33 = vmax.f32 %v467_v30, 0.0  ;;  %v459_v34 = vadd.f32 %v2990_v47, %v458_v31 }
  0xed   :  { %v2608_v35 = vpop.f32.mrf.mxu0 }
  0xee   :  { %v733_v37 = vpack.c.bf16 %v677_v33, %v676_v32  ;;  %v675_v38 = vmax.f32 %v459_v34, 0.0  ;;  %v480_v41 = vadd.f32 %v2608_v35, %v2990_v47 }
  0xef   :  { %v471_v39 = vpop.f32.mrf.mxu0 }
  0xf0   :  { %2456 = vst [vmem:[%s3321_s5 + $0x38] sm:$0xff] %v733_v37   ;;  %v732_v40 = vpack.c.bf16 %v675_v38, %v674_v36  ;;  %v472_v43 = vadd.f32 %v2990_v47, %v471_v39  ;;  %v680_v46 = vmax.f32 %v480_v41, 0.0 }
  0xf1   :  { %v2609_v42 = vpop.f32.mrf.mxu0 }
  0xf2   :  { %2455 = vst [vmem:[%s3321_s5 + $0x30] sm:$0xff] %v732_v40   ;;  %v483_v44 = vadd.f32 %v2609_v42, %v2990_v47  ;;  %2682 = vmatprep.mubr.bf16.mxu1 %v732_v40  ;;  %v678_v51 = vmax.f32 %v472_v43, 0.0 }
  0xf3   :  { %v474_v45 = vpop.f32.mrf.mxu0  ;;  %2683 = vmatmul.mubr.bf16.gmra.mxu1 %v733_v37 }
  0xf4   :  { %v681_v48 = vmax.f32 %v483_v44, 0.0  ;;  %v475_v49 = vadd.f32 %v2990_v47, %v474_v45 }
  0xf5   :  { %v2612_v50 = vpop.f32.mrf.mxu0 }
  0xf6   :  { %v735_v52 = vpack.c.bf16 %v681_v48, %v680_v46  ;;  %v679_v53 = vmax.f32 %v475_v49, 0.0  ;;  %v496_v56 = vadd.f32 %v2612_v50, %v2990_v47 }
  0xf7   :  { %v487_v54 = vpop.f32.mrf.mxu0 }
  0xf8   :  { %2458 = vst [vmem:[%s3321_s5 + $0x48] sm:$0xff] %v735_v52   ;;  %v734_v55 = vpack.c.bf16 %v679_v53, %v678_v51  ;;  %v488_v58 = vadd.f32 %v2990_v47, %v487_v54  ;;  %v684_v61 = vmax.f32 %v496_v56, 0.0 }
  0xf9   :  { %v2613_v57 = vpop.f32.mrf.mxu0 }
  0xfa   :  { %2457 = vst [vmem:[%s3321_s5 + $0x40] sm:$0xff] %v734_v55   ;;  %v499_v59 = vadd.f32 %v2613_v57, %v2990_v47  ;;  %2686 = vmatprep.mubr.bf16.mxu1 %v734_v55  ;;  %v682_v1 = vmax.f32 %v488_v58, 0.0 }
  0xfb   :  { %v490_v60 = vpop.f32.mrf.mxu0  ;;  %2687 = vmatmul.mubr.bf16.gmra.mxu1 %v735_v52 }
  0xfc   :  { %v685_v62 = vmax.f32 %v499_v59, 0.0  ;;  %v491_v63 = vadd.f32 %v2990_v47, %v490_v60 }
  0xfd   :  { %v2616_v0 = vpop.f32.mrf.mxu0 }
  0xfe   :  { %v737_v2 = vpack.c.bf16 %v685_v62, %v684_v61  ;;  %v683_v3 = vmax.f32 %v491_v63, 0.0  ;;  %v512_v6 = vadd.f32 %v2616_v0, %v2990_v47 }
  0xff   :  { %v503_v4 = vpop.f32.mrf.mxu0 }
 0x100   :  { %2460 = vst [vmem:[%s3321_s5 + $0x58] sm:$0xff] %v737_v2   ;;  %v736_v5 = vpack.c.bf16 %v683_v3, %v682_v1  ;;  %v504_v8 = vadd.f32 %v2990_v47, %v503_v4  ;;  %v688_v11 = vmax.f32 %v512_v6, 0.0 }
 0x101   :  { %v2617_v7 = vpop.f32.mrf.mxu0 }
 0x102   :  { %2459 = vst [vmem:[%s3321_s5 + $0x50] sm:$0xff] %v736_v5   ;;  %v515_v9 = vadd.f32 %v2617_v7, %v2990_v47  ;;  %2690 = vmatprep.mubr.bf16.mxu1 %v736_v5  ;;  %v686_v15 = vmax.f32 %v504_v8, 0.0 }
 0x103   :  { %v506_v10 = vpop.f32.mrf.mxu0  ;;  %2691 = vmatmul.mubr.bf16.gmra.mxu1 %v737_v2 }
 0x104   :  { %v689_v12 = vmax.f32 %v515_v9, 0.0  ;;  %v507_v13 = vadd.f32 %v2990_v47, %v506_v10 }
 0x105   :  { %v2620_v14 = vpop.f32.mrf.mxu0 }
 0x106   :  { %v739_v16 = vpack.c.bf16 %v689_v12, %v688_v11  ;;  %v687_v17 = vmax.f32 %v507_v13, 0.0  ;;  %v528_v20 = vadd.f32 %v2620_v14, %v2990_v47 }
 0x107   :  { %v519_v18 = vpop.f32.mrf.mxu0 }
 0x108   :  { %2462 = vst [vmem:[%s3321_s5 + $0x68] sm:$0xff] %v739_v16   ;;  %v738_v19 = vpack.c.bf16 %v687_v17, %v686_v15  ;;  %v520_v22 = vadd.f32 %v2990_v47, %v519_v18  ;;  %v692_v25 = vmax.f32 %v528_v20, 0.0 }
 0x109   :  { %v2621_v21 = vpop.f32.mrf.mxu0 }
 0x10a   :  { %2461 = vst [vmem:[%s3321_s5 + $0x60] sm:$0xff] %v738_v19   ;;  %v531_v23 = vadd.f32 %v2621_v21, %v2990_v47  ;;  %2694 = vmatprep.mubr.bf16.mxu1 %v738_v19  ;;  %v690_v29 = vmax.f32 %v520_v22, 0.0 }
 0x10b   :  { %v522_v24 = vpop.f32.mrf.mxu0  ;;  %2695 = vmatmul.mubr.bf16.gmra.mxu1 %v739_v16 }
 0x10c   :  { %v693_v26 = vmax.f32 %v531_v23, 0.0  ;;  %v523_v27 = vadd.f32 %v2990_v47, %v522_v24 }
 0x10d   :  { %v2624_v28 = vpop.f32.mrf.mxu0 }
 0x10e   :  { %v741_v30 = vpack.c.bf16 %v693_v26, %v692_v25  ;;  %v691_v31 = vmax.f32 %v523_v27, 0.0  ;;  %v544_v34 = vadd.f32 %v2624_v28, %v2990_v47 }
 0x10f   :  { %v535_v32 = vpop.f32.mrf.mxu0 }
 0x110   :  { %2464 = vst [vmem:[%s3321_s5 + $0x78] sm:$0xff] %v741_v30   ;;  %v740_v33 = vpack.c.bf16 %v691_v31, %v690_v29  ;;  %v536_v36 = vadd.f32 %v2990_v47, %v535_v32  ;;  %v696_v39 = vmax.f32 %v544_v34, 0.0 }
 0x111   :  { %v2625_v35 = vpop.f32.mrf.mxu0 }
 0x112   :  { %2463 = vst [vmem:[%s3321_s5 + $0x70] sm:$0xff] %v740_v33   ;;  %v547_v37 = vadd.f32 %v2625_v35, %v2990_v47  ;;  %2698 = vmatprep.mubr.bf16.mxu1 %v740_v33  ;;  %v694_v43 = vmax.f32 %v536_v36, 0.0 }
 0x113   :  { %v538_v38 = vpop.f32.mrf.mxu0  ;;  %2699 = vmatmul.mubr.bf16.gmra.mxu1 %v741_v30 }
 0x114   :  { %v697_v40 = vmax.f32 %v547_v37, 0.0  ;;  %v539_v41 = vadd.f32 %v2990_v47, %v538_v38 }
 0x115   :  { %v2628_v42 = vpop.f32.mrf.mxu0 }
 0x116   :  { %v743_v44 = vpack.c.bf16 %v697_v40, %v696_v39  ;;  %v695_v45 = vmax.f32 %v539_v41, 0.0  ;;  %v560_v49 = vadd.f32 %v2628_v42, %v2990_v47 }
 0x117   :  { %v551_v46 = vpop.f32.mrf.mxu0 }
 0x118   :  { %2466 = vst [vmem:[%s3321_s5 + $0x88] sm:$0xff] %v743_v44   ;;  %v742_v48 = vpack.c.bf16 %v695_v45, %v694_v43  ;;  %v552_v51 = vadd.f32 %v2990_v47, %v551_v46  ;;  %v700_v54 = vmax.f32 %v560_v49, 0.0 }
 0x119   :  { %v2629_v50 = vpop.f32.mrf.mxu0 }
 0x11a   :  { %2465 = vst [vmem:[%s3321_s5 + $0x80] sm:$0xff] %v742_v48   ;;  %v563_v52 = vadd.f32 %v2629_v50, %v2990_v47  ;;  %2702 = vmatprep.mubr.bf16.mxu1 %v742_v48  ;;  %v698_v58 = vmax.f32 %v552_v51, 0.0 }
 0x11b   :  { %v554_v53 = vpop.f32.mrf.mxu0  ;;  %2703 = vmatmul.mubr.bf16.gmra.mxu1 %v743_v44 }
 0x11c   :  { %v701_v55 = vmax.f32 %v563_v52, 0.0  ;;  %v555_v56 = vadd.f32 %v2990_v47, %v554_v53 }
 0x11d   :  { %v2632_v57 = vpop.f32.mrf.mxu0 }
 0x11e   :  { %v745_v59 = vpack.c.bf16 %v701_v55, %v700_v54  ;;  %v699_v60 = vmax.f32 %v555_v56, 0.0  ;;  %v576_v63 = vadd.f32 %v2632_v57, %v2990_v47 }
 0x11f   :  { %v567_v61 = vpop.f32.mrf.mxu0 }
 0x120   :  { %2468 = vst [vmem:[%s3321_s5 + $0x98] sm:$0xff] %v745_v59   ;;  %v744_v62 = vpack.c.bf16 %v699_v60, %v698_v58  ;;  %v568_v1 = vadd.f32 %v2990_v47, %v567_v61  ;;  %v704_v4 = vmax.f32 %v576_v63, 0.0 }
 0x121   :  { %v2633_v0 = vpop.f32.mrf.mxu0 }
 0x122   :  { %2467 = vst [vmem:[%s3321_s5 + $0x90] sm:$0xff] %v744_v62   ;;  %v579_v2 = vadd.f32 %v2633_v0, %v2990_v47  ;;  %2706 = vmatprep.mubr.bf16.mxu1 %v744_v62  ;;  %v702_v8 = vmax.f32 %v568_v1, 0.0 }
 0x123   :  { %v570_v3 = vpop.f32.mrf.mxu0  ;;  %2707 = vmatmul.mubr.bf16.gmra.mxu1 %v745_v59 }
 0x124   :  { %v705_v5 = vmax.f32 %v579_v2, 0.0  ;;  %v571_v6 = vadd.f32 %v2990_v47, %v570_v3 }
 0x125   :  { %v2636_v7 = vpop.f32.mrf.mxu0 }
 0x126   :  { %v747_v9 = vpack.c.bf16 %v705_v5, %v704_v4  ;;  %v703_v10 = vmax.f32 %v571_v6, 0.0  ;;  %v592_v13 = vadd.f32 %v2636_v7, %v2990_v47 }
 0x127   :  { %v583_v11 = vpop.f32.mrf.mxu0 }
 0x128   :  { %2470 = vst [vmem:[%s3321_s5 + $0xa8] sm:$0xff] %v747_v9   ;;  %v746_v12 = vpack.c.bf16 %v703_v10, %v702_v8  ;;  %v584_v15 = vadd.f32 %v2990_v47, %v583_v11  ;;  %v708_v18 = vmax.f32 %v592_v13, 0.0 }
 0x129   :  { %v2637_v14 = vpop.f32.mrf.mxu0 }
 0x12a   :  { %2469 = vst [vmem:[%s3321_s5 + $0xa0] sm:$0xff] %v746_v12   ;;  %v595_v16 = vadd.f32 %v2637_v14, %v2990_v47  ;;  %2710 = vmatprep.mubr.bf16.mxu1 %v746_v12  ;;  %v706_v22 = vmax.f32 %v584_v15, 0.0 }
 0x12b   :  { %v586_v17 = vpop.f32.mrf.mxu0  ;;  %2711 = vmatmul.mubr.bf16.gmra.mxu1 %v747_v9 }
 0x12c   :  { %v709_v19 = vmax.f32 %v595_v16, 0.0  ;;  %v587_v20 = vadd.f32 %v2990_v47, %v586_v17 }
 0x12d   :  { %v2640_v21 = vpop.f32.mrf.mxu0 }
 0x12e   :  { %v749_v23 = vpack.c.bf16 %v709_v19, %v708_v18  ;;  %v707_v24 = vmax.f32 %v587_v20, 0.0  ;;  %v608_v27 = vadd.f32 %v2640_v21, %v2990_v47  ;;  %v3155_v19 = vld [vmem:[%s3322_s4] ss:$0 sm:$0xff] }
 0x12f   :  { %v599_v25 = vpop.f32.mrf.mxu0 }
 0x130   :  { %2472 = vst [vmem:[%s3321_s5 + $0xb8] sm:$0xff] %v749_v23   ;;  %v748_v26 = vpack.c.bf16 %v707_v24, %v706_v22  ;;  %v600_v29 = vadd.f32 %v2990_v47, %v599_v25  ;;  %v712_v32 = vmax.f32 %v608_v27, 0.0 }
 0x131   :  { %v2641_v28 = vpop.f32.mrf.mxu0 }
 0x132   :  { %2471 = vst [vmem:[%s3321_s5 + $0xb0] sm:$0xff] %v748_v26   ;;  %v611_v30 = vadd.f32 %v2641_v28, %v2990_v47  ;;  %2714 = vmatprep.mubr.bf16.mxu1 %v748_v26  ;;  %v710_v36 = vmax.f32 %v600_v29, 0.0 }
 0x133   :  { %v602_v31 = vpop.f32.mrf.mxu0  ;;  %2715 = vmatmul.mubr.bf16.gmra.mxu1 %v749_v23 }
 0x134   :  { %v713_v33 = vmax.f32 %v611_v30, 0.0  ;;  %v603_v34 = vadd.f32 %v2990_v47, %v602_v31 }
 0x135   :  { %v2644_v35 = vpop.f32.mrf.mxu0 }
 0x136   :  { %v751_v37 = vpack.c.bf16 %v713_v33, %v712_v32  ;;  %v711_v38 = vmax.f32 %v603_v34, 0.0  ;;  %v624_v41 = vadd.f32 %v2644_v35, %v2990_v47 }
 0x137   :  { %v615_v39 = vpop.f32.mrf.mxu0 }
 0x138   :  { %2474 = vst [vmem:[%s3321_s5 + $0xc8] sm:$0xff] %v751_v37   ;;  %v750_v40 = vpack.c.bf16 %v711_v38, %v710_v36  ;;  %v616_v43 = vadd.f32 %v2990_v47, %v615_v39  ;;  %v716_v46 = vmax.f32 %v624_v41, 0.0 }
 0x139   :  { %v2645_v42 = vpop.f32.mrf.mxu0 }
 0x13a   :  { %2473 = vst [vmem:[%s3321_s5 + $0xc0] sm:$0xff] %v750_v40   ;;  %v627_v44 = vadd.f32 %v2645_v42, %v2990_v47  ;;  %2718 = vmatprep.mubr.bf16.mxu1 %v750_v40  ;;  %v714_v51 = vmax.f32 %v616_v43, 0.0 }
 0x13b   :  { %v618_v45 = vpop.f32.mrf.mxu0  ;;  %2719 = vmatmul.mubr.bf16.gmra.mxu1 %v751_v37 }
 0x13c   :  { %v717_v48 = vmax.f32 %v627_v44, 0.0  ;;  %v619_v49 = vadd.f32 %v2990_v47, %v618_v45 }
 0x13d   :  { %v2648_v50 = vpop.f32.mrf.mxu0 }
 0x13e   :  { %v753_v52 = vpack.c.bf16 %v717_v48, %v716_v46  ;;  %v715_v53 = vmax.f32 %v619_v49, 0.0  ;;  %v640_v56 = vadd.f32 %v2648_v50, %v2990_v47 }
 0x13f   :  { %v631_v54 = vpop.f32.mrf.mxu0 }
 0x140   :  { %2476 = vst [vmem:[%s3321_s5 + $0xd8] sm:$0xff] %v753_v52   ;;  %v752_v55 = vpack.c.bf16 %v715_v53, %v714_v51  ;;  %v632_v58 = vadd.f32 %v2990_v47, %v631_v54  ;;  %v720_v61 = vmax.f32 %v640_v56, 0.0 }
 0x141   :  { %v2649_v57 = vpop.f32.mrf.mxu0 }
 0x142   :  { %2475 = vst [vmem:[%s3321_s5 + $0xd0] sm:$0xff] %v752_v55   ;;  %v643_v59 = vadd.f32 %v2649_v57, %v2990_v47  ;;  %2722 = vmatprep.mubr.bf16.mxu1 %v752_v55  ;;  %v718_v1 = vmax.f32 %v632_v58, 0.0 }
 0x143   :  { %v634_v60 = vpop.f32.mrf.mxu0  ;;  %2723 = vmatmul.mubr.bf16.gmra.mxu1 %v753_v52 }
 0x144   :  { %v721_v62 = vmax.f32 %v643_v59, 0.0  ;;  %v635_v63 = vadd.f32 %v2990_v47, %v634_v60 }
 0x145   :  { %v2652_v0 = vpop.f32.mrf.mxu0 }
 0x146   :  { %v755_v2 = vpack.c.bf16 %v721_v62, %v720_v61  ;;  %v719_v3 = vmax.f32 %v635_v63, 0.0  ;;  %v656_v6 = vadd.f32 %v2652_v0, %v2990_v47 }
 0x147   :  { %v647_v4 = vpop.f32.mrf.mxu0 }
 0x148   :  { %2478 = vst [vmem:[%s3321_s5 + $0xe8] sm:$0xff] %v755_v2   ;;  %v754_v5 = vpack.c.bf16 %v719_v3, %v718_v1  ;;  %v648_v8 = vadd.f32 %v2990_v47, %v647_v4  ;;  %v724_v11 = vmax.f32 %v656_v6, 0.0 }
 0x149   :  { %v2653_v7 = vpop.f32.mrf.mxu0 }
 0x14a   :  { %2477 = vst [vmem:[%s3321_s5 + $0xe0] sm:$0xff] %v754_v5   ;;  %v659_v9 = vadd.f32 %v2653_v7, %v2990_v47  ;;  %2726 = vmatprep.mubr.bf16.mxu1 %v754_v5  ;;  %v722_v14 = vmax.f32 %v648_v8, 0.0 }
 0x14b   :  { %v650_v10 = vpop.f32.mrf.mxu0  ;;  %2727 = vmatmul.mubr.bf16.gmra.mxu1 %v755_v2 }
 0x14c   :  { %v725_v12 = vmax.f32 %v659_v9, 0.0  ;;  %v651_v13 = vadd.f32 %v2990_v47, %v650_v10 }
 0x14e   :  { %v757_v15 = vpack.c.bf16 %v725_v12, %v724_v11  ;;  %v723_v16 = vmax.f32 %v651_v13, 0.0 }
 0x150   :  { %2480 = vst [vmem:[%s3321_s5 + $0xf8] sm:$0xff] %v757_v15   ;;  %v756_v17 = vpack.c.bf16 %v723_v16, %v722_v14 }
 0x152   :  { %2479 = vst [vmem:[%s3321_s5 + $0xf0] sm:$0xff] %v756_v17   ;;  %2730 = vmatprep.mubr.bf16.mxu1 %v756_v17 }
 0x153   :  { %2731 = vmatmul.mubr.bf16.gmra.mxu1 %v757_v15 }
 0x19b   :  { %v2672_v18 = vpop.f32.mrf.mxu0 }
 0x19c   :  { %v1160_v20 = vadd.f32 %v2672_v18, %v3155_v19 }
 0x19d   :  { %v1151_v47 = vpop.f32.mrf.mxu0 }
 0x19e   :  { %v1152_v22 = vadd.f32 %v3155_v19, %v1151_v47  ;;  %v1408_v25 = vmax.f32 %v1160_v20, 0.0 }
 0x19f   :  { %v2673_v21 = vpop.f32.mrf.mxu0 }
 0x1a0   :  { %v1163_v23 = vadd.f32 %v2673_v21, %v3155_v19  ;;  %v1406_v29 = vmax.f32 %v1152_v22, 0.0 }
 0x1a1   :  { %v1154_v24 = vpop.f32.mrf.mxu0 }
 0x1a2   :  { %v1409_v26 = vmax.f32 %v1163_v23, 0.0  ;;  %v1155_v27 = vadd.f32 %v3155_v19, %v1154_v24 }
 0x1a3   :  { %v2676_v28 = vpop.f32.mrf.mxu1 }
 0x1a4   :  { %v2298_v30 = vpack.c.bf16 %v1409_v26, %v1408_v25  ;;  %v1407_v31 = vmax.f32 %v1155_v27, 0.0  ;;  %v1176_v34 = vadd.f32 %v2676_v28, %v3155_v19 }
 0x1a5   :  { %v1167_v32 = vpop.f32.mrf.mxu1 }
 0x1a6   :  { %2481 = vst [vmem:[%s3323_s6 + $0x8] sm:$0xff] %v2298_v30   ;;  %v2293_v33 = vpack.c.bf16 %v1407_v31, %v1406_v29  ;;  %v1168_v36 = vadd.f32 %v3155_v19, %v1167_v32  ;;  %v1412_v39 = vmax.f32 %v1176_v34, 0.0 }
 0x1a7   :  { %v2677_v35 = vpop.f32.mrf.mxu1 }
 0x1a8   :  { %2294 = vst [vmem:[%s3323_s6] sm:$0xff] %v2293_v33   ;;  %v1179_v37 = vadd.f32 %v2677_v35, %v3155_v19  ;;  %v1410_v43 = vmax.f32 %v1168_v36, 0.0 }
 0x1a9   :  { %v1170_v38 = vpop.f32.mrf.mxu1 }
 0x1aa   :  { %v1413_v40 = vmax.f32 %v1179_v37, 0.0  ;;  %v1171_v41 = vadd.f32 %v3155_v19, %v1170_v38 }
 0x1ab   :  { %v2680_v42 = vpop.f32.mrf.mxu1 }
 0x1ac   :  { %v2308_v44 = vpack.c.bf16 %v1413_v40, %v1412_v39  ;;  %v1411_v45 = vmax.f32 %v1171_v41, 0.0  ;;  %v1192_v49 = vadd.f32 %v2680_v42, %v3155_v19 }
 0x1ad   :  { %v1183_v46 = vpop.f32.mrf.mxu1 }
 0x1ae   :  { %2483 = vst [vmem:[%s3323_s6 + $0x18] sm:$0xff] %v2308_v44   ;;  %v2303_v48 = vpack.c.bf16 %v1411_v45, %v1410_v43  ;;  %v1184_v51 = vadd.f32 %v3155_v19, %v1183_v46  ;;  %v1416_v54 = vmax.f32 %v1192_v49, 0.0 }
 0x1af   :  { %v2681_v50 = vpop.f32.mrf.mxu1 }
 0x1b0   :  { %2482 = vst [vmem:[%s3323_s6 + $0x10] sm:$0xff] %v2303_v48   ;;  %v1195_v52 = vadd.f32 %v2681_v50, %v3155_v19  ;;  %v1414_v58 = vmax.f32 %v1184_v51, 0.0 }
 0x1b1   :  { %v1186_v53 = vpop.f32.mrf.mxu1 }
 0x1b2   :  { %v1417_v55 = vmax.f32 %v1195_v52, 0.0  ;;  %v1187_v56 = vadd.f32 %v3155_v19, %v1186_v53 }
 0x1b3   :  { %v2684_v57 = vpop.f32.mrf.mxu1 }
 0x1b4   :  { %v2318_v59 = vpack.c.bf16 %v1417_v55, %v1416_v54  ;;  %v1415_v60 = vmax.f32 %v1187_v56, 0.0  ;;  %v1208_v63 = vadd.f32 %v2684_v57, %v3155_v19 }
 0x1b5   :  { %v1199_v61 = vpop.f32.mrf.mxu1 }
 0x1b6   :  { %2485 = vst [vmem:[%s3323_s6 + $0x28] sm:$0xff] %v2318_v59   ;;  %v2313_v62 = vpack.c.bf16 %v1415_v60, %v1414_v58  ;;  %v1200_v1 = vadd.f32 %v3155_v19, %v1199_v61  ;;  %v1420_v4 = vmax.f32 %v1208_v63, 0.0 }
 0x1b7   :  { %v2685_v0 = vpop.f32.mrf.mxu1 }
 0x1b8   :  { %2484 = vst [vmem:[%s3323_s6 + $0x20] sm:$0xff] %v2313_v62   ;;  %v1211_v2 = vadd.f32 %v2685_v0, %v3155_v19  ;;  %v1418_v8 = vmax.f32 %v1200_v1, 0.0 }
 0x1b9   :  { %v1202_v3 = vpop.f32.mrf.mxu1 }
 0x1ba   :  { %v1421_v5 = vmax.f32 %v1211_v2, 0.0  ;;  %v1203_v6 = vadd.f32 %v3155_v19, %v1202_v3 }
 0x1bb   :  { %v2688_v7 = vpop.f32.mrf.mxu1 }
 0x1bc   :  { %v2328_v9 = vpack.c.bf16 %v1421_v5, %v1420_v4  ;;  %v1419_v10 = vmax.f32 %v1203_v6, 0.0  ;;  %v1224_v13 = vadd.f32 %v2688_v7, %v3155_v19 }
 0x1bd   :  { %v1215_v11 = vpop.f32.mrf.mxu1 }
 0x1be   :  { %2487 = vst [vmem:[%s3323_s6 + $0x38] sm:$0xff] %v2328_v9   ;;  %v2323_v12 = vpack.c.bf16 %v1419_v10, %v1418_v8  ;;  %v1216_v15 = vadd.f32 %v3155_v19, %v1215_v11  ;;  %v1424_v18 = vmax.f32 %v1224_v13, 0.0 }
 0x1bf   :  { %v2689_v14 = vpop.f32.mrf.mxu1 }
 0x1c0   :  { %2486 = vst [vmem:[%s3323_s6 + $0x30] sm:$0xff] %v2323_v12   ;;  %v1227_v16 = vadd.f32 %v2689_v14, %v3155_v19  ;;  %v1422_v22 = vmax.f32 %v1216_v15, 0.0 }
 0x1c1   :  { %v1218_v17 = vpop.f32.mrf.mxu1 }
 0x1c2   :  { %v1425_v47 = vmax.f32 %v1227_v16, 0.0  ;;  %v1219_v20 = vadd.f32 %v3155_v19, %v1218_v17 }
 0x1c3   :  { %v2692_v21 = vpop.f32.mrf.mxu1 }
 0x1c4   :  { %v2338_v23 = vpack.c.bf16 %v1425_v47, %v1424_v18  ;;  %v1423_v24 = vmax.f32 %v1219_v20, 0.0  ;;  %v1240_v27 = vadd.f32 %v2692_v21, %v3155_v19 }
 0x1c5   :  { %v1231_v25 = vpop.f32.mrf.mxu1 }
 0x1c6   :  { %2489 = vst [vmem:[%s3323_s6 + $0x48] sm:$0xff] %v2338_v23   ;;  %v2333_v26 = vpack.c.bf16 %v1423_v24, %v1422_v22  ;;  %v1232_v29 = vadd.f32 %v3155_v19, %v1231_v25  ;;  %v1428_v32 = vmax.f32 %v1240_v27, 0.0 }
 0x1c7   :  { %v2693_v28 = vpop.f32.mrf.mxu1 }
 0x1c8   :  { %2488 = vst [vmem:[%s3323_s6 + $0x40] sm:$0xff] %v2333_v26   ;;  %v1243_v30 = vadd.f32 %v2693_v28, %v3155_v19  ;;  %v1426_v36 = vmax.f32 %v1232_v29, 0.0 }
 0x1c9   :  { %v1234_v31 = vpop.f32.mrf.mxu1 }
 0x1ca   :  { %v1429_v33 = vmax.f32 %v1243_v30, 0.0  ;;  %v1235_v34 = vadd.f32 %v3155_v19, %v1234_v31 }
 0x1cb   :  { %v2696_v35 = vpop.f32.mrf.mxu1 }
 0x1cc   :  { %v2348_v37 = vpack.c.bf16 %v1429_v33, %v1428_v32  ;;  %v1427_v38 = vmax.f32 %v1235_v34, 0.0  ;;  %v1256_v41 = vadd.f32 %v2696_v35, %v3155_v19 }
 0x1cd   :  { %v1247_v39 = vpop.f32.mrf.mxu1 }
 0x1ce   :  { %2491 = vst [vmem:[%s3323_s6 + $0x58] sm:$0xff] %v2348_v37   ;;  %v2343_v40 = vpack.c.bf16 %v1427_v38, %v1426_v36  ;;  %v1248_v43 = vadd.f32 %v3155_v19, %v1247_v39  ;;  %v1432_v46 = vmax.f32 %v1256_v41, 0.0 }
 0x1cf   :  { %v2697_v42 = vpop.f32.mrf.mxu1 }
 0x1d0   :  { %2490 = vst [vmem:[%s3323_s6 + $0x50] sm:$0xff] %v2343_v40   ;;  %v1259_v44 = vadd.f32 %v2697_v42, %v3155_v19  ;;  %v1430_v51 = vmax.f32 %v1248_v43, 0.0 }
 0x1d1   :  { %v1250_v45 = vpop.f32.mrf.mxu1 }
 0x1d2   :  { %v1433_v48 = vmax.f32 %v1259_v44, 0.0  ;;  %v1251_v49 = vadd.f32 %v3155_v19, %v1250_v45 }
 0x1d3   :  { %v2700_v50 = vpop.f32.mrf.mxu1 }
 0x1d4   :  { %v2358_v52 = vpack.c.bf16 %v1433_v48, %v1432_v46  ;;  %v1431_v53 = vmax.f32 %v1251_v49, 0.0  ;;  %v1272_v56 = vadd.f32 %v2700_v50, %v3155_v19 }
 0x1d5   :  { %v1263_v54 = vpop.f32.mrf.mxu1 }
 0x1d6   :  { %2493 = vst [vmem:[%s3323_s6 + $0x68] sm:$0xff] %v2358_v52   ;;  %v2353_v55 = vpack.c.bf16 %v1431_v53, %v1430_v51  ;;  %v1264_v58 = vadd.f32 %v3155_v19, %v1263_v54  ;;  %v1436_v61 = vmax.f32 %v1272_v56, 0.0 }
 0x1d7   :  { %v2701_v57 = vpop.f32.mrf.mxu1 }
 0x1d8   :  { %2492 = vst [vmem:[%s3323_s6 + $0x60] sm:$0xff] %v2353_v55   ;;  %v1275_v59 = vadd.f32 %v2701_v57, %v3155_v19  ;;  %v1434_v1 = vmax.f32 %v1264_v58, 0.0 }
 0x1d9   :  { %v1266_v60 = vpop.f32.mrf.mxu1 }
 0x1da   :  { %v1437_v62 = vmax.f32 %v1275_v59, 0.0  ;;  %v1267_v63 = vadd.f32 %v3155_v19, %v1266_v60 }
 0x1db   :  { %v2704_v0 = vpop.f32.mrf.mxu1 }
 0x1dc   :  { %v2368_v2 = vpack.c.bf16 %v1437_v62, %v1436_v61  ;;  %v1435_v3 = vmax.f32 %v1267_v63, 0.0  ;;  %v1288_v6 = vadd.f32 %v2704_v0, %v3155_v19 }
 0x1dd   :  { %v1279_v4 = vpop.f32.mrf.mxu1 }
 0x1de   :  { %2495 = vst [vmem:[%s3323_s6 + $0x78] sm:$0xff] %v2368_v2   ;;  %v2363_v5 = vpack.c.bf16 %v1435_v3, %v1434_v1  ;;  %v1280_v8 = vadd.f32 %v3155_v19, %v1279_v4  ;;  %v1440_v11 = vmax.f32 %v1288_v6, 0.0 }
 0x1df   :  { %v2705_v7 = vpop.f32.mrf.mxu1 }
 0x1e0   :  { %2494 = vst [vmem:[%s3323_s6 + $0x70] sm:$0xff] %v2363_v5   ;;  %v1291_v9 = vadd.f32 %v2705_v7, %v3155_v19  ;;  %v1438_v15 = vmax.f32 %v1280_v8, 0.0 }
 0x1e1   :  { %v1282_v10 = vpop.f32.mrf.mxu1 }
 0x1e2   :  { %v1441_v12 = vmax.f32 %v1291_v9, 0.0  ;;  %v1283_v13 = vadd.f32 %v3155_v19, %v1282_v10 }
 0x1e3   :  { %v2708_v14 = vpop.f32.mrf.mxu1 }
 0x1e4   :  { %v2378_v16 = vpack.c.bf16 %v1441_v12, %v1440_v11  ;;  %v1439_v17 = vmax.f32 %v1283_v13, 0.0  ;;  %v1304_v20 = vadd.f32 %v2708_v14, %v3155_v19 }
 0x1e5   :  { %v1295_v18 = vpop.f32.mrf.mxu1 }
 0x1e6   :  { %2497 = vst [vmem:[%s3323_s6 + $0x88] sm:$0xff] %v2378_v16   ;;  %v2373_v47 = vpack.c.bf16 %v1439_v17, %v1438_v15  ;;  %v1296_v22 = vadd.f32 %v3155_v19, %v1295_v18  ;;  %v1444_v25 = vmax.f32 %v1304_v20, 0.0 }
 0x1e7   :  { %v2709_v21 = vpop.f32.mrf.mxu1 }
 0x1e8   :  { %2496 = vst [vmem:[%s3323_s6 + $0x80] sm:$0xff] %v2373_v47   ;;  %v1307_v23 = vadd.f32 %v2709_v21, %v3155_v19  ;;  %v1442_v29 = vmax.f32 %v1296_v22, 0.0 }
 0x1e9   :  { %v1298_v24 = vpop.f32.mrf.mxu1 }
 0x1ea   :  { %v1445_v26 = vmax.f32 %v1307_v23, 0.0  ;;  %v1299_v27 = vadd.f32 %v3155_v19, %v1298_v24 }
 0x1eb   :  { %v2712_v28 = vpop.f32.mrf.mxu1 }
 0x1ec   :  { %v2388_v30 = vpack.c.bf16 %v1445_v26, %v1444_v25  ;;  %v1443_v31 = vmax.f32 %v1299_v27, 0.0  ;;  %v1320_v34 = vadd.f32 %v2712_v28, %v3155_v19 }
 0x1ed   :  { %v1311_v32 = vpop.f32.mrf.mxu1 }
 0x1ee   :  { %2499 = vst [vmem:[%s3323_s6 + $0x98] sm:$0xff] %v2388_v30   ;;  %v2383_v33 = vpack.c.bf16 %v1443_v31, %v1442_v29  ;;  %v1312_v36 = vadd.f32 %v3155_v19, %v1311_v32  ;;  %v1448_v39 = vmax.f32 %v1320_v34, 0.0 }
 0x1ef   :  { %v2713_v35 = vpop.f32.mrf.mxu1 }
 0x1f0   :  { %2498 = vst [vmem:[%s3323_s6 + $0x90] sm:$0xff] %v2383_v33   ;;  %v1323_v37 = vadd.f32 %v2713_v35, %v3155_v19  ;;  %v1446_v43 = vmax.f32 %v1312_v36, 0.0 }
 0x1f1   :  { %v1314_v38 = vpop.f32.mrf.mxu1 }
 0x1f2   :  { %v1449_v40 = vmax.f32 %v1323_v37, 0.0  ;;  %v1315_v41 = vadd.f32 %v3155_v19, %v1314_v38 }
 0x1f3   :  { %v2716_v42 = vpop.f32.mrf.mxu1 }
 0x1f4   :  { %v2398_v44 = vpack.c.bf16 %v1449_v40, %v1448_v39  ;;  %v1447_v45 = vmax.f32 %v1315_v41, 0.0  ;;  %v1336_v49 = vadd.f32 %v2716_v42, %v3155_v19 }
 0x1f5   :  { %v1327_v46 = vpop.f32.mrf.mxu1 }
 0x1f6   :  { %2501 = vst [vmem:[%s3323_s6 + $0xa8] sm:$0xff] %v2398_v44   ;;  %v2393_v48 = vpack.c.bf16 %v1447_v45, %v1446_v43  ;;  %v1328_v51 = vadd.f32 %v3155_v19, %v1327_v46  ;;  %v1452_v54 = vmax.f32 %v1336_v49, 0.0 }
 0x1f7   :  { %v2717_v50 = vpop.f32.mrf.mxu1 }
 0x1f8   :  { %2500 = vst [vmem:[%s3323_s6 + $0xa0] sm:$0xff] %v2393_v48   ;;  %v1339_v52 = vadd.f32 %v2717_v50, %v3155_v19  ;;  %v1450_v58 = vmax.f32 %v1328_v51, 0.0 }
 0x1f9   :  { %v1330_v53 = vpop.f32.mrf.mxu1 }
 0x1fa   :  { %v1453_v55 = vmax.f32 %v1339_v52, 0.0  ;;  %v1331_v56 = vadd.f32 %v3155_v19, %v1330_v53 }
 0x1fb   :  { %v2720_v57 = vpop.f32.mrf.mxu1 }
 0x1fc   :  { %v2408_v59 = vpack.c.bf16 %v1453_v55, %v1452_v54  ;;  %v1451_v60 = vmax.f32 %v1331_v56, 0.0  ;;  %v1352_v63 = vadd.f32 %v2720_v57, %v3155_v19 }
 0x1fd   :  { %v1343_v61 = vpop.f32.mrf.mxu1 }
 0x1fe   :  { %2503 = vst [vmem:[%s3323_s6 + $0xb8] sm:$0xff] %v2408_v59   ;;  %v2403_v62 = vpack.c.bf16 %v1451_v60, %v1450_v58  ;;  %v1344_v1 = vadd.f32 %v3155_v19, %v1343_v61  ;;  %v1456_v4 = vmax.f32 %v1352_v63, 0.0 }
 0x1ff   :  { %v2721_v0 = vpop.f32.mrf.mxu1 }
 0x200   :  { %2502 = vst [vmem:[%s3323_s6 + $0xb0] sm:$0xff] %v2403_v62   ;;  %v1355_v2 = vadd.f32 %v2721_v0, %v3155_v19  ;;  %v1454_v8 = vmax.f32 %v1344_v1, 0.0 }
 0x201   :  { %v1346_v3 = vpop.f32.mrf.mxu1 }
 0x202   :  { %v1457_v5 = vmax.f32 %v1355_v2, 0.0  ;;  %v1347_v6 = vadd.f32 %v3155_v19, %v1346_v3 }
 0x203   :  { %v2724_v7 = vpop.f32.mrf.mxu1 }
 0x204   :  { %v2418_v9 = vpack.c.bf16 %v1457_v5, %v1456_v4  ;;  %v1455_v10 = vmax.f32 %v1347_v6, 0.0  ;;  %v1368_v13 = vadd.f32 %v2724_v7, %v3155_v19 }
 0x205   :  { %v1359_v11 = vpop.f32.mrf.mxu1 }
 0x206   :  { %2505 = vst [vmem:[%s3323_s6 + $0xc8] sm:$0xff] %v2418_v9   ;;  %v2413_v12 = vpack.c.bf16 %v1455_v10, %v1454_v8  ;;  %v1360_v15 = vadd.f32 %v3155_v19, %v1359_v11  ;;  %v1460_v18 = vmax.f32 %v1368_v13, 0.0 }
 0x207   :  { %v2725_v14 = vpop.f32.mrf.mxu1 }
 0x208   :  { %2504 = vst [vmem:[%s3323_s6 + $0xc0] sm:$0xff] %v2413_v12   ;;  %v1371_v16 = vadd.f32 %v2725_v14, %v3155_v19  ;;  %v1458_v22 = vmax.f32 %v1360_v15, 0.0 }
 0x209   :  { %v1362_v17 = vpop.f32.mrf.mxu1 }
 0x20a   :  { %v1461_v47 = vmax.f32 %v1371_v16, 0.0  ;;  %v1363_v20 = vadd.f32 %v3155_v19, %v1362_v17 }
 0x20b   :  { %v2728_v21 = vpop.f32.mrf.mxu1 }
 0x20c   :  { %v2428_v23 = vpack.c.bf16 %v1461_v47, %v1460_v18  ;;  %v1459_v24 = vmax.f32 %v1363_v20, 0.0  ;;  %v1384_v27 = vadd.f32 %v2728_v21, %v3155_v19 }
 0x20d   :  { %v1375_v25 = vpop.f32.mrf.mxu1 }
 0x20e   :  { %2507 = vst [vmem:[%s3323_s6 + $0xd8] sm:$0xff] %v2428_v23   ;;  %v2423_v26 = vpack.c.bf16 %v1459_v24, %v1458_v22  ;;  %v1376_v29 = vadd.f32 %v3155_v19, %v1375_v25  ;;  %v1464_v32 = vmax.f32 %v1384_v27, 0.0 }
 0x20f   :  { %v2729_v28 = vpop.f32.mrf.mxu1 }
 0x210   :  { %2506 = vst [vmem:[%s3323_s6 + $0xd0] sm:$0xff] %v2423_v26   ;;  %v1387_v30 = vadd.f32 %v2729_v28, %v3155_v19  ;;  %v1462_v36 = vmax.f32 %v1376_v29, 0.0 }
 0x211   :  { %v1378_v31 = vpop.f32.mrf.mxu1 }
 0x212   :  { %v1465_v33 = vmax.f32 %v1387_v30, 0.0  ;;  %v1379_v34 = vadd.f32 %v3155_v19, %v1378_v31 }
 0x213   :  { %v2732_v35 = vpop.f32.mrf.mxu1 }
 0x214   :  { %v2438_v37 = vpack.c.bf16 %v1465_v33, %v1464_v32  ;;  %v1463_v38 = vmax.f32 %v1379_v34, 0.0  ;;  %v1400_v41 = vadd.f32 %v2732_v35, %v3155_v19 }
 0x215   :  { %v1391_v39 = vpop.f32.mrf.mxu1 }
 0x216   :  { %2509 = vst [vmem:[%s3323_s6 + $0xe8] sm:$0xff] %v2438_v37   ;;  %v2433_v40 = vpack.c.bf16 %v1463_v38, %v1462_v36  ;;  %v1392_v43 = vadd.f32 %v3155_v19, %v1391_v39  ;;  %v1468_v46 = vmax.f32 %v1400_v41, 0.0 }
 0x217   :  { %v2733_v42 = vpop.f32.mrf.mxu1 }
 0x218   :  { %2508 = vst [vmem:[%s3323_s6 + $0xe0] sm:$0xff] %v2433_v40   ;;  %v1403_v44 = vadd.f32 %v2733_v42, %v3155_v19  ;;  %v1466_v50 = vmax.f32 %v1392_v43, 0.0 }
 0x219   :  { %v1394_v45 = vpop.f32.mrf.mxu1 }
 0x21a   :  { %v1469_v48 = vmax.f32 %v1403_v44, 0.0  ;;  %v1395_v49 = vadd.f32 %v3155_v19, %v1394_v45 }
 0x21c   :  { %v2448_v51 = vpack.c.bf16 %v1469_v48, %v1468_v46  ;;  %v1467_v52 = vmax.f32 %v1395_v49, 0.0 }
 0x21e   :  { %2511 = vst [vmem:[%s3323_s6 + $0xf8] sm:$0xff] %v2448_v51   ;;  %v2443_v53 = vpack.c.bf16 %v1467_v52, %v1466_v50 }
 0x220   :  { %2510 = vst [vmem:[%s3323_s6 + $0xf0] sm:$0xff] %v2443_v53  }

// kernel: cnn3d_resnet_forward.6
= control target key start
LH: loop header
LB: loop body
LE: loop exit
PB: predicated region body
PF: predicated region fallthrough
CT: control target
= control target key end

     0   :  { %s1181_s15 = smov 0   ;;  %s1183_s16 = smov 0   ;;  %s1353_s0 = inlined_call_operand.vmem [shape: bf16[2,256,128], index: 0, kind: input, shape index: {}]   ;;  %s1354_s1 = inlined_call_operand.vmem [shape: bf16[2,256,128], index: 1, kind: input, shape index: {}]   ;;  %s1355_s2 = inlined_call_operand.vmem [shape: bf16[128,128], index: 2, kind: input, shape index: {}]   ;;  %s1356_s3 = inlined_call_operand.vmem [shape: f32[1,128], index: 3, kind: input, shape index: {}]   ;;  %s1357_s4 = inlined_call_operand.vmem [shape: f32[2,1,128], index: 4, kind: output, shape index: {}]  }
   0x1   :  { %s1185_s17 = smov 0  }
   0x2 LB: > { %s26_s18 = sadd.s32 1, %s1149_s16  ;;  %p881_p0 = scmp.ge.s32.totalorder %s1153_s17, 1  ;;  %s1153_s17 = sphi %s1185_s17, %s14_s17   ;;  %s1149_s16 = sphi %s1183_s16, %s1359_s16   ;;  %s1145_s15 = sphi %s1181_s15, %s1358_s15  }
   0x3   : > { %p28_p1 = scmp.ge.s32.totalorder %s26_s18, 2  ;;  %p198_p2 = scmp.lt.s32.totalorder %s1153_s17, 3 }
   0x5   : > { %s1361_s18 = smov (%p28_p1, %s26_s18), 0  ;;  %p199_p3 = pnand %p881_p0, %p198_p2 }
   0x6   : > { %p236_p4 = scmp.lt.s32.totalorder (!%p199_p3), %s1145_s15, 1 }
   0x7   : > { %202 = sbr.rel (%p199_p3) target bundleno = 337 (0x151), region = 36 }
   0xc   : > { %v1107_v0 = vld [vmem:[%s1355_s2 + $0x38] sm:$0xff]   ;;  %v1108_v1 = vld [vmem:[%s1355_s2 + $0x30] sm:$0xff]   ;;  %s1363_s15 = smov (!%p236_p4, %s1145_s15), 1  ;;  %v1109_v2 = vld [vmem:[%s1355_s2 + $0x28] sm:$0xff]   ;;  %v1155_v24 = vmov 0.0  }
   0xd   : > { %1018 = vmatprep.subr.bf16.mxu0 %v1107_v0  ;;  %1066 = vmatprep.subr.bf16.mxu1 %v1107_v0  ;;  %s913_s25 = sshll.u32 %s1363_s15, 7  ;;  %v1110_v3 = vld [vmem:[%s1355_s2 + $0x20] sm:$0xff]   ;;  %v1111_v5 = vld [vmem:[%s1355_s2 + $0x18] sm:$0xff]   ;;  %v1112_v6 = vld [vmem:[%s1355_s2 + $0x10] sm:$0xff]   ;;  %s1253_s19 = scalar_lea.vmem %s1357_s4, %s1363_s15 }
   0xe   : > { %1019 = vmatpush3.bf16.msra.mxu0 %v1107_v0  ;;  %1074 = vmatpush3.bf16.msra.mxu1 %v1107_v0  ;;  %s1216_s28 = scalar_lea.vmem %s1353_s0, %s913_s25  ;;  %v1113_v8 = vld [vmem:[%s1355_s2 + $0x8] sm:$0xff]   ;;  %v1114_v9 = vld [vmem:[%s1355_s2] sm:$0xff]   ;;  %263 = vst [vmem:[%s1253_s19] sm:$0x1] %v1155_v24  ;;  %s1261_s22 = scalar_lea.vmem %s1354_s1, %s913_s25 }
   0xf   : > { %1020 = vmatprep.subr.bf16.mxu0 %v1108_v1  ;;  %1067 = vmatprep.subr.bf16.mxu1 %v1108_v1  ;;  %v1115_v4 = vld [vmem:[%s1216_s28] sm:$0xff]   ;;  %v1116_v10 = vld [vmem:[%s1216_s28 + $0x8] sm:$0xff]   ;;  %v1117_v12 = vld [vmem:[%s1216_s28 + $0x10] sm:$0xff]  }
  0x10   : > { %1034 = vmatprep.mubr.bf16.mxu0 %v1115_v4  ;;  %v1123_v7 = vld [vmem:[%s1216_s28 + $0x40] sm:$0xff]   ;;  %v1124_v11 = vld [vmem:[%s1216_s28 + $0x48] sm:$0xff]   ;;  %v1125_v13 = vld [vmem:[%s1216_s28 + $0x50] sm:$0xff]  }
  0x11   : > { %1050 = vmatprep.mubr.bf16.mxu1 %v1123_v7  ;;  %v1118_v14 = vld [vmem:[%s1216_s28 + $0x18] sm:$0xff]   ;;  %v1119_v16 = vld [vmem:[%s1216_s28 + $0x20] sm:$0xff]   ;;  %v1120_v18 = vld [vmem:[%s1216_s28 + $0x28] sm:$0xff]  }
  0x12   : > { %1021 = vmatpush3.bf16.msra.mxu0 %v1108_v1  ;;  %1075 = vmatpush3.bf16.msra.mxu1 %v1108_v1  ;;  %v1126_v15 = vld [vmem:[%s1216_s28 + $0x58] sm:$0xff]   ;;  %v1127_v17 = vld [vmem:[%s1216_s28 + $0x60] sm:$0xff]   ;;  %v1128_v19 = vld [vmem:[%s1216_s28 + $0x68] sm:$0xff]  }
  0x13   : > { %1022 = vmatprep.subr.bf16.mxu0 %v1109_v2  ;;  %1068 = vmatprep.subr.bf16.mxu1 %v1109_v2  ;;  %v1121_v20 = vld [vmem:[%s1216_s28 + $0x30] sm:$0xff]   ;;  %v1122_v22 = vld [vmem:[%s1216_s28 + $0x38] sm:$0xff]   ;;  %v916_v26 = vld [vmem:[%s1261_s22] sm:$0xff]  }
  0x14   : > { %v1129_v21 = vld [vmem:[%s1216_s28 + $0x70] sm:$0xff]   ;;  %v1130_v23 = vld [vmem:[%s1216_s28 + $0x78] sm:$0xff]   ;;  %v1269_v28 = vld [vmem:[%s1356_s3] ss:$0 sm:$0xff]  ;;  %v917_v33 = vunpack.c.l.bf16 %v916_v26  ;;  %v918_v38 = vunpack.c.h.bf16 %v916_v26 }
  0x15   : > { %v979_v29 = vld [vmem:[%s1261_s22 + $0x8] sm:$0xff]   ;;  %v980_v40 = vld [vmem:[%s1261_s22 + $0x10] sm:$0xff]   ;;  %v981_v49 = vld [vmem:[%s1261_s22 + $0x18] sm:$0xff]  }
  0x16   : > { %1023 = vmatpush3.bf16.msra.mxu0 %v1109_v2  ;;  %1076 = vmatpush3.bf16.msra.mxu1 %v1109_v2  ;;  %v921_v37 = vunpack.c.l.bf16 %v979_v29  ;;  %v922_v43 = vunpack.c.h.bf16 %v979_v29  ;;  %v925_v50 = vunpack.c.l.bf16 %v980_v40  ;;  %v929_v56 = vunpack.c.l.bf16 %v981_v49  ;;  %v982_v0 = vld [vmem:[%s1261_s22 + $0x20] sm:$0xff]  }
  0x17   : > { %1024 = vmatprep.subr.bf16.mxu0 %v1110_v3  ;;  %1069 = vmatprep.subr.bf16.mxu1 %v1110_v3  ;;  %v926_v58 = vunpack.c.h.bf16 %v980_v40  ;;  %v930_v1 = vunpack.c.h.bf16 %v981_v49 }
  0x1a   : > { %1025 = vmatpush3.bf16.msra.mxu0 %v1110_v3  ;;  %1077 = vmatpush3.bf16.msra.mxu1 %v1110_v3 }
  0x1b   : > { %1026 = vmatprep.subr.bf16.mxu0 %v1111_v5  ;;  %1070 = vmatprep.subr.bf16.mxu1 %v1111_v5 }
  0x1e   : > { %1027 = vmatpush3.bf16.msra.mxu0 %v1111_v5  ;;  %1078 = vmatpush3.bf16.msra.mxu1 %v1111_v5 }
  0x1f   : > { %1028 = vmatprep.subr.bf16.mxu0 %v1112_v6  ;;  %1071 = vmatprep.subr.bf16.mxu1 %v1112_v6 }
  0x22   : > { %1029 = vmatpush3.bf16.msra.mxu0 %v1112_v6  ;;  %1079 = vmatpush3.bf16.msra.mxu1 %v1112_v6 }
  0x23   : > { %1030 = vmatprep.subr.bf16.mxu0 %v1113_v8  ;;  %1072 = vmatprep.subr.bf16.mxu1 %v1113_v8 }
  0x26   : > { %1031 = vmatpush3.bf16.msra.mxu0 %v1113_v8  ;;  %1080 = vmatpush3.bf16.msra.mxu1 %v1113_v8  ;;  %v933_v8 = vunpack.c.l.bf16 %v982_v0 }
  0x27   : > { %1032 = vmatprep.subr.bf16.mxu0 %v1114_v9  ;;  %1073 = vmatprep.subr.bf16.mxu1 %v1114_v9 }
  0x2a   : > { %1033 = vmatpush3.bf16.msra.mxu0 %v1114_v9  ;;  %1081 = vmatpush3.bf16.msra.mxu1 %v1114_v9 }
  0x2d   : > { %1035 = vmatmul.mubr.bf16.vlgmr.msra.gmra.mxu0 %v1116_v10  ;;  %1051 = vmatmul.mubr.bf16.vlgmr.msra.gmra.mxu1 %v1124_v11 }
  0x2e   : > { %1038 = vmatprep.mubr.bf16.mxu0 %v1117_v12  ;;  %1054 = vmatprep.mubr.bf16.mxu1 %v1125_v13 }
  0x35   : > { %1039 = vmatmul.mubr.bf16.gmra.mxu0 %v1118_v14  ;;  %1055 = vmatmul.mubr.bf16.gmra.mxu1 %v1126_v15  ;;  %v983_v14 = vld [vmem:[%s1261_s22 + $0x28] sm:$0xff]  }
  0x36   : > { %1042 = vmatprep.mubr.bf16.mxu0 %v1119_v16  ;;  %1058 = vmatprep.mubr.bf16.mxu1 %v1127_v17 }
  0x3d   : > { %1043 = vmatmul.mubr.bf16.gmra.mxu0 %v1120_v18  ;;  %1059 = vmatmul.mubr.bf16.gmra.mxu1 %v1128_v19 }
  0x3e   : > { %1046 = vmatprep.mubr.bf16.mxu0 %v1121_v20  ;;  %1062 = vmatprep.mubr.bf16.mxu1 %v1129_v21  ;;  %v937_v20 = vunpack.c.l.bf16 %v983_v14 }
  0x45   : > { %1047 = vmatmul.mubr.bf16.gmra.mxu0 %v1122_v22  ;;  %1063 = vmatmul.mubr.bf16.gmra.mxu1 %v1130_v23  ;;  %v934_v22 = vunpack.c.h.bf16 %v982_v0 }
  0xed   : > { %v1036_v25 = vpop.f32.mrf.mxu0  ;;  %v1264_v27 = vpop.f32.mrf.mxu1 }
  0xee   : > { %v506_v36 = vadd.f32 %v1036_v25, %v1269_v28 }
  0xef   : > { %v497_v30 = vpop.f32.mrf.mxu0  ;;  %v1272_v31 = vpop.f32.mrf.mxu1 }
  0xf0   : > { %v498_v32 = vadd.f32 %v1269_v28, %v497_v30  ;;  %v690_v47 = vadd.f32 %v921_v37, %v506_v36  ;;  %v984_v30 = vld [vmem:[%s1261_s22 + $0x30] sm:$0xff]  }
  0xf1   : > { %v1037_v34 = vpop.f32.mrf.mxu0  ;;  %v1275_v35 = vpop.f32.mrf.mxu1  ;;  %v941_v40 = vunpack.c.l.bf16 %v984_v30 }
  0xf2   : > { %v688_v41 = vadd.f32 %v917_v33, %v498_v32  ;;  %v509_v42 = vadd.f32 %v1037_v34, %v1269_v28  ;;  %v722_v60 = vmax.f32 %v690_v47, 0.0  ;;  %v938_v32 = vunpack.c.h.bf16 %v983_v14  ;;  %v985_v47 = vld [vmem:[%s1261_s22 + $0x38] sm:$0xff]  }
  0xf3   : > { %v500_v39 = vpop.f32.mrf.mxu0  ;;  %v1281_v46 = vpop.f32.mrf.mxu1 }
  0xf4   : > { %v501_v44 = vadd.f32 %v1269_v28, %v500_v39  ;;  %v720_v52 = vmax.f32 %v688_v41, 0.0  ;;  %v691_v53 = vadd.f32 %v922_v43, %v509_v42 }
  0xf5   : > { %v1040_v45 = vpop.f32.mrf.mxu0  ;;  %v1285_v59 = vpop.f32.mrf.mxu1 }
  0xf6   : > { %v689_v48 = vadd.f32 %v918_v38, %v501_v44  ;;  %v522_v62 = vadd.f32 %v1040_v45, %v1269_v28  ;;  %v723_v3 = vmax.f32 %v691_v53, 0.0  ;;  %v945_v53 = vunpack.c.l.bf16 %v985_v47 }
  0xf7   : > { %v513_v51 = vpop.f32.mrf.mxu0  ;;  %v1291_v9 = vpop.f32.mrf.mxu1 }
  0xf8   : > { %v721_v54 = vmax.f32 %v689_v48, 0.0  ;;  %v514_v55 = vadd.f32 %v1269_v28, %v513_v51  ;;  %v694_v10 = vadd.f32 %v929_v56, %v522_v62  ;;  %v986_v62 = vld [vmem:[%s1261_s22 + $0x40] sm:$0xff]  }
  0xf9   : > { %v1041_v57 = vpop.f32.mrf.mxu0  ;;  %v1295_v23 = vpop.f32.mrf.mxu1  ;;  %v950_v14 = vunpack.c.h.bf16 %v986_v62 }
  0xfa   : > { %v753_v61 = vadd.f32 %v721_v54, %v720_v52  ;;  %v692_v63 = vadd.f32 %v925_v50, %v514_v55  ;;  %v525_v5 = vadd.f32 %v1041_v57, %v1269_v28  ;;  %v726_v24 = vmax.f32 %v694_v10, 0.0 }
  0xfb   : > { %v516_v2 = vpop.f32.mrf.mxu0  ;;  %v580_v41 = vpop.f32.mrf.mxu1  ;;  %v942_v55 = vunpack.c.h.bf16 %v984_v30 }
  0xfc   : > { %v754_v4 = vadd.f32 %v753_v61, %v722_v60  ;;  %v517_v6 = vadd.f32 %v1269_v28, %v516_v2  ;;  %v724_v11 = vmax.f32 %v692_v63, 0.0  ;;  %v695_v17 = vadd.f32 %v930_v1, %v525_v5 }
  0xfd   : > { %v1044_v7 = vpop.f32.mrf.mxu0  ;;  %v1303_v56 = vpop.f32.mrf.mxu1  ;;  %v946_v63 = vunpack.c.h.bf16 %v985_v47  ;;  %v562_v5 = vadd.f32 %v1269_v28, %v1272_v31  ;;  %v570_v31 = vadd.f32 %v1264_v27, %v1269_v28  ;;  %v578_v27 = vadd.f32 %v1269_v28, %v1291_v9 }
  0xfe   : > { %v755_v12 = vadd.f32 %v754_v4, %v723_v3  ;;  %v693_v13 = vadd.f32 %v926_v58, %v517_v6  ;;  %v538_v26 = vadd.f32 %v1044_v7, %v1269_v28  ;;  %v727_v34 = vmax.f32 %v695_v17, 0.0 }
  0xff   : > { %v529_v15 = vpop.f32.mrf.mxu0  ;;  %v949_v6 = vunpack.c.l.bf16 %v986_v62  ;;  %v593_v7 = vpop.f32.mrf.mxu1  ;;  %v589_v9 = vadd.f32 %v1295_v23, %v1269_v28 }
 0x100   : > { %v756_v16 = vadd.f32 %v755_v12, %v724_v11  ;;  %v725_v18 = vmax.f32 %v693_v13, 0.0  ;;  %v530_v19 = vadd.f32 %v1269_v28, %v529_v15  ;;  %v698_v42 = vadd.f32 %v937_v20, %v538_v26  ;;  %v987_v12 = vld [vmem:[%s1261_s22 + $0x48] sm:$0xff]  }
 0x101   : > { %v1045_v21 = vpop.f32.mrf.mxu0  ;;  %v1061_v20 = vpop.f32.mrf.mxu1  ;;  %v954_v26 = vunpack.c.h.bf16 %v987_v12 }
 0x102   : > { %v757_v25 = vadd.f32 %v756_v16, %v725_v18  ;;  %v696_v29 = vadd.f32 %v933_v8, %v530_v19  ;;  %v541_v37 = vadd.f32 %v1045_v21, %v1269_v28  ;;  %v730_v57 = vmax.f32 %v698_v42, 0.0 }
 0x103   : > { %v532_v33 = vpop.f32.mrf.mxu0  ;;  %v565_v18 = vadd.f32 %v1269_v28, %v1281_v46  ;;  %v953_v19 = vunpack.c.l.bf16 %v987_v12  ;;  %v992_v12 = vld [vmem:[%s1261_s22 + $0x70] sm:$0xff]  }
 0x104   : > { %v758_v36 = vadd.f32 %v757_v25, %v726_v24  ;;  %v533_v38 = vadd.f32 %v1269_v28, %v532_v33  ;;  %v728_v43 = vmax.f32 %v696_v29, 0.0  ;;  %v699_v50 = vadd.f32 %v938_v32, %v541_v37  ;;  %v988_v25 = vld [vmem:[%s1261_s22 + $0x50] sm:$0xff]  }
 0x105   : > { %v1048_v39 = vpop.f32.mrf.mxu0  ;;  %v573_v32 = vadd.f32 %v1275_v35, %v1269_v28  ;;  %v705_v33 = vadd.f32 %v950_v14, %v565_v18  ;;  %v706_v46 = vadd.f32 %v953_v19, %v570_v31 }
 0x106   : > { %v759_v44 = vadd.f32 %v758_v36, %v727_v34  ;;  %v697_v45 = vadd.f32 %v934_v22, %v533_v38  ;;  %v554_v60 = vadd.f32 %v1048_v39, %v1269_v28  ;;  %v731_v1 = vmax.f32 %v699_v50, 0.0  ;;  %v596_v36 = vpop.f32.mrf.mxu1  ;;  %v989_v39 = vld [vmem:[%s1261_s22 + $0x58] sm:$0xff]  }
 0x107   : > { %v545_v48 = vpop.f32.mrf.mxu0  ;;  %v704_v22 = vadd.f32 %v949_v6, %v562_v5  ;;  %v957_v34 = vunpack.c.l.bf16 %v988_v25  ;;  %v707_v42 = vadd.f32 %v954_v26, %v573_v32  ;;  %v961_v47 = vunpack.c.l.bf16 %v989_v39 }
 0x108   : > { %v760_v49 = vadd.f32 %v759_v44, %v728_v43  ;;  %v729_v51 = vmax.f32 %v697_v45, 0.0  ;;  %v546_v52 = vadd.f32 %v1269_v28, %v545_v48  ;;  %v702_v8 = vadd.f32 %v945_v53, %v554_v60  ;;  %v1064_v48 = vpop.f32.mrf.mxu1 }
 0x109   : > { %v1049_v54 = vpop.f32.mrf.mxu0  ;;  %v736_v37 = vmax.f32 %v704_v22, 0.0  ;;  %v737_v43 = vmax.f32 %v705_v33, 0.0  ;;  %v581_v45 = vadd.f32 %v1269_v28, %v580_v41  ;;  %v738_v35 = vmax.f32 %v706_v46, 0.0  ;;  %v993_v22 = vld [vmem:[%s1261_s22 + $0x78] sm:$0xff]  }
 0x10a   : > { %v761_v58 = vadd.f32 %v760_v49, %v729_v51  ;;  %v700_v61 = vadd.f32 %v941_v40, %v546_v52  ;;  %v557_v3 = vadd.f32 %v1049_v54, %v1269_v28  ;;  %v734_v21 = vmax.f32 %v702_v8, 0.0  ;;  %v990_v52 = vld [vmem:[%s1261_s22 + $0x60] sm:$0xff]   ;;  %v609_v60 = vpop.f32.mrf.mxu1 }
 0x10b   : > { %v548_v0 = vpop.f32.mrf.mxu0  ;;  %v958_v40 = vunpack.c.h.bf16 %v988_v25  ;;  %v586_v50 = vadd.f32 %v1285_v59, %v1269_v28  ;;  %v708_v51 = vadd.f32 %v957_v34, %v578_v27  ;;  %v962_v53 = vunpack.c.h.bf16 %v989_v39 }
 0x10c   : > { %v762_v2 = vadd.f32 %v761_v58, %v730_v57  ;;  %v549_v4 = vadd.f32 %v1269_v28, %v548_v0  ;;  %v732_v10 = vmax.f32 %v700_v61, 0.0  ;;  %v703_v16 = vadd.f32 %v946_v63, %v557_v3  ;;  %v991_v63 = vld [vmem:[%s1261_s22 + $0x68] sm:$0xff]   ;;  %v1065_v6 = vpop.f32.mrf.mxu1 }
 0x10d   : > { %v739_v54 = vmax.f32 %v707_v42, 0.0  ;;  %v709_v57 = vadd.f32 %v958_v40, %v581_v45  ;;  %v965_v58 = vunpack.c.l.bf16 %v990_v52  ;;  %v710_v41 = vadd.f32 %v961_v47, %v586_v50 }
 0x10e   : > { %v763_v11 = vadd.f32 %v762_v2, %v731_v1  ;;  %v701_v13 = vadd.f32 %v942_v55, %v549_v4  ;;  %v735_v29 = vmax.f32 %v703_v16, 0.0  ;;  %v740_v61 = vmax.f32 %v708_v51, 0.0  ;;  %v612_v18 = vpop.f32.mrf.mxu1 }
 0x10f   : > { %v594_v0 = vadd.f32 %v1269_v28, %v593_v7  ;;  %v966_v1 = vunpack.c.h.bf16 %v990_v52  ;;  %v711_v2 = vadd.f32 %v962_v53, %v589_v9  ;;  %v741_v3 = vmax.f32 %v709_v57, 0.0  ;;  %v752_v9 = vld [vmem:[%s1253_s19] sm:$0x1] }
 0x110   : > { %v764_v15 = vadd.f32 %v763_v11, %v732_v10  ;;  %v733_v17 = vmax.f32 %v701_v13, 0.0  ;;  %v597_v4 = vadd.f32 %v1269_v28, %v596_v36  ;;  %v969_v5 = vunpack.c.l.bf16 %v991_v63 }
 0x111   : > { %v742_v23 = vmax.f32 %v710_v41, 0.0  ;;  %v602_v10 = vadd.f32 %v1303_v56, %v1269_v28  ;;  %v712_v11 = vadd.f32 %v965_v58, %v594_v0  ;;  %v970_v13 = vunpack.c.h.bf16 %v991_v63 }
 0x112   : > { %v765_v24 = vadd.f32 %v764_v15, %v733_v17  ;;  %v743_v14 = vmax.f32 %v711_v2, 0.0  ;;  %v605_v7 = vadd.f32 %v1061_v20, %v1269_v28  ;;  %v713_v16 = vadd.f32 %v966_v1, %v597_v4 }
 0x113   : > { %v973_v17 = vunpack.c.l.bf16 %v992_v12  ;;  %v714_v19 = vadd.f32 %v969_v5, %v602_v10  ;;  %v974_v25 = vunpack.c.h.bf16 %v992_v12  ;;  %v977_v32 = vunpack.c.l.bf16 %v993_v22 }
 0x114   : > { %v766_v30 = vadd.f32 %v765_v24, %v734_v21  ;;  %v744_v21 = vmax.f32 %v712_v11, 0.0  ;;  %v610_v24 = vadd.f32 %v1269_v28, %v609_v60  ;;  %v745_v56 = vmax.f32 %v713_v16, 0.0 }
 0x115   : > { %v746_v33 = vmax.f32 %v714_v19, 0.0  ;;  %v618_v20 = vadd.f32 %v1064_v48, %v1269_v28  ;;  %v978_v46 = vunpack.c.h.bf16 %v993_v22  ;;  %v621_v39 = vadd.f32 %v1065_v6, %v1269_v28 }
 0x116   : > { %v767_v38 = vadd.f32 %v766_v30, %v735_v29  ;;  %v715_v29 = vadd.f32 %v970_v13, %v605_v7  ;;  %v613_v30 = vadd.f32 %v1269_v28, %v612_v18  ;;  %v716_v36 = vadd.f32 %v973_v17, %v610_v24 }
 0x117   : > { %v718_v40 = vadd.f32 %v977_v32, %v618_v20  ;;  %v719_v45 = vadd.f32 %v978_v46, %v621_v39 }
 0x118   : > { %v768_v44 = vadd.f32 %v767_v38, %v736_v37  ;;  %v747_v37 = vmax.f32 %v715_v29, 0.0  ;;  %v717_v27 = vadd.f32 %v974_v25, %v613_v30  ;;  %v748_v42 = vmax.f32 %v716_v36, 0.0 }
 0x119   : > { %v751_v48 = vmax.f32 %v719_v45, 0.0 }
 0x11a   : > { %v769_v49 = vadd.f32 %v768_v44, %v737_v43  ;;  %v749_v47 = vmax.f32 %v717_v27, 0.0 }
 0x11c   : > { %v770_v55 = vadd.f32 %v769_v49, %v738_v35  ;;  %v750_v35 = vmax.f32 %v718_v40, 0.0 }
 0x11e   : > { %v771_v62 = vadd.f32 %v770_v55, %v739_v54 }
 0x120   : > { %v772_v59 = vadd.f32 %v771_v62, %v740_v61 }
 0x122   : > { %v773_v8 = vadd.f32 %v772_v59, %v741_v3 }
 0x124   : > { %v774_v15 = vadd.f32 %v773_v8, %v742_v23 }
 0x126   : > { %v775_v31 = vadd.f32 %v774_v15, %v743_v14 }
 0x128   : > { %v776_v26 = vadd.f32 %v775_v31, %v744_v21 }
 0x12a   : > { %v777_v34 = vadd.f32 %v776_v26, %v745_v56 }
 0x12c   : > { %v778_v38 = vadd.f32 %v777_v34, %v746_v33 }
 0x12e   : > { %v779_v43 = vadd.f32 %v778_v38, %v747_v37 }
 0x130   : > { %v780_v44 = vadd.f32 %v779_v43, %v748_v42 }
 0x132   : > { %v781_v49 = vadd.f32 %v780_v44, %v749_v47 }
 0x134   : > { %v782_v50 = vadd.f32 %v781_v49, %v750_v35 }
 0x136   : > { %v783_v51 = vadd.f32 %v782_v50, %v751_v48 }
 0x138   : > { %v784_v52 = vrot.slane %v783_v51, 4 }
 0x13a   : > { %v785_v53 = vadd.f32 %v784_v52, %v783_v51 }
 0x13c   : > { %v786_v54 = vrot.slane %v785_v53, 2 }
 0x13e   : > { %v787_v28 = vadd.f32 %v786_v54, %v785_v53 }
 0x140   : > { %v788_v55 = vrot.slane %v787_v28, 1 }
 0x142   : > { %v789_v57 = vadd.f32 %v788_v55, %v787_v28 }
 0x144   : > { %v790_v58 = vadd.f32 %v789_v57, %v752_v9 }
 0x146   : > { %791 = vst [vmem:[%s1253_s19] sm:$0x1] %v790_v58 }
 0x14d   : > { %v795_v60 = vld [vmem:[%s1253_s19] sm:$0x1] }
 0x14e   : > { %v796_v41 = vmul.f32 0.00390625, %v795_v60 }
 0x150   : > { %797 = vst [vmem:[%s1253_s19] sm:$0x1] %v796_v41 }
 0x151 PF: > { %s14_s17 = sadd.s32 1, %s1153_s17   ;;  %s1358_s15 = smov %s1149_s16 }
 0x152   : > { %p11_p5 = scmp.ge.s32.totalorder %s14_s17, 4   ;;  %s1359_s16 = smov %s1361_s18 }
 0x154   :  { %13 = sbr.rel (!%p11_p5) target bundleno = 2 (0x2), region = 77 }

// kernel: cnn3d_resnet_forward.5
= control target key start
LH: loop header
LB: loop body
LE: loop exit
PB: predicated region body
PF: predicated region fallthrough
CT: control target
= control target key end

     0   :  { %s2662_s12 = smov 0   ;;  %s2664_s13 = smov 0   ;;  %s3212_s0 = inlined_call_operand.vmem [shape: bf16[12,10,10,128], index: 0, kind: input, shape index: {}]   ;;  %s3213_s1 = inlined_call_operand.vmem [shape: bf16[3,1152,128], index: 1, kind: input, shape index: {}]   ;;  %s3214_s2 = inlined_call_operand.vmem [shape: f32[1,128], index: 2, kind: input, shape index: {}]   ;;  %s3215_s3 = inlined_call_operand.vmem [shape: bf16[8,8,8,128], index: 3, kind: output, shape index: {}]  }
   0x1   :  { %s2666_s14 = smov 0   ;;  %s2668_s15 = smov 0  }
   0x2   :  { %s2670_s16 = smov 0   ;;  %s2672_s17 = smov 0  }
   0x3   :  { %s2674_s18 = smov 0  }
   0x4 LB: > { %s25_s19 = sadd.s32 1, %s2627_s15  ;;  %s28_s20 = sadd.s32 1, %s2631_s16  ;;  %s2639_s18 = sphi %s2674_s18, %s13_s18   ;;  %s2635_s17 = sphi %s2672_s17, %s3243_s17   ;;  %s2631_s16 = sphi %s2670_s16, %s3242_s16   ;;  %s2627_s15 = sphi %s2668_s15, %s3241_s15   ;;  %s2623_s14 = sphi %s2666_s14, %s3240_s14   ;;  %s2619_s13 = sphi %s2664_s13, %s3239_s13   ;;  %s2615_s12 = sphi %s2662_s12, %s3238_s12  }
   0x5   : > { %p26_p0 = scmp.ge.s32.totalorder %s25_s19, 3  ;;  %p1961_p1 = scmp.ge.s32.totalorder %s2639_s18, 1 }
   0x6   : > { %p182_p2 = scmp.lt.s32.totalorder %s2639_s18, 25  ;;  %s32_s21 = sadd.s32 1, %s2635_s17 }
   0x7   : > { %s3245_s19 = smov (%p26_p0, %s25_s19), 0  ;;  %s3247_s20 = smov (!%p26_p0, %s28_s20), %s2631_s16 }
   0x8   : > { %p183_p3 = pnand %p1961_p1, %p182_p2  ;;  %p30_p4 = scmp.ge.s32.totalorder %s3247_s20, 4 }
   0xa   : > { %s3249_s20 = smov (%p30_p4, %s3247_s20), 0  ;;  %s3251_s21 = smov (!%p30_p4, %s32_s21), %s2635_s17 }
   0xb   : > { %p34_p5 = scmp.ge.s32.totalorder %s3251_s21, 2  ;;  %186 = sbr.rel (%p183_p3) target bundleno = 414 (0x19e), region = 32 }
   0xd   : > { %s3253_s21 = smov (%p34_p5, %s3251_s21), 0 }
  0x10   : > { %s216_s22 = smul.u32 6, %s2623_s14  ;;  %p227_p6 = scmp.lt.s32.totalorder %s2615_s12, 2 }
  0x11   : > { %s1964_s23 = sshll.u32 %s2623_s14, 2  ;;  %p1967_p9 = scmp.ne.s32.totalorder %s2615_s12, 0 }
  0x12   : > { %s217_s24 = sadd.s32 %s2619_s13, %s216_s22  ;;  %s233_s26 = sadd.s32 %s2619_s13, %s1964_s23 }
  0x13   : > { %s218_s25 = sadd.s32 %s2615_s12, %s217_s24  ;;  %p234_p8 = scmp.lt.s32.totalorder %s233_s26, 7 }
  0x14   : > { %p219_p7 = scmp.lt.s32.totalorder %s218_s25, 11 }
  0x15   : > { %s228_s27 = scalar_select %p227_p6, %s2615_s12, 2 }
  0x16   : > { %s3255_s25 = smov (!%p219_p7, %s218_s25), 11  ;;  %s3257_s26 = smov (!%p234_p8, %s233_s26), 7 }
  0x17   : > { %s2446_s28 = smul.u32 576, %s228_s27  ;;  %s2081_s9 = sshll.u32 %s3257_s26, 5 }
  0x18   : > { %s2445_s29 = smul.u32 80, %s3255_s25  ;;  %s2722_s13 = scalar_lea.vmem %s3215_s3, %s2081_s9 }
  0x19   : > { %s2712_s5 = scalar_lea.vmem %s3213_s1, %s2446_s28  ;;  %245 = sbr.rel (%p1967_p9) target bundleno = 35 (0x23), region = 36 }
  0x1a   : > { %s2717_s8 = scalar_lea.vmem %s3212_s0, %s2445_s29 }
  0x1e   : > { %v2641_v0 = vmov 0.0  }
  0x1f   : > { %246 = vst [vmem:[#allocation2 + $0x30] sm:$0xff] %v2641_v0  ;;  %247 = vst [vmem:[#allocation2] sm:$0xff] %v2641_v0 }
  0x20   : > { %248 = vst [vmem:[#allocation2 + $0x18] sm:$0xff] %v2641_v0  ;;  %249 = vst [vmem:[#allocation2 + $0x10] sm:$0xff] %v2641_v0 }
  0x21   : > { %250 = vst [vmem:[#allocation2 + $0x8] sm:$0xff] %v2641_v0  ;;  %251 = vst [vmem:[#allocation2 + $0x20] sm:$0xff] %v2641_v0 }
  0x22   : > { %252 = vst [vmem:[#allocation2 + $0x28] sm:$0xff] %v2641_v0  ;;  %253 = vst [vmem:[#allocation2 + $0x38] sm:$0xff] %v2641_v0 }
  0x23 PF: > { %v2504_v1 = vld [vmem:[%s2712_s5 + $0x38] sm:$0xff]   ;;  %v2506_v3 = vld [vmem:[%s2712_s5 + $0x30] sm:$0xff]   ;;  %v2508_v5 = vld [vmem:[%s2712_s5 + $0x28] sm:$0xff]   ;;  %vm443_vm0 = vsmask.f32 3328  ;;  %vm719_vm2 = vcmask 1042432  }
  0x24   : > { %v2505_v2 = vld [vmem:[%s2712_s5 + $0x78] sm:$0xff]   ;;  %2213 = vmatprep.subr.bf16.mxu0 %v2504_v1  ;;  %v2507_v4 = vld [vmem:[%s2712_s5 + $0x70] sm:$0xff]   ;;  %v2509_v6 = vld [vmem:[%s2712_s5 + $0x68] sm:$0xff]   ;;  %vm444_vm1 = vsmask.f32 7440  ;;  %vm720_vm3 = vcmask 1046532  }
  0x25   : > { %2237 = vmatprep.subr.bf16.mxu1 %v2505_v2  ;;  %2214 = vmatpush3.bf16.msra.mxu0 %v2504_v1  ;;  %v2510_v7 = vld [vmem:[%s2712_s5 + $0x20] sm:$0xff]   ;;  %v2512_v9 = vld [vmem:[%s2712_s5 + $0x18] sm:$0xff]   ;;  %v2514_v11 = vld [vmem:[%s2712_s5 + $0x10] sm:$0xff]   ;;  %p2077_p10 = scmp.ne.s32.totalorder %s2615_s12, 2 }
  0x26   : > { %2238 = vmatpush3.bf16.msra.mxu1 %v2505_v2  ;;  %2215 = vmatprep.subr.bf16.mxu0 %v2506_v3  ;;  %v2511_v8 = vld [vmem:[%s2712_s5 + $0x60] sm:$0xff]   ;;  %v2513_v10 = vld [vmem:[%s2712_s5 + $0x58] sm:$0xff]   ;;  %v2740_v13 = vld [vmem:[%s2717_s8 + $0x8] sm:$0xf] }
  0x27   : > { %2239 = vmatprep.subr.bf16.mxu1 %v2507_v4  ;;  %v2737_v12 = vld [vmem:[%s2717_s8] sm:$0xf]  ;;  %v2743_v14 = vld [vmem:[%s2717_s8 + $0x4] sm:$0x1]  ;;  %v2515_v15 = vld [vmem:[%s2712_s5 + $0x50] sm:$0xff]   ;;  %v461_v26 = vshrl.u32 %v2740_v13, 16 }
  0x28   : > { %v1968_v16 = vcombine.low %v2737_v12, %v2740_v13  ;;  %v447_v17 = vshrl.u32 %v2737_v12, 16  ;;  %v450_v18 = vshll.u32 %v2737_v12, 16  ;;  %v2751_v19 = vld [vmem:[%s2717_s8 + $0xc] sm:$0x1]  ;;  %v2754_v20 = vld [vmem:[%s2717_s8 + $0x10] sm:$0xf]  ;;  %vm2774_vm4 = vmor %vm443_vm0, %vm444_vm1 }
  0x29   : > { %2216 = vmatpush3.bf16.msra.mxu0 %v2506_v3  ;;  %v2757_v21 = vld [vmem:[%s2717_s8 + $0x14] sm:$0x1]  ;;  %v456_v24 = vshll.u32 %v2743_v14, 16  ;;  %v2516_v25 = vld [vmem:[%s2712_s5 + $0x8] sm:$0xff]   ;;  %v464_v27 = vshll.u32 %v2740_v13, 16  ;;  %v470_v28 = vshll.u32 %v2751_v19, 16  ;;  %vm2804_vm5 = vmor %vm719_vm2, %vm720_vm3 }
  0x2a   : > { %2240 = vmatpush3.bf16.msra.mxu1 %v2507_v4  ;;  %2217 = vmatprep.subr.bf16.mxu0 %v2508_v5  ;;  %v449_v22 = vrot.slane %v447_v17, 4  ;;  %v452_v23 = vrot.slane %v450_v18, 5  ;;  %v475_v29 = vshrl.u32 %v2754_v20, 16  ;;  %v2517_v30 = vld [vmem:[%s2712_s5 + $0x48] sm:$0xff]   ;;  %v478_v33 = vshll.u32 %v2754_v20, 16  ;;  %v2518_v35 = vld [vmem:[%s2712_s5] sm:$0xff]  }
  0x2b   : > { %2241 = vmatprep.subr.bf16.mxu1 %v2509_v6  ;;  %2229 = vmatprep.mubr.bf16.mxu0 %v1968_v16  ;;  %v458_v32 = vrot.slane %v456_v24, 5  ;;  %v2768_v34 = vld [vmem:[%s2717_s8 + $0x18] sm:$0xf]  ;;  %v463_v36 = vrot.slane %v461_v26, 4  ;;  %v466_v37 = vrot.slane %v464_v27, 5  ;;  %v484_v39 = vshll.u32 %v2757_v21, 16 }
  0x2c   : > { %v453_v31 = vor.u32 %v452_v23, %v449_v22  ;;  %v477_v38 = vrot.slane %v475_v29, 4  ;;  %v480_v42 = vrot.slane %v478_v33, 5  ;;  %v2779_v43 = vld [vmem:[%s2717_s8 + $0x1c] sm:$0x1]  ;;  %v2519_v44 = vld [vmem:[%s2712_s5 + $0x40] sm:$0xff]   ;;  %v472_v46 = vrot.slane %v470_v28, 5 }
  0x2d   : > { %2218 = vmatpush3.bf16.msra.mxu0 %v2508_v5  ;;  %v467_v45 = vor.u32 %v466_v37, %v463_v36  ;;  %v1992_v47 = vrot.slane %v2737_v12, 9  ;;  %v489_v49 = vshrl.u32 %v2768_v34, 16  ;;  %v492_v52 = vshll.u32 %v2768_v34, 16  ;;  %v2522_v54 = vld [vmem:[%s2712_s5 + $0xb8] sm:$0xff]   ;;  %v2838_v16 = vld [vmem:[%s2717_s8 + $0x30] sm:$0xf] }
  0x2e   : > { %2242 = vmatpush3.bf16.msra.mxu1 %v2509_v6  ;;  %2219 = vmatprep.subr.bf16.mxu0 %v2510_v7  ;;  %v454_v41 = vrot.slane %v453_v31, 4  ;;  %v481_v48 = vor.u32 %v480_v42, %v477_v38  ;;  %v498_v53 = vshll.u32 %v2779_v43, 16  ;;  %v486_v55 = vrot.slane %v484_v39, 5  ;;  %v2523_v58 = vld [vmem:[%s2712_s5 + $0xf8] sm:$0xff]   ;;  %v2850_v22 = vld [vmem:[%s2717_s8 + $0x24] sm:$0x1] }
  0x2f   : > { %2243 = vmatprep.subr.bf16.mxu1 %v2511_v8  ;;  %v468_v51 = vrot.slane %v467_v45, 4  ;;  %v724_v56 = vrot.slane %v2743_v14, 5  ;;  %v491_v57 = vrot.slane %v489_v49, 4  ;;  %v494_v61 = vrot.slane %v492_v52, 5  ;;  %v2853_v23 = vld [vmem:[%s2717_s8 + $0x2c] sm:$0x1] }
  0x30   : > { %v459_v50 = vsel %vm2774_vm4, %v454_v41, %v458_v32  ;;  %v482_v60 = vrot.slane %v481_v48, 4  ;;  %v728_v63 = vrot.slane %v2751_v19, 5  ;;  %v1993_v0 = vrot.slane %v2740_v13, 9  ;;  %v2847_v19 = vld [vmem:[%s2717_s8 + $0x38] sm:$0xf]  ;;  %v2526_v24 = vld [vmem:[%s2712_s5 + $0xa8] sm:$0xff]  }
  0x31   : > { %2220 = vmatpush3.bf16.msra.mxu0 %v2510_v7  ;;  %v2793_v59 = vsel %vm2774_vm4, %v468_v51, %v472_v46  ;;  %v2800_v1 = vcombine.low %v2754_v20, %v2768_v34  ;;  %v495_v2 = vor.u32 %v494_v61, %v491_v57  ;;  %v500_v3 = vrot.slane %v498_v53, 5  ;;  %v2524_v7 = vld [vmem:[%s2712_s5 + $0xb0] sm:$0xff]   ;;  %v2868_v33 = vld [vmem:[%s2717_s8 + $0x3c] sm:$0x1]  ;;  %v2527_v36 = vld [vmem:[%s2712_s5 + $0xe8] sm:$0xff]  }
  0x32   : > { %2244 = vmatpush3.bf16.msra.mxu1 %v2511_v8  ;;  %2221 = vmatprep.subr.bf16.mxu0 %v2512_v9  ;;  %v1980_v62 = vcombine.low %v459_v50, %v2793_v59  ;;  %v2810_v5 = vsel %vm2774_vm4, %v482_v60, %v486_v55  ;;  %v2814_v8 = vld [vmem:[%s2717_s8 + $0x20] sm:$0xf]  ;;  %v2829_v12 = vsel %vm2804_vm5, %v1993_v0, %v728_v63  ;;  %v512_v27 = vshll.u32 %v2850_v22, 16  ;;  %v2859_v28 = vld [vmem:[%s2717_s8 + $0x34] sm:$0x1]  ;;  %v2531_v60 = vld [vmem:[%s2712_s5 + $0x98] sm:$0xff]  }
  0x33   : > { %2245 = vmatprep.subr.bf16.mxu1 %v2513_v10  ;;  %v496_v6 = vrot.slane %v495_v2, 4  ;;  %v503_v17 = vshrl.u32 %v2814_v8, 16  ;;  %v506_v26 = vshll.u32 %v2814_v8, 16  ;;  %v526_v32 = vshll.u32 %v2853_v23, 16  ;;  %v2529_v55 = vld [vmem:[%s2712_s5 + $0xe0] sm:$0xff]   ;;  %v2582_v40 = vld [vmem:[%s2712_s5 + $0x210] sm:$0xff]  }
  0x34   : > { %2253 = vmatprep.mubr.bf16.mxu1 %v1980_v62  ;;  %v2874_v37 = vcombine.low %v2838_v16, %v2847_v19  ;;  %v514_v39 = vrot.slane %v512_v27, 5  ;;  %v534_v41 = vshll.u32 %v2838_v16, 16  ;;  %v540_v46 = vshll.u32 %v2859_v28, 16 }
  0x35   : > { %2222 = vmatpush3.bf16.msra.mxu0 %v2512_v9  ;;  %v2817_v9 = vld [vmem:[%s2717_s8 + $0x28] sm:$0xf]  ;;  %v2834_v14 = vsel %vm2774_vm4, %v496_v6, %v500_v3  ;;  %v508_v38 = vrot.slane %v506_v26, 5  ;;  %v528_v49 = vrot.slane %v526_v32, 5  ;;  %v545_v51 = vshrl.u32 %v2847_v19, 16 }
  0x36   : > { %2246 = vmatpush3.bf16.msra.mxu1 %v2513_v10  ;;  %2223 = vmatprep.subr.bf16.mxu0 %v2514_v11  ;;  %v2821_v10 = vcombine.low %v2814_v8, %v2817_v9  ;;  %v2843_v18 = vcombine.low %v2810_v5, %v2834_v14  ;;  %v520_v31 = vshll.u32 %v2817_v9, 16  ;;  %v536_v50 = vrot.slane %v534_v41, 5 }
  0x37   : > { %2247 = vmatprep.subr.bf16.mxu1 %v2515_v15  ;;  %v548_v53 = vshll.u32 %v2847_v19, 16  ;;  %v542_v62 = vrot.slane %v540_v46, 5  ;;  %v2012_v27 = vcombine.low %v2740_v13, %v2754_v20  ;;  %v732_v32 = vrot.slane %v2757_v21, 5  ;;  %v2542_v46 = vld [vmem:[%s2712_s5 + $0x138] sm:$0xff]  }
  0x38   : > { %v736_v13 = vrot.slane %v2779_v43, 5  ;;  %v1996_v41 = vrot.slane %v2814_v8, 9  ;;  %v740_v21 = vrot.slane %v2850_v22, 5  ;;  %v2539_v43 = vld [vmem:[%s2712_s5 + $0xc0] sm:$0xff]  }
  0x39   : > { %2224 = vmatpush3.bf16.msra.mxu0 %v2514_v11  ;;  %v2825_v11 = vsel %vm2804_vm5, %v1992_v47, %v724_v56  ;;  %v2528_v47 = vld [vmem:[%s2712_s5 + $0xa0] sm:$0xff]   ;;  %v550_v63 = vrot.slane %v548_v53, 5  ;;  %v2544_v53 = vld [vmem:[%s2712_s5 + $0x130] sm:$0xff]  }
  0x3a   : > { %2248 = vmatpush3.bf16.msra.mxu1 %v2515_v15  ;;  %2225 = vmatprep.subr.bf16.mxu0 %v2516_v25  ;;  %v2525_v15 = vld [vmem:[%s2712_s5 + $0xf0] sm:$0xff]   ;;  %v2000_v29 = vcombine.low %v2825_v11, %v2829_v12  ;;  %v2938_v22 = vsel %vm2804_vm5, %v1996_v41, %v740_v21 }
  0x3b   : > { %2249 = vmatprep.subr.bf16.mxu1 %v2517_v30  ;;  %v2562_v21 = vld [vmem:[%s2712_s5 + $0x1b0] sm:$0xff]  }
  0x3d   : > { %2226 = vmatpush3.bf16.msra.mxu0 %v2516_v25  ;;  %v505_v25 = vrot.slane %v503_v17, 4 }
  0x3e   : > { %2250 = vmatpush3.bf16.msra.mxu1 %v2517_v30  ;;  %2227 = vmatprep.subr.bf16.mxu0 %v2518_v35  ;;  %v517_v30 = vshrl.u32 %v2817_v9, 16 }
  0x3f   : > { %2251 = vmatprep.subr.bf16.mxu1 %v2519_v44  ;;  %v509_v48 = vor.u32 %v508_v38, %v505_v25  ;;  %v2534_v25 = vld [vmem:[%s2712_s5 + $0x90] sm:$0xff]   ;;  %v2538_v38 = vld [vmem:[%s2712_s5 + $0x80] sm:$0xff]  }
  0x40   : > { %v519_v42 = vrot.slane %v517_v30, 4  ;;  %v2535_v30 = vld [vmem:[%s2712_s5 + $0xd0] sm:$0xff]  }
  0x41   : > { %2228 = vmatpush3.bf16.msra.mxu0 %v2518_v35  ;;  %v531_v35 = vshrl.u32 %v2838_v16, 16  ;;  %v510_v56 = vrot.slane %v509_v48, 4 }
  0x42   : > { %2252 = vmatpush3.bf16.msra.mxu1 %v2519_v44  ;;  %2261 = vmatprep.subr.bf16.mxu0 %v2522_v54  ;;  %v522_v44 = vrot.slane %v520_v31, 5  ;;  %v2536_v31 = vld [vmem:[%s2712_s5 + $0x88] sm:$0xff]  }
  0x43   : > { %2285 = vmatprep.subr.bf16.mxu1 %v2523_v58  ;;  %v533_v45 = vrot.slane %v531_v35, 4  ;;  %v2887_v0 = vsel %vm2774_vm4, %v510_v56, %v514_v39  ;;  %v1995_v35 = vrot.slane %v2768_v34, 9  ;;  %v1994_v39 = vrot.slane %v2754_v20, 9 }
  0x44   : > { %2230 = vmatmul.mubr.bf16.vlgmr.msra.gmra.mxu0 %v2800_v1  ;;  %v523_v52 = vor.u32 %v522_v44, %v519_v42  ;;  %v1997_v42 = vrot.slane %v2817_v9, 9  ;;  %v744_v44 = vrot.slane %v2853_v23, 5 }
  0x45   : > { %2262 = vmatpush3.bf16.msra.mxu0 %v2522_v54  ;;  %2233 = vmatprep.mubr.bf16.mxu0 %v2821_v10  ;;  %v554_v54 = vshll.u32 %v2868_v33, 16  ;;  %v537_v57 = vor.u32 %v536_v50, %v533_v45  ;;  %v733_v45 = vsel %vm2804_vm5, %v1994_v39, %v732_v32  ;;  %v2932_v20 = vsel %vm2804_vm5, %v1995_v35, %v736_v13  ;;  %v2560_v13 = vld [vmem:[%s2712_s5 + $0x1b8] sm:$0xff]  }
  0x46   : > { %2263 = vmatprep.subr.bf16.mxu0 %v2524_v7  ;;  %2254 = vmatmul.mubr.bf16.vlgmr.msra.gmra.mxu1 %v2843_v18  ;;  %v524_v61 = vrot.slane %v523_v52, 4  ;;  %v2942_v23 = vsel %vm2804_vm5, %v1997_v42, %v744_v44  ;;  %v2945_v48 = vcombine.low %v733_v45, %v2932_v20  ;;  %v748_v50 = vrot.slane %v2859_v28, 5 }
  0x47   : > { %2286 = vmatpush3.bf16.msra.mxu1 %v2523_v58  ;;  %v547_v58 = vrot.slane %v545_v51, 4  ;;  %v538_v2 = vrot.slane %v537_v57, 4  ;;  %v556_v3 = vrot.slane %v554_v54, 5  ;;  %v1999_v51 = vrot.slane %v2847_v19, 9 }
  0x48   : > { %2287 = vmatprep.subr.bf16.mxu1 %v2525_v15  ;;  %v2891_v6 = vsel %vm2774_vm4, %v524_v61, %v528_v49  ;;  %v1998_v49 = vrot.slane %v2838_v16, 9  ;;  %v752_v52 = vrot.slane %v2868_v33, 5  ;;  %v2954_v54 = vcombine.low %v2938_v22, %v2942_v23  ;;  %v2545_v33 = vld [vmem:[%s2712_s5 + $0x170] sm:$0xff]  }
  0x49   : > { %2264 = vmatpush3.bf16.msra.mxu0 %v2524_v7  ;;  %v551_v7 = vor.u32 %v550_v63, %v547_v58  ;;  %v2895_v11 = vcombine.low %v2887_v0, %v2891_v6  ;;  %v2900_v17 = vsel %vm2774_vm4, %v538_v2, %v542_v62  ;;  %v2014_v28 = vcombine.low %v2817_v9, %v2838_v16  ;;  %v2547_v9 = vld [vmem:[%s2712_s5 + $0x168] sm:$0xff]   ;;  %v2978_v16 = vld [vmem:[%s2717_s8 + $0x40] sm:$0xf]  ;;  %v2552_v2 = vld [vmem:[%s2712_s5 + $0x118] sm:$0xff]  }
  0x4a   : > { %2265 = vmatprep.subr.bf16.mxu0 %v2526_v24  ;;  %v2964_v56 = vsel %vm2804_vm5, %v1998_v49, %v748_v50  ;;  %v2968_v57 = vsel %vm2804_vm5, %v1999_v51, %v752_v52  ;;  %v2024_v58 = vcombine.low %v2793_v59, %v2810_v5  ;;  %v2015_v61 = vcombine.low %v2847_v19, %v2978_v16  ;;  %v2551_v63 = vld [vmem:[%s2712_s5 + $0x160] sm:$0xff]   ;;  %v2553_v59 = vld [vmem:[%s2712_s5 + $0x158] sm:$0xff]   ;;  %v2554_v5 = vld [vmem:[%s2712_s5 + $0x110] sm:$0xff]  }
  0x4b   : > { %2288 = vmatpush3.bf16.msra.mxu1 %v2525_v15  ;;  %v2532_v15 = vld [vmem:[%s2712_s5 + $0xd8] sm:$0xff]   ;;  %2257 = vmatprep.mubr.bf16.mxu1 %v2895_v11  ;;  %v2037_v62 = vcombine.low %v2829_v12, %v733_v45  ;;  %v1055_v12 = vshrl.u32 %v2978_v16, 16  ;;  %v2555_v19 = vld [vmem:[%s2712_s5 + $0x150] sm:$0xff]   ;;  %v2026_v42 = vcombine.low %v2891_v6, %v2900_v17  ;;  %v2038_v44 = vcombine.low %v2932_v20, %v2938_v22  ;;  %v2564_v6 = vld [vmem:[%s2712_s5 + $0x1a8] sm:$0xff]  }
  0x4c   : > { %2234 = vmatmul.mubr.bf16.gmra.mxu0 %v2874_v37  ;;  %2289 = vmatprep.subr.bf16.mxu1 %v2527_v36  ;;  %v2563_v45 = vld [vmem:[%s2712_s5 + $0x1f0] sm:$0xff]   ;;  %v2566_v22 = vld [vmem:[%s2712_s5 + $0x1a0] sm:$0xff]   ;;  %v2568_v49 = vld [vmem:[%s2712_s5 + $0x198] sm:$0xff]  }
  0x4d   : > { %2266 = vmatpush3.bf16.msra.mxu0 %v2526_v24  ;;  %2277 = vmatprep.mubr.bf16.mxu0 %v2000_v29  ;;  %v552_v24 = vrot.slane %v551_v7, 4  ;;  %v2556_v7 = vld [vmem:[%s2712_s5 + $0x108] sm:$0xff]   ;;  %v2569_v50 = vld [vmem:[%s2712_s5 + $0x1d8] sm:$0xff]   ;;  %v2570_v51 = vld [vmem:[%s2712_s5 + $0x190] sm:$0xff]  }
  0x4e   : > { %2267 = vmatprep.subr.bf16.mxu0 %v2528_v47  ;;  %v3034_v52 = vld [vmem:[%s2717_s8 + $0x48] sm:$0xf] }
  0x4f   : > { %2290 = vmatpush3.bf16.msra.mxu1 %v2527_v36  ;;  %v2906_v26 = vsel %vm2774_vm4, %v552_v24, %v556_v3  ;;  %v2537_v36 = vld [vmem:[%s2712_s5 + $0xc8] sm:$0xff]   ;;  %v1058_v3 = vshll.u32 %v2978_v16, 16 }
  0x50   : > { %2291 = vmatprep.subr.bf16.mxu1 %v2529_v55  ;;  %v2912_v29 = vcombine.low %v2900_v17, %v2906_v26  ;;  %v2557_v24 = vld [vmem:[%s2712_s5 + $0x148] sm:$0xff]  }
  0x51   : > { %2268 = vmatpush3.bf16.msra.mxu0 %v2528_v47  ;;  %v2543_v47 = vld [vmem:[%s2712_s5 + $0x178] sm:$0xff]  }
  0x52   : > { %2269 = vmatprep.subr.bf16.mxu0 %v2531_v60  ;;  %2258 = vmatmul.mubr.bf16.gmra.mxu1 %v2912_v29 }
  0x53   : > { %2292 = vmatpush3.bf16.msra.mxu1 %v2529_v55  ;;  %2301 = vmatprep.mubr.bf16.mxu1 %v2012_v27  ;;  %v2013_v55 = vcombine.low %v2768_v34, %v2814_v8  ;;  %v2546_v34 = vld [vmem:[%s2712_s5 + $0x128] sm:$0xff]   ;;  %v2974_v8 = vcombine.low %v2964_v56, %v2968_v57  ;;  %v2558_v27 = vld [vmem:[%s2712_s5 + $0x100] sm:$0xff]  }
  0x54   : > { %2293 = vmatprep.subr.bf16.mxu1 %v2532_v15 }
  0x55   : > { %2270 = vmatpush3.bf16.msra.mxu0 %v2531_v60  ;;  %v2550_v60 = vld [vmem:[%s2712_s5 + $0x120] sm:$0xff]  }
  0x56   : > { %2271 = vmatprep.subr.bf16.mxu0 %v2534_v25 }
  0x57   : > { %2294 = vmatpush3.bf16.msra.mxu1 %v2532_v15  ;;  %v1057_v15 = vrot.slane %v1055_v12, 4  ;;  %v2580_v12 = vld [vmem:[%s2712_s5 + $0x220] sm:$0xff]  }
  0x58   : > { %2295 = vmatprep.subr.bf16.mxu1 %v2535_v30 }
  0x59   : > { %2272 = vmatpush3.bf16.msra.mxu0 %v2534_v25  ;;  %v1060_v25 = vrot.slane %v1058_v3, 5 }
  0x5a   : > { %2273 = vmatprep.subr.bf16.mxu0 %v2536_v31 }
  0x5b   : > { %2296 = vmatpush3.bf16.msra.mxu1 %v2535_v30  ;;  %v271_v30 = vld [vmem:[%s2717_s8 + $0x44] sm:$0x1]  ;;  %v1061_v32 = vor.u32 %v1060_v25, %v1057_v15 }
  0x5c   : > { %2297 = vmatprep.subr.bf16.mxu1 %v2537_v36  ;;  %v1064_v35 = vshll.u32 %v271_v30, 16 }
  0x5d   : > { %2274 = vmatpush3.bf16.msra.mxu0 %v2536_v31  ;;  %v2559_v31 = vld [vmem:[%s2712_s5 + $0x140] sm:$0xff]   ;;  %v1062_v39 = vrot.slane %v1061_v32, 4 }
  0x5e   : > { %2275 = vmatprep.subr.bf16.mxu0 %v2538_v38  ;;  %v1066_v41 = vrot.slane %v1064_v35, 5 }
  0x5f   : > { %2298 = vmatpush3.bf16.msra.mxu1 %v2537_v36  ;;  %v2025_v36 = vcombine.low %v2834_v14, %v2887_v0  ;;  %v2039_v14 = vcombine.low %v2942_v23, %v2964_v56  ;;  %v2036_v0 = vrot.slane %v2978_v16, 9 }
  0x60   : > { %2299 = vmatprep.subr.bf16.mxu1 %v2539_v43 }
  0x61   : > { %2276 = vmatpush3.bf16.msra.mxu0 %v2538_v38  ;;  %v2561_v38 = vld [vmem:[%s2712_s5 + $0x1f8] sm:$0xff]  }
  0x62   : > { %2309 = vmatprep.subr.bf16.mxu0 %v2542_v46 }
  0x63   : > { %2300 = vmatpush3.bf16.msra.mxu1 %v2539_v43  ;;  %v1217_v43 = vrot.slane %v271_v30, 5 }
  0x64   : > { %2278 = vmatmul.mubr.bf16.vlgmr.msra.gmra.mxu0 %v2945_v48  ;;  %2333 = vmatprep.subr.bf16.mxu1 %v2543_v47 }
  0x65   : > { %2310 = vmatpush3.bf16.msra.mxu0 %v2542_v46  ;;  %2281 = vmatprep.mubr.bf16.mxu0 %v2954_v54  ;;  %v3014_v46 = vsel %vm2774_vm4, %v1062_v39, %v1066_v41  ;;  %v3021_v20 = vsel %vm2804_vm5, %v2036_v0, %v1217_v43 }
  0x66   : > { %2311 = vmatprep.subr.bf16.mxu0 %v2544_v53  ;;  %2302 = vmatmul.mubr.bf16.vlgmr.msra.gmra.mxu1 %v2013_v55  ;;  %v2027_v17 = vcombine.low %v2906_v26, %v3014_v46  ;;  %v2040_v23 = vcombine.low %v2968_v57, %v3021_v20  ;;  %v2567_v26 = vld [vmem:[%s2712_s5 + $0x1e0] sm:$0xff]   ;;  %v1510_v55 = vshll.u32 %v3034_v52, 16 }
  0x67   : > { %2334 = vmatpush3.bf16.msra.mxu1 %v2543_v47  ;;  %2305 = vmatprep.mubr.bf16.mxu1 %v2014_v28  ;;  %v2565_v47 = vld [vmem:[%s2712_s5 + $0x1e8] sm:$0xff]  }
  0x68   : > { %2335 = vmatprep.subr.bf16.mxu1 %v2545_v33  ;;  %v2573_v28 = vld [vmem:[%s2712_s5 + $0x1c8] sm:$0xff]   ;;  %v1512_v57 = vrot.slane %v1510_v55, 5 }
  0x69   : > { %2312 = vmatpush3.bf16.msra.mxu0 %v2544_v53  ;;  %v2571_v53 = vld [vmem:[%s2712_s5 + $0x1d0] sm:$0xff]  }
  0x6a   : > { %2313 = vmatprep.subr.bf16.mxu0 %v2546_v34 }
  0x6b   : > { %2336 = vmatpush3.bf16.msra.mxu1 %v2545_v33  ;;  %v2574_v33 = vld [vmem:[%s2712_s5 + $0x180] sm:$0xff]  }
  0x6c   : > { %2282 = vmatmul.mubr.bf16.gmra.mxu0 %v2974_v8  ;;  %2337 = vmatprep.subr.bf16.mxu1 %v2547_v9 }
  0x6d   : > { %2314 = vmatpush3.bf16.msra.mxu0 %v2546_v34  ;;  %2325 = vmatprep.mubr.bf16.mxu0 %v2024_v58  ;;  %v3043_v34 = vld [vmem:[%s2717_s8 + $0x4c] sm:$0x1]  ;;  %v2576_v58 = vld [vmem:[%s2712_s5 + $0x238] sm:$0xff]  }
  0x6e   : > { %2315 = vmatprep.subr.bf16.mxu0 %v2550_v60  ;;  %2306 = vmatmul.mubr.bf16.gmra.mxu1 %v2015_v61  ;;  %v1516_v61 = vshll.u32 %v3043_v34, 16 }
  0x6f   : > { %2338 = vmatpush3.bf16.msra.mxu1 %v2547_v9  ;;  %2349 = vmatprep.mubr.bf16.mxu1 %v2037_v62  ;;  %v2575_v9 = vld [vmem:[%s2712_s5 + $0x1c0] sm:$0xff]   ;;  %v2577_v62 = vld [vmem:[%s2712_s5 + $0x230] sm:$0xff]  }
  0x70   : > { %2339 = vmatprep.subr.bf16.mxu1 %v2551_v63 }
  0x71   : > { %2316 = vmatpush3.bf16.msra.mxu0 %v2550_v60 }
  0x72   : > { %2317 = vmatprep.subr.bf16.mxu0 %v2552_v2 }
  0x73   : > { %2340 = vmatpush3.bf16.msra.mxu1 %v2551_v63 }
  0x74   : > { %2341 = vmatprep.subr.bf16.mxu1 %v2553_v59 }
  0x75   : > { %2318 = vmatpush3.bf16.msra.mxu0 %v2552_v2  ;;  %v1518_v2 = vrot.slane %v1516_v61, 5 }
  0x76   : > { %2319 = vmatprep.subr.bf16.mxu0 %v2554_v5 }
  0x77   : > { %2342 = vmatpush3.bf16.msra.mxu1 %v2553_v59  ;;  %v2579_v59 = vld [vmem:[%s2712_s5 + $0x228] sm:$0xff]  }
  0x78   : > { %2343 = vmatprep.subr.bf16.mxu1 %v2555_v19 }
  0x79   : > { %2320 = vmatpush3.bf16.msra.mxu0 %v2554_v5  ;;  %v2049_v5 = vcombine.low %v2978_v16, %v3034_v52  ;;  %v2584_v16 = vld [vmem:[%s2712_s5 + $0x200] sm:$0xff]  }
  0x7a   : > { %2321 = vmatprep.subr.bf16.mxu0 %v2556_v7 }
  0x7b   : > { %2344 = vmatpush3.bf16.msra.mxu1 %v2555_v19  ;;  %v1663_v19 = vrot.slane %v3043_v34, 5 }
  0x7c   : > { %2345 = vmatprep.subr.bf16.mxu1 %v2557_v24 }
  0x7d   : > { %2322 = vmatpush3.bf16.msra.mxu0 %v2556_v7 }
  0x7e   : > { %2323 = vmatprep.subr.bf16.mxu0 %v2558_v27 }
  0x7f   : > { %2346 = vmatpush3.bf16.msra.mxu1 %v2557_v24 }
  0x80   : > { %2347 = vmatprep.subr.bf16.mxu1 %v2559_v31 }
  0x81   : > { %2324 = vmatpush3.bf16.msra.mxu0 %v2558_v27 }
  0x82   : > { %2357 = vmatprep.subr.bf16.mxu0 %v2560_v13 }
  0x83   : > { %2348 = vmatpush3.bf16.msra.mxu1 %v2559_v31 }
  0x84   : > { %2326 = vmatmul.mubr.bf16.vlgmr.msra.gmra.mxu0 %v2025_v36  ;;  %2381 = vmatprep.subr.bf16.mxu1 %v2561_v38 }
  0x85   : > { %2358 = vmatpush3.bf16.msra.mxu0 %v2560_v13  ;;  %2329 = vmatprep.mubr.bf16.mxu0 %v2026_v42 }
  0x86   : > { %2359 = vmatprep.subr.bf16.mxu0 %v2562_v21  ;;  %2350 = vmatmul.mubr.bf16.vlgmr.msra.gmra.mxu1 %v2038_v44 }
  0x87   : > { %2382 = vmatpush3.bf16.msra.mxu1 %v2561_v38  ;;  %2353 = vmatprep.mubr.bf16.mxu1 %v2039_v14 }
  0x88   : > { %2383 = vmatprep.subr.bf16.mxu1 %v2563_v45 }
  0x89   : > { %2360 = vmatpush3.bf16.msra.mxu0 %v2562_v21 }
  0x8a   : > { %2361 = vmatprep.subr.bf16.mxu0 %v2564_v6 }
  0x8b   : > { %2384 = vmatpush3.bf16.msra.mxu1 %v2563_v45 }
  0x8c   : > { %2330 = vmatmul.mubr.bf16.gmra.mxu0 %v2027_v17  ;;  %2385 = vmatprep.subr.bf16.mxu1 %v2565_v47 }
  0x8d   : > { %2362 = vmatpush3.bf16.msra.mxu0 %v2564_v6  ;;  %2373 = vmatprep.mubr.bf16.mxu0 %v2800_v1  ;;  %v2572_v1 = vld [vmem:[%s2712_s5 + $0x188] sm:$0xff]  }
  0x8e   : > { %2363 = vmatprep.subr.bf16.mxu0 %v2566_v22  ;;  %2354 = vmatmul.mubr.bf16.gmra.mxu1 %v2040_v23 }
  0x8f   : > { %2386 = vmatpush3.bf16.msra.mxu1 %v2565_v47  ;;  %2397 = vmatprep.mubr.bf16.mxu1 %v2843_v18  ;;  %v1507_v18 = vshrl.u32 %v3034_v52, 16 }
  0x90   : > { %2387 = vmatprep.subr.bf16.mxu1 %v2567_v26 }
  0x91   : > { %2364 = vmatpush3.bf16.msra.mxu0 %v2566_v22  ;;  %v1509_v56 = vrot.slane %v1507_v18, 4 }
  0x92   : > { %2365 = vmatprep.subr.bf16.mxu0 %v2568_v49 }
  0x93   : > { %2388 = vmatpush3.bf16.msra.mxu1 %v2567_v26  ;;  %v1513_v60 = vor.u32 %v1512_v57, %v1509_v56 }
  0x94   : > { %2389 = vmatprep.subr.bf16.mxu1 %v2569_v50 }
  0x95   : > { %2366 = vmatpush3.bf16.msra.mxu0 %v2568_v49  ;;  %v1514_v63 = vrot.slane %v1513_v60, 4 }
  0x96   : > { %2367 = vmatprep.subr.bf16.mxu0 %v2570_v51 }
  0x97   : > { %2390 = vmatpush3.bf16.msra.mxu1 %v2569_v50 }
  0x98   : > { %2391 = vmatprep.subr.bf16.mxu1 %v2571_v53 }
  0x99   : > { %2368 = vmatpush3.bf16.msra.mxu0 %v2570_v51 }
  0x9a   : > { %2369 = vmatprep.subr.bf16.mxu0 %v2572_v1 }
  0x9b   : > { %2392 = vmatpush3.bf16.msra.mxu1 %v2571_v53 }
  0x9c   : > { %2393 = vmatprep.subr.bf16.mxu1 %v2573_v28 }
  0x9d   : > { %2370 = vmatpush3.bf16.msra.mxu0 %v2572_v1 }
  0x9e   : > { %2371 = vmatprep.subr.bf16.mxu0 %v2574_v33 }
  0x9f   : > { %2394 = vmatpush3.bf16.msra.mxu1 %v2573_v28 }
  0xa0   : > { %2395 = vmatprep.subr.bf16.mxu1 %v2575_v9 }
  0xa1   : > { %2372 = vmatpush3.bf16.msra.mxu0 %v2574_v33 }
  0xa2   : > { %2405 = vmatprep.subr.bf16.mxu0 %v2576_v58 }
  0xa3   : > { %2396 = vmatpush3.bf16.msra.mxu1 %v2575_v9 }
  0xa4   : > { %2374 = vmatmul.mubr.bf16.vlgmr.msra.gmra.mxu0 %v2821_v10  ;;  %2429 = vmatprep.subr.bf16.mxu1 %v2576_v58  ;;  %v1519_v10 = vsel %vm2774_vm4, %v1514_v63, %v1518_v2  ;;  %v276_v63 = vld [vmem:[#allocation2 + $0x18] sm:$0xff] }
  0xa5   : > { %2406 = vmatpush3.bf16.msra.mxu0 %v2576_v58  ;;  %2377 = vmatprep.mubr.bf16.mxu0 %v2874_v37  ;;  %v2058_v37 = vcombine.low %v3014_v46, %v1519_v10 }
  0xa6   : > { %2407 = vmatprep.subr.bf16.mxu0 %v2577_v62  ;;  %2398 = vmatmul.mubr.bf16.vlgmr.msra.gmra.mxu1 %v2895_v11  ;;  %v2581_v11 = vld [vmem:[%s2712_s5 + $0x218] sm:$0xff]  }
  0xa7   : > { %2437 = vmatpush3.bf16.msra.mxu1 %v2576_v58  ;;  %2401 = vmatprep.mubr.bf16.mxu1 %v2912_v29  ;;  %v2583_v29 = vld [vmem:[%s2712_s5 + $0x208] sm:$0xff]  }
  0xa8   : > { %2430 = vmatprep.subr.bf16.mxu1 %v2577_v62 }
  0xa9   : > { %2408 = vmatpush3.bf16.msra.mxu0 %v2577_v62 }
  0xaa   : > { %2409 = vmatprep.subr.bf16.mxu0 %v2579_v59 }
  0xab   : > { %2438 = vmatpush3.bf16.msra.mxu1 %v2577_v62 }
  0xac   : > { %2378 = vmatmul.mubr.bf16.gmra.mxu0 %v2049_v5  ;;  %2431 = vmatprep.subr.bf16.mxu1 %v2579_v59  ;;  %v274_v5 = vld [vmem:[#allocation2 + $0x30] sm:$0xff] }
  0xad   : > { %2410 = vmatpush3.bf16.msra.mxu0 %v2579_v59  ;;  %2421 = vmatprep.mubr.bf16.mxu0 %v2945_v48  ;;  %v2067_v48 = vrot.slane %v3034_v52, 9 }
  0xae   : > { %2411 = vmatprep.subr.bf16.mxu0 %v2580_v12  ;;  %2402 = vmatmul.mubr.bf16.gmra.mxu1 %v2058_v37  ;;  %v277_v37 = vld [vmem:[#allocation2 + $0x10] sm:$0xff] }
  0xaf   : > { %2439 = vmatpush3.bf16.msra.mxu1 %v2579_v59  ;;  %2425 = vmatprep.mubr.bf16.mxu1 %v2974_v8  ;;  %v1664_v8 = vsel %vm2804_vm5, %v2067_v48, %v1663_v19  ;;  %v275_v48 = vld [vmem:[#allocation2] sm:$0xff] }
  0xb0   : > { %2432 = vmatprep.subr.bf16.mxu1 %v2580_v12  ;;  %v2068_v3 = vcombine.low %v3021_v20, %v1664_v8 }
  0xb1   : > { %2412 = vmatpush3.bf16.msra.mxu0 %v2580_v12 }
  0xb2   : > { %2413 = vmatprep.subr.bf16.mxu0 %v2581_v11 }
  0xb3   : > { %2440 = vmatpush3.bf16.msra.mxu1 %v2580_v12  ;;  %v280_v12 = vld [vmem:[#allocation2 + $0x28] sm:$0xff] }
  0xb4   : > { %2433 = vmatprep.subr.bf16.mxu1 %v2581_v11 }
  0xb5   : > { %2414 = vmatpush3.bf16.msra.mxu0 %v2581_v11 }
  0xb6   : > { %2415 = vmatprep.subr.bf16.mxu0 %v2582_v40 }
  0xb7   : > { %2441 = vmatpush3.bf16.msra.mxu1 %v2581_v11 }
  0xb8   : > { %2434 = vmatprep.subr.bf16.mxu1 %v2582_v40 }
  0xb9   : > { %2416 = vmatpush3.bf16.msra.mxu0 %v2582_v40 }
  0xba   : > { %2417 = vmatprep.subr.bf16.mxu0 %v2583_v29 }
  0xbb   : > { %2442 = vmatpush3.bf16.msra.mxu1 %v2582_v40 }
  0xbc   : > { %2435 = vmatprep.subr.bf16.mxu1 %v2583_v29 }
  0xbd   : > { %2418 = vmatpush3.bf16.msra.mxu0 %v2583_v29 }
  0xbe   : > { %2419 = vmatprep.subr.bf16.mxu0 %v2584_v16 }
  0xbf   : > { %2443 = vmatpush3.bf16.msra.mxu1 %v2583_v29  ;;  %v278_v29 = vld [vmem:[#allocation2 + $0x8] sm:$0xff] }
  0xc0   : > { %2436 = vmatprep.subr.bf16.mxu1 %v2584_v16 }
  0xc1   : > { %2420 = vmatpush3.bf16.msra.mxu0 %v2584_v16 }
  0xc3   : > { %2444 = vmatpush3.bf16.msra.mxu1 %v2584_v16 }
  0xc4   : > { %2422 = vmatmul.mubr.bf16.vlgmr.msra.gmra.mxu0 %v2954_v54 }
  0xc6   : > { %2426 = vmatmul.mubr.bf16.vlgmr.msra.gmra.mxu1 %v2068_v3 }
 0x104   : > { %v2231_v7 = vpop.f32.mrf.mxu0 }
 0x105   : > { %v437_v10 = vadd.f32 %v2231_v7, %v276_v63 }
 0x106   : > { %v404_v15 = vpop.f32.mrf.mxu0  ;;  %v2255_v25 = vpop.f32.mrf.mxu1 }
 0x107   : > { %v435_v40 = vadd.f32 %v404_v15, %v274_v5  ;;  %v705_v8 = vadd.f32 %v2255_v25, %v437_v10 }
 0x108   : > { %v2232_v24 = vpop.f32.mrf.mxu0  ;;  %v672_v30 = vpop.f32.mrf.mxu1 }
 0x109   : > { %v438_v3 = vadd.f32 %v2232_v24, %v277_v37 }
 0x10a   : > { %v3072_v27 = vpop.f32.mrf.mxu0  ;;  %v3074_v32 = vpop.f32.mrf.mxu1 }
 0x10b   : > { %v706_v15 = vadd.f32 %v3074_v32, %v438_v3 }
 0x10c   : > { %v2235_v31 = vpop.f32.mrf.mxu0  ;;  %v3076_v35 = vpop.f32.mrf.mxu1 }
 0x10d   : > { %v441_v19 = vadd.f32 %v2235_v31, %v280_v12 }
 0x10e   : > { %v420_v4 = vpop.f32.mrf.mxu0 }
 0x110   : > { %v3078_v13 = vpop.f32.mrf.mxu0 }
 0x112   : > { %v2259_v36 = vpop.f32.mrf.mxu1  ;;  %v3080_v38 = vpop.f32.mrf.mxu0 }
 0x114   : > { %v3082_v54 = vpop.f32.mrf.mxu1 }
 0x116   : > { %v3084_v41 = vpop.f32.mrf.mxu1 }
 0x118   : > { %v3086_v42 = vpop.f32.mrf.mxu1 }
 0x124   : > { %v2279_v39 = vpop.f32.mrf.mxu0 }
 0x125   : > { %v901_v7 = vadd.f32 %v2279_v39, %v705_v8 }
 0x126   : > { %v868_v21 = vpop.f32.mrf.mxu0  ;;  %v2303_v14 = vpop.f32.mrf.mxu1 }
 0x128   : > { %v3088_v44 = vpop.f32.mrf.mxu0  ;;  %v3092_v43 = vpop.f32.mrf.mxu1 }
 0x12a   : > { %v3090_v0 = vpop.f32.mrf.mxu0  ;;  %v3094_v46 = vpop.f32.mrf.mxu1 }
 0x12c   : > { %v2283_v45 = vpop.f32.mrf.mxu0  ;;  %v3096_v17 = vpop.f32.mrf.mxu1 }
 0x12e   : > { %v884_v6 = vpop.f32.mrf.mxu0  ;;  %v3098_v20 = vpop.f32.mrf.mxu1 }
 0x130   : > { %v3100_v47 = vpop.f32.mrf.mxu0  ;;  %v3102_v22 = vpop.f32.mrf.mxu1 }
 0x132   : > { %v3104_v23 = vpop.f32.mrf.mxu0  ;;  %v3106_v49 = vpop.f32.mrf.mxu1 }
 0x134   : > { %v3110_v51 = vpop.f32.mrf.mxu1 }
 0x144   : > { %v2327_v26 = vpop.f32.mrf.mxu0 }
 0x146   : > { %v3108_v50 = vpop.f32.mrf.mxu0  ;;  %v3112_v52 = vpop.f32.mrf.mxu1 }
 0x148   : > { %v3114_v53 = vpop.f32.mrf.mxu0  ;;  %v3116_v1 = vpop.f32.mrf.mxu1 }
 0x14a   : > { %v3118_v18 = vpop.f32.mrf.mxu0  ;;  %v3120_v55 = vpop.f32.mrf.mxu1 }
 0x14c   : > { %v2331_v28 = vpop.f32.mrf.mxu0  ;;  %v3122_v33 = vpop.f32.mrf.mxu1 }
 0x14d   : > { %3220 = vst [vmem:[#allocation3_spill] sm:$0xff] %v3122_v33 }
 0x14e   : > { %v3124_v56 = vpop.f32.mrf.mxu0  ;;  %v3126_v57 = vpop.f32.mrf.mxu1 }
 0x150   : > { %v3128_v34 = vpop.f32.mrf.mxu0  ;;  %v3130_v9 = vpop.f32.mrf.mxu1 }
 0x151   : > { %3221 = vst [vmem:[#allocation4_spill] sm:$0xff] %v3130_v9  ;;  %v279_v9 = vld [vmem:[#allocation2 + $0x20] sm:$0xff] }
 0x152   : > { %v3132_v58 = vpop.f32.mrf.mxu0  ;;  %v3134_v60 = vpop.f32.mrf.mxu1  ;;  %v440_v25 = vadd.f32 %v3080_v38, %v279_v9 }
 0x153   : > { %3222 = vst [vmem:[#allocation5_spill] sm:$0xff] %v3132_v58  ;;  %3223 = vst [vmem:[#allocation6_spill] sm:$0xff] %v3134_v60  ;;  %v439_v60 = vadd.f32 %v420_v4, %v278_v29  ;;  %v703_v58 = vadd.f32 %v672_v30, %v435_v40  ;;  %v1048_v30 = vadd.f32 %v2303_v14, %v901_v7 }
 0x154   : > { %v3136_v62 = vpop.f32.mrf.mxu1 }
 0x155   : > { %3224 = vst [vmem:[#allocation7_spill] sm:$0xff] %v3136_v62  ;;  %v281_v62 = vld [vmem:[#allocation2 + $0x38] sm:$0xff]  ;;  %v899_v5 = vadd.f32 %v868_v21, %v703_v58  ;;  %v1208_v21 = vadd.f32 %v2327_v26, %v1048_v30 }
 0x157   : > { %v1359_v26 = vadd.f32 %v3112_v52, %v1208_v21 }
 0x164   : > { %v2375_v61 = vpop.f32.mrf.mxu0 }
 0x166   : > { %v3138_v2 = vpop.f32.mrf.mxu0  ;;  %v3140_v59 = vpop.f32.mrf.mxu1 }
 0x167   : > { %3225 = vst [vmem:[#allocation8_spill] sm:$0xff] %v3138_v2  ;;  %3226 = vst [vmem:[#allocation9_spill] sm:$0xff] %v3140_v59  ;;  %v436_v59 = vadd.f32 %v3072_v27, %v275_v48  ;;  %v709_v2 = vadd.f32 %v2259_v36, %v441_v19  ;;  %v902_v27 = vadd.f32 %v3088_v44, %v706_v15  ;;  %v3237_v15 = vld [vmem:[#allocation7_spill] sm:$0xff] }
 0x168   : > { %v3142_v11 = vpop.f32.mrf.mxu0  ;;  %v3144_v16 = vpop.f32.mrf.mxu1 }
 0x169   : > { %3227 = vst [vmem:[#allocation10_spill] sm:$0xff] %v3142_v11  ;;  %3228 = vst [vmem:[#allocation11_spill] sm:$0xff] %v3144_v16  ;;  %v442_v11 = vadd.f32 %v3078_v13, %v281_v62  ;;  %v707_v16 = vadd.f32 %v3082_v54, %v439_v60  ;;  %v905_v24 = vadd.f32 %v2283_v45, %v709_v2 }
 0x16a   : > { %v1470_v33 = vpop.f32.mrf.mxu0  ;;  %v2400_v63 = vpop.f32.mrf.mxu1  ;;  %v704_v4 = vadd.f32 %v3076_v35, %v436_v59  ;;  %v1046_v13 = vadd.f32 %v3092_v43, %v899_v5  ;;  %v708_v54 = vadd.f32 %v3086_v42, %v440_v25  ;;  %v1049_v14 = vadd.f32 %v3094_v46, %v902_v27 }
 0x16b   : > { %v710_v39 = vadd.f32 %v3084_v41, %v442_v11  ;;  %v903_v36 = vadd.f32 %v884_v6, %v707_v16  ;;  %v1052_v38 = vadd.f32 %v3098_v20, %v905_v24  ;;  %v3232_v11 = vld [vmem:[#allocation3_spill] sm:$0xff] }
 0x16c   : > { %v2379_v31 = vpop.f32.mrf.mxu0  ;;  %v1624_v10 = vpop.f32.mrf.mxu1  ;;  %v900_v32 = vadd.f32 %v3090_v0, %v704_v4  ;;  %v1206_v44 = vadd.f32 %v3108_v50, %v1046_v13  ;;  %v904_v6 = vadd.f32 %v3104_v23, %v708_v54  ;;  %v1209_v42 = vadd.f32 %v3114_v53, %v1049_v14 }
 0x16d   : > { %v906_v45 = vadd.f32 %v3100_v47, %v710_v39  ;;  %v1050_v41 = vadd.f32 %v3102_v22, %v903_v36  ;;  %v1212_v43 = vadd.f32 %v2331_v28, %v1052_v38  ;;  %v1500_v22 = vadd.f32 %v2375_v61, %v1359_v26 }
 0x16e   : > { %v2403_v58 = vpop.f32.mrf.mxu1  ;;  %v1483_v35 = vpop.f32.mrf.mxu0  ;;  %v1047_v0 = vadd.f32 %v3096_v17, %v900_v32  ;;  %v1357_v46 = vadd.f32 %v3116_v1, %v1206_v44  ;;  %v1051_v23 = vadd.f32 %v3110_v51, %v904_v6  ;;  %v1360_v52 = vadd.f32 %v3120_v55, %v1209_v42  ;;  %v3229_v53 = vld [vmem:[#allocation8_spill] sm:$0xff]  ;;  %v3233_v61 = vld [vmem:[#allocation9_spill] sm:$0xff] }
 0x16f   : > { %v1053_v20 = vadd.f32 %v3106_v49, %v906_v45  ;;  %v1210_v47 = vadd.f32 %v3124_v56, %v1050_v41  ;;  %v1363_v28 = vadd.f32 %v3126_v57, %v1212_v43  ;;  %v3230_v49 = vld [vmem:[#allocation4_spill] sm:$0xff]  ;;  %v3231_v56 = vld [vmem:[#allocation5_spill] sm:$0xff]  ;;  %v1654_v40 = vadd.f32 %v3233_v61, %v1500_v22  ;;  %v3235_v57 = vld [vmem:[#allocation6_spill] sm:$0xff] }
 0x170   : > { %v1637_v9 = vpop.f32.mrf.mxu1  ;;  %v2380_v60 = vpop.f32.mrf.mxu0  ;;  %v1207_v50 = vadd.f32 %v3118_v18, %v1047_v0  ;;  %v1498_v62 = vadd.f32 %v3229_v53, %v1357_v46  ;;  %v1211_v12 = vadd.f32 %v3231_v56, %v1051_v23  ;;  %v3234_v51 = vld [vmem:[#allocation10_spill] sm:$0xff]  ;;  %v3236_v55 = vld [vmem:[#allocation11_spill] sm:$0xff] }
 0x171   : > { %v1213_v17 = vadd.f32 %v3128_v34, %v1053_v20  ;;  %v1361_v59 = vadd.f32 %v3230_v49, %v1210_v47  ;;  %v1504_v37 = vadd.f32 %v2379_v31, %v1363_v28  ;;  %v1501_v29 = vadd.f32 %v3234_v51, %v1360_v52 }
 0x172   : > { %v2404_v2 = vpop.f32.mrf.mxu1  ;;  %v1486_v1 = vpop.f32.mrf.mxu0  ;;  %v1358_v18 = vadd.f32 %v3232_v11, %v1207_v50  ;;  %v1652_v19 = vadd.f32 %v3236_v55, %v1498_v62  ;;  %v1362_v5 = vadd.f32 %v3237_v15, %v1211_v12 }
 0x173   : > { %v1364_v16 = vadd.f32 %v3235_v57, %v1213_v17  ;;  %v1502_v34 = vadd.f32 %v1483_v35, %v1361_v59  ;;  %v1658_v25 = vadd.f32 %v2403_v58, %v1504_v37  ;;  %v1655_v4 = vadd.f32 %v2400_v63, %v1501_v29 }
 0x174   : > { %v1499_v8 = vadd.f32 %v1470_v33, %v1358_v18  ;;  %v1640_v3 = vpop.f32.mrf.mxu1  ;;  %v1503_v36 = vadd.f32 %v1486_v1, %v1362_v5 }
 0x175   : > { %v1505_v24 = vadd.f32 %v2380_v60, %v1364_v16  ;;  %v1656_v39 = vadd.f32 %v1637_v9, %v1502_v34 }
 0x176   : > { %v1653_v21 = vadd.f32 %v1624_v10, %v1499_v8  ;;  %v1657_v44 = vadd.f32 %v1640_v3, %v1503_v36 }
 0x177   : > { %v1659_v33 = vadd.f32 %v2404_v2, %v1505_v24 }
 0x184   : > { %v2423_v48 = vpop.f32.mrf.mxu0 }
 0x185   : > { %v1799_v7 = vadd.f32 %v2423_v48, %v1654_v40 }
 0x186   : > { %v1766_v31 = vpop.f32.mrf.mxu0  ;;  %v2427_v30 = vpop.f32.mrf.mxu1 }
 0x187   : > { %1807 = vst [vmem:[#allocation2 + $0x18] sm:$0xff] %v1799_v7  ;;  %v1797_v27 = vadd.f32 %v1766_v31, %v1652_v19  ;;  %v1803_v13 = vadd.f32 %v2427_v30, %v1658_v25 }
 0x188   : > { %v2424_v32 = vpop.f32.mrf.mxu0  ;;  %v1782_v54 = vpop.f32.mrf.mxu1 }
 0x189   : > { %1805 = vst [vmem:[#allocation2 + $0x30] sm:$0xff] %v1797_v27  ;;  %v1800_v38 = vadd.f32 %v2424_v32, %v1655_v4  ;;  %1811 = vst [vmem:[#allocation2 + $0x28] sm:$0xff] %v1803_v13  ;;  %v1801_v45 = vadd.f32 %v1782_v54, %v1656_v39 }
 0x18a   : > { %v1769_v35 = vpop.f32.mrf.mxu0  ;;  %v2428_v58 = vpop.f32.mrf.mxu1 }
 0x18b   : > { %1808 = vst [vmem:[#allocation2 + $0x10] sm:$0xff] %v1800_v38  ;;  %v1798_v14 = vadd.f32 %v1769_v35, %v1653_v21  ;;  %1809 = vst [vmem:[#allocation2 + $0x8] sm:$0xff] %v1801_v45  ;;  %v1804_v63 = vadd.f32 %v2428_v58, %v1659_v33  ;;  %1816 = sbr.rel (%p2077_p10) target bundleno = 414 (0x19e), region = 40 }
 0x18c   : > { %v1785_v41 = vpop.f32.mrf.mxu1 }
 0x18d   : > { %1806 = vst [vmem:[#allocation2] sm:$0xff] %v1798_v14  ;;  %1812 = vst [vmem:[#allocation2 + $0x38] sm:$0xff] %v1804_v63  ;;  %v1802_v6 = vadd.f32 %v1785_v41, %v1657_v44 }
 0x18f   : > { %1810 = vst [vmem:[#allocation2 + $0x20] sm:$0xff] %v1802_v6 }
 0x190   : > { %v1817_v10 = vld [vmem:[#allocation2 + $0x30] sm:$0xff]  ;;  %v2078_v0 = vld [vmem:[%s3214_s2] ss:$0 sm:$0xff]  ;;  %v1819_v9 = vld [vmem:[#allocation2 + $0x18] sm:$0xff] }
 0x191   : > { %v1832_v26 = vadd.f32 %v2078_v0, %v1817_v10  ;;  %v1834_v60 = vadd.f32 %v2078_v0, %v1819_v9  ;;  %v1823_v23 = vld [vmem:[#allocation2 + $0x28] sm:$0xff] }
 0x192   : > { %v1820_v20 = vld [vmem:[#allocation2 + $0x10] sm:$0xff]  ;;  %v1821_v47 = vld [vmem:[#allocation2 + $0x8] sm:$0xff]  ;;  %v1838_v62 = vadd.f32 %v2078_v0, %v1823_v23 }
 0x193   : > { %v1835_v46 = vadd.f32 %v2078_v0, %v1820_v20  ;;  %v1836_v22 = vadd.f32 %v2078_v0, %v1821_v47  ;;  %v1840_v17 = vmax.f32 %v1832_v26, 0.0  ;;  %v1842_v2 = vmax.f32 %v1834_v60, 0.0 }
 0x194   : > { %v1818_v43 = vld [vmem:[#allocation2] sm:$0xff]  ;;  %v1824_v28 = vld [vmem:[#allocation2 + $0x38] sm:$0xff]  ;;  %v1846_v1 = vmax.f32 %v1838_v62, 0.0 }
 0x195   : > { %v1833_v42 = vadd.f32 %v2078_v0, %v1818_v43  ;;  %v1843_v49 = vmax.f32 %v1835_v46, 0.0  ;;  %v1844_v59 = vmax.f32 %v1836_v22, 0.0  ;;  %v1839_v56 = vadd.f32 %v2078_v0, %v1824_v28 }
 0x196   : > { %v1822_v50 = vld [vmem:[#allocation2 + $0x20] sm:$0xff] }
 0x197   : > { %v1841_v52 = vmax.f32 %v1833_v42, 0.0  ;;  %v1837_v53 = vadd.f32 %v2078_v0, %v1822_v50  ;;  %v2090_v11 = vpack.c.bf16 %v1843_v49, %v1842_v2  ;;  %v1847_v18 = vmax.f32 %v1839_v56, 0.0 }
 0x199   : > { %v2085_v12 = vpack.c.bf16 %v1841_v52, %v1840_v17  ;;  %v1845_v37 = vmax.f32 %v1837_v53, 0.0  ;;  %2102 = vst [vmem:[%s2722_s13 + $0x8] sm:$0xff] %v2090_v11   ;;  %v2100_v40 = vpack.c.bf16 %v1847_v18, %v1846_v1 }
 0x19b   : > { %2086 = vst [vmem:[%s2722_s13] sm:$0xff] %v2085_v12   ;;  %v2095_v61 = vpack.c.bf16 %v1845_v37, %v1844_v59  ;;  %2104 = vst [vmem:[%s2722_s13 + $0x18] sm:$0xff] %v2100_v40  }
 0x19d   : > { %2103 = vst [vmem:[%s2722_s13 + $0x10] sm:$0xff] %v2095_v61  }
 0x19e PF: > { %s13_s18 = sadd.s32 1, %s2639_s18   ;;  %s3238_s12 = smov %s2627_s15 }
 0x19f   : > { %p10_p11 = scmp.ge.s32.totalorder %s13_s18, 26   ;;  %s3239_s13 = smov %s2631_s16 }
 0x1a0   : > { %s3240_s14 = smov %s2635_s17  ;;  %s3241_s15 = smov %s3245_s19 }
 0x1a1   : > { %s3242_s16 = smov %s3249_s20  ;;  %s3243_s17 = smov %s3253_s21 }
 0x1a2   :  { %12 = sbr.rel (!%p10_p11) target bundleno = 4 (0x4), region = 73 }

// kernel: cnn3d_resnet_forward.7
= control target key start
LH: loop header
LB: loop body
LE: loop exit
PB: predicated region body
PF: predicated region fallthrough
CT: control target
= control target key end

     0   :  { %s3951_s0 = inlined_call_operand.vmem [shape: bf16[2,128], index: 0, kind: input, shape index: {}]   ;;  %s3952_s1 = inlined_call_operand.vmem [shape: bf16[128,512], index: 1, kind: input, shape index: {}]   ;;  %s3953_s2 = inlined_call_operand.vmem [shape: f32[1,512], index: 2, kind: input, shape index: {}]   ;;  %s3954_s3 = inlined_call_operand.vmem [shape: bf16[512,256], index: 3, kind: input, shape index: {}]   ;;  %s3955_s4 = inlined_call_operand.vmem [shape: f32[1,256], index: 4, kind: input, shape index: {}]   ;;  %s3956_s5 = inlined_call_operand.vmem [shape: bf16[256,256], index: 5, kind: input, shape index: {}]   ;;  %s3957_s6 = inlined_call_operand.vmem [shape: f32[1,256], index: 6, kind: input, shape index: {}]   ;;  %s3958_s7 = inlined_call_operand.vmem [shape: bf16[256,256], index: 7, kind: input, shape index: {}]   ;;  %s3959_s8 = inlined_call_operand.vmem [shape: f32[1,256], index: 8, kind: input, shape index: {}]   ;;  %s3960_s9 = inlined_call_operand.vmem [shape: bf16[256,256], index: 9, kind: input, shape index: {}]   ;;  %s3961_s10 = inlined_call_operand.vmem [shape: f32[1,256], index: 10, kind: input, shape index: {}]   ;;  %s3962_s11 = inlined_call_operand.vmem [shape: bf16[256,256], index: 11, kind: input, shape index: {}]   ;;  %s3963_s12 = inlined_call_operand.vmem [shape: f32[1,256], index: 12, kind: input, shape index: {}]   ;;  %s3964_s13 = inlined_call_operand.vmem [shape: bf16[256,256], index: 13, kind: input, shape index: {}]   ;;  %s3965_s14 = inlined_call_operand.vmem [shape: f32[1,256], index: 14, kind: input, shape index: {}]   ;;  %s3966_s15 = inlined_call_operand.vmem [shape: bf16[256,128], index: 15, kind: input, shape index: {}]   ;;  %s3967_s16 = inlined_call_operand.vmem [shape: f32[1,128], index: 16, kind: input, shape index: {}]   ;;  %s3968_s17 = inlined_call_operand.hbm [shape: f32[2,128], index: 17, kind: output, shape index: {}]  }
   0x1   :  { %3970 = sst [smem:[#allocation5_spill]] %s3951_s0 }
   0x2   :  { %3971 = sst [smem:[#allocation6_spill]] %s3952_s1 }
   0x3   :  { %s3972_s26 = sld [smem:[#allocation6_spill]]  ;;  %v2995_v2 = vmov 0   ;;  %v2623_v33 = vld [vmem:[%s3954_s3 + $0x74] ss:$8 sps:$4 sm:$0xff]   ;;  %v2621_v36 = vld [vmem:[%s3954_s3 + $0x70] ss:$8 sps:$4 sm:$0xff]  }
   0x4   :  { %305 = vmatprep.mubr.bf16.mxu0 %v2995_v2  ;;  %346 = vmatprep.mubr.bf16.mxu1 %v2995_v2  ;;  %v2626_v34 = vld [vmem:[%s3954_s3 + $0x174] ss:$8 sps:$4 sm:$0xff]   ;;  %s3973_s24 = sld [smem:[#allocation5_spill]]  ;;  %v2624_v37 = vld [vmem:[%s3954_s3 + $0x170] ss:$8 sps:$4 sm:$0xff]  }
   0x5   :  { %v2629_v38 = vld [vmem:[%s3954_s3 + $0x64] ss:$8 sps:$4 sm:$0xff]   ;;  %v2627_v40 = vld [vmem:[%s3954_s3 + $0x60] ss:$8 sps:$4 sm:$0xff]   ;;  %v2635_v42 = vld [vmem:[%s3954_s3 + $0x54] ss:$8 sps:$4 sm:$0xff]  }
   0x6   :  { %v2632_v39 = vld [vmem:[%s3954_s3 + $0x164] ss:$8 sps:$4 sm:$0xff]   ;;  %v2630_v41 = vld [vmem:[%s3954_s3 + $0x160] ss:$8 sps:$4 sm:$0xff]   ;;  %v2638_v43 = vld [vmem:[%s3954_s3 + $0x154] ss:$8 sps:$4 sm:$0xff]  }
   0x7   :  { %v2633_v44 = vld [vmem:[%s3954_s3 + $0x50] ss:$8 sps:$4 sm:$0xff]   ;;  %v2641_v46 = vld [vmem:[%s3954_s3 + $0x44] ss:$8 sps:$4 sm:$0xff]   ;;  %v2639_v48 = vld [vmem:[%s3954_s3 + $0x40] ss:$8 sps:$4 sm:$0xff]  }
   0x8   :  { %v2636_v45 = vld [vmem:[%s3954_s3 + $0x150] ss:$8 sps:$4 sm:$0xff]   ;;  %v2644_v47 = vld [vmem:[%s3954_s3 + $0x144] ss:$8 sps:$4 sm:$0xff]   ;;  %v2642_v49 = vld [vmem:[%s3954_s3 + $0x140] ss:$8 sps:$4 sm:$0xff]  }
   0x9   :  { %v2573_v0 = vld [vmem:[%s3972_s26 + $0xe4] ss:$16 sps:$4 sm:$0xff]   ;;  %v2575_v1 = vld [vmem:[%s3972_s26 + $0xec] ss:$16 sps:$4 sm:$0xff]   ;;  %v2577_v3 = vld [vmem:[%s3972_s26 + $0xe0] ss:$16 sps:$4 sm:$0xff]  }
   0xa   :  { %273 = vmatprep.subr.bf16.mxu0 %v2573_v0  ;;  %v2578_v4 = vld [vmem:[%s3972_s26 + $0xe8] ss:$16 sps:$4 sm:$0xff]   ;;  %314 = vmatprep.subr.bf16.mxu1 %v2575_v1  ;;  %v2579_v5 = vld [vmem:[%s3972_s26 + $0xc4] ss:$16 sps:$4 sm:$0xff]   ;;  %v2581_v6 = vld [vmem:[%s3972_s26 + $0xcc] ss:$16 sps:$4 sm:$0xff]  }
   0xb   :  { %274 = vmatpush1.bf16.msra.mxu0 %v2577_v3  ;;  %315 = vmatpush1.bf16.msra.mxu1 %v2578_v4  ;;  %v2583_v7 = vld [vmem:[%s3972_s26 + $0xc0] ss:$16 sps:$4 sm:$0xff]   ;;  %v2584_v8 = vld [vmem:[%s3972_s26 + $0xc8] ss:$16 sps:$4 sm:$0xff]   ;;  %v2585_v9 = vld [vmem:[%s3972_s26 + $0xa4] ss:$16 sps:$4 sm:$0xff]  }
   0xc   :  { %275 = vmatprep.subr.bf16.mxu0 %v2579_v5  ;;  %316 = vmatprep.subr.bf16.mxu1 %v2581_v6  ;;  %v2587_v10 = vld [vmem:[%s3972_s26 + $0xac] ss:$16 sps:$4 sm:$0xff]   ;;  %v2589_v11 = vld [vmem:[%s3972_s26 + $0xa0] ss:$16 sps:$4 sm:$0xff]   ;;  %v2590_v12 = vld [vmem:[%s3972_s26 + $0xa8] ss:$16 sps:$4 sm:$0xff]  }
   0xd   :  { %v2591_v13 = vld [vmem:[%s3972_s26 + $0x84] ss:$16 sps:$4 sm:$0xff]   ;;  %v2593_v14 = vld [vmem:[%s3972_s26 + $0x8c] ss:$16 sps:$4 sm:$0xff]   ;;  %v2595_v15 = vld [vmem:[%s3972_s26 + $0x80] ss:$16 sps:$4 sm:$0xff]  }
   0xe   :  { %v2596_v16 = vld [vmem:[%s3972_s26 + $0x88] ss:$16 sps:$4 sm:$0xff]   ;;  %v2597_v17 = vld [vmem:[%s3972_s26 + $0x64] ss:$16 sps:$4 sm:$0xff]   ;;  %v2599_v18 = vld [vmem:[%s3972_s26 + $0x6c] ss:$16 sps:$4 sm:$0xff]  }
   0xf   :  { %276 = vmatpush1.bf16.msra.mxu0 %v2583_v7  ;;  %317 = vmatpush1.bf16.msra.mxu1 %v2584_v8  ;;  %v2601_v19 = vld [vmem:[%s3972_s26 + $0x60] ss:$16 sps:$4 sm:$0xff]   ;;  %v2602_v20 = vld [vmem:[%s3972_s26 + $0x68] ss:$16 sps:$4 sm:$0xff]   ;;  %v2603_v21 = vld [vmem:[%s3972_s26 + $0x44] ss:$16 sps:$4 sm:$0xff]  }
  0x10   :  { %277 = vmatprep.subr.bf16.mxu0 %v2585_v9  ;;  %318 = vmatprep.subr.bf16.mxu1 %v2587_v10  ;;  %v2605_v22 = vld [vmem:[%s3972_s26 + $0x4c] ss:$16 sps:$4 sm:$0xff]   ;;  %v2607_v23 = vld [vmem:[%s3972_s26 + $0x40] ss:$16 sps:$4 sm:$0xff]   ;;  %v2608_v24 = vld [vmem:[%s3972_s26 + $0x48] ss:$16 sps:$4 sm:$0xff]  }
  0x11   :  { %v2609_v25 = vld [vmem:[%s3972_s26 + $0x24] ss:$16 sps:$4 sm:$0xff]   ;;  %v2611_v26 = vld [vmem:[%s3972_s26 + $0x2c] ss:$16 sps:$4 sm:$0xff]   ;;  %v2613_v27 = vld [vmem:[%s3972_s26 + $0x20] ss:$16 sps:$4 sm:$0xff]  }
  0x12   :  { %v2614_v28 = vld [vmem:[%s3972_s26 + $0x28] ss:$16 sps:$4 sm:$0xff]   ;;  %v2615_v29 = vld [vmem:[%s3972_s26 + $0x4] ss:$16 sps:$4 sm:$0xff]   ;;  %v2617_v30 = vld [vmem:[%s3972_s26 + $0xc] ss:$16 sps:$4 sm:$0xff]  }
  0x13   :  { %278 = vmatpush1.bf16.msra.mxu0 %v2589_v11  ;;  %319 = vmatpush1.bf16.msra.mxu1 %v2590_v12  ;;  %v2619_v31 = vld [vmem:[%s3972_s26] ss:$16 sps:$4 sm:$0xff]   ;;  %v2620_v32 = vld [vmem:[%s3972_s26 + $0x8] ss:$16 sps:$4 sm:$0xff]   ;;  %v2647_v50 = vld [vmem:[%s3954_s3 + $0x34] ss:$8 sps:$4 sm:$0xff]  }
  0x14   :  { %279 = vmatprep.subr.bf16.mxu0 %v2591_v13  ;;  %320 = vmatprep.subr.bf16.mxu1 %v2593_v14  ;;  %v58_v35 = vld [vmem:[%s3973_s24] sm:$0x1]  ;;  %v2650_v51 = vld [vmem:[%s3954_s3 + $0x134] ss:$8 sps:$4 sm:$0xff]   ;;  %v2645_v52 = vld [vmem:[%s3954_s3 + $0x30] ss:$8 sps:$4 sm:$0xff]  }
  0x15   :  { %v2648_v53 = vld [vmem:[%s3954_s3 + $0x130] ss:$8 sps:$4 sm:$0xff]   ;;  %v2653_v54 = vld [vmem:[%s3954_s3 + $0x24] ss:$8 sps:$4 sm:$0xff]   ;;  %v2651_v56 = vld [vmem:[%s3954_s3 + $0x20] ss:$8 sps:$4 sm:$0xff]  }
  0x16   :  { %v2656_v55 = vld [vmem:[%s3954_s3 + $0x124] ss:$8 sps:$4 sm:$0xff]   ;;  %v2654_v57 = vld [vmem:[%s3954_s3 + $0x120] ss:$8 sps:$4 sm:$0xff]   ;;  %v2659_v58 = vld [vmem:[%s3954_s3 + $0x14] ss:$8 sps:$4 sm:$0xff]  }
  0x17   :  { %280 = vmatpush1.bf16.msra.mxu0 %v2595_v15  ;;  %321 = vmatpush1.bf16.msra.mxu1 %v2596_v16  ;;  %v2662_v59 = vld [vmem:[%s3954_s3 + $0x114] ss:$8 sps:$4 sm:$0xff]   ;;  %v2657_v60 = vld [vmem:[%s3954_s3 + $0x10] ss:$8 sps:$4 sm:$0xff]   ;;  %v2665_v62 = vld [vmem:[%s3954_s3 + $0x4] ss:$8 sps:$4 sm:$0xff]  }
  0x18   :  { %281 = vmatprep.subr.bf16.mxu0 %v2597_v17  ;;  %322 = vmatprep.subr.bf16.mxu1 %v2599_v18  ;;  %v2660_v61 = vld [vmem:[%s3954_s3 + $0x110] ss:$8 sps:$4 sm:$0xff]   ;;  %v2668_v63 = vld [vmem:[%s3954_s3 + $0x104] ss:$8 sps:$4 sm:$0xff]   ;;  %v2663_v0 = vld [vmem:[%s3954_s3] ss:$8 sps:$4 sm:$0xff]  }
  0x19   :  { %v2666_v1 = vld [vmem:[%s3954_s3 + $0x100] ss:$8 sps:$4 sm:$0xff]   ;;  %v2671_v2 = vld [vmem:[%s3954_s3 + $0xf4] ss:$8 sps:$4 sm:$0xff]   ;;  %v2669_v4 = vld [vmem:[%s3954_s3 + $0xf0] ss:$8 sps:$4 sm:$0xff]  }
  0x1a   :  { %v2674_v3 = vld [vmem:[%s3954_s3 + $0x1f4] ss:$8 sps:$4 sm:$0xff]   ;;  %v2672_v5 = vld [vmem:[%s3954_s3 + $0x1f0] ss:$8 sps:$4 sm:$0xff]   ;;  %v2677_v6 = vld [vmem:[%s3954_s3 + $0xe4] ss:$8 sps:$4 sm:$0xff]  }
  0x1b   :  { %282 = vmatpush1.bf16.msra.mxu0 %v2601_v19  ;;  %323 = vmatpush1.bf16.msra.mxu1 %v2602_v20  ;;  %v2680_v7 = vld [vmem:[%s3954_s3 + $0x1e4] ss:$8 sps:$4 sm:$0xff]   ;;  %v2675_v8 = vld [vmem:[%s3954_s3 + $0xe0] ss:$8 sps:$4 sm:$0xff]   ;;  %v2683_v10 = vld [vmem:[%s3954_s3 + $0xd4] ss:$8 sps:$4 sm:$0xff]  }
  0x1c   :  { %283 = vmatprep.subr.bf16.mxu0 %v2603_v21  ;;  %324 = vmatprep.subr.bf16.mxu1 %v2605_v22  ;;  %v2678_v9 = vld [vmem:[%s3954_s3 + $0x1e0] ss:$8 sps:$4 sm:$0xff]   ;;  %v2686_v11 = vld [vmem:[%s3954_s3 + $0x1d4] ss:$8 sps:$4 sm:$0xff]   ;;  %v2681_v12 = vld [vmem:[%s3954_s3 + $0xd0] ss:$8 sps:$4 sm:$0xff]  }
  0x1d   :  { %v2684_v13 = vld [vmem:[%s3954_s3 + $0x1d0] ss:$8 sps:$4 sm:$0xff]   ;;  %v2689_v14 = vld [vmem:[%s3954_s3 + $0xc4] ss:$8 sps:$4 sm:$0xff]   ;;  %v2687_v16 = vld [vmem:[%s3954_s3 + $0xc0] ss:$8 sps:$4 sm:$0xff]  }
  0x1e   :  { %v2692_v15 = vld [vmem:[%s3954_s3 + $0x1c4] ss:$8 sps:$4 sm:$0xff]   ;;  %v2690_v17 = vld [vmem:[%s3954_s3 + $0x1c0] ss:$8 sps:$4 sm:$0xff]   ;;  %v2695_v18 = vld [vmem:[%s3954_s3 + $0xb4] ss:$8 sps:$4 sm:$0xff]  }
  0x1f   :  { %284 = vmatpush1.bf16.msra.mxu0 %v2607_v23  ;;  %325 = vmatpush1.bf16.msra.mxu1 %v2608_v24  ;;  %v2698_v19 = vld [vmem:[%s3954_s3 + $0x1b4] ss:$8 sps:$4 sm:$0xff]   ;;  %v2693_v20 = vld [vmem:[%s3954_s3 + $0xb0] ss:$8 sps:$4 sm:$0xff]   ;;  %v2701_v22 = vld [vmem:[%s3954_s3 + $0xa4] ss:$8 sps:$4 sm:$0xff]  }
  0x20   :  { %285 = vmatprep.subr.bf16.mxu0 %v2609_v25  ;;  %326 = vmatprep.subr.bf16.mxu1 %v2611_v26  ;;  %v2696_v21 = vld [vmem:[%s3954_s3 + $0x1b0] ss:$8 sps:$4 sm:$0xff]   ;;  %v2704_v23 = vld [vmem:[%s3954_s3 + $0x1a4] ss:$8 sps:$4 sm:$0xff]   ;;  %v2699_v24 = vld [vmem:[%s3954_s3 + $0xa0] ss:$8 sps:$4 sm:$0xff]  }
  0x21   :  { %v2702_v25 = vld [vmem:[%s3954_s3 + $0x1a0] ss:$8 sps:$4 sm:$0xff]   ;;  %v2707_v26 = vld [vmem:[%s3954_s3 + $0x94] ss:$8 sps:$4 sm:$0xff]  }
  0x23   :  { %286 = vmatpush1.bf16.msra.mxu0 %v2613_v27  ;;  %327 = vmatpush1.bf16.msra.mxu1 %v2614_v28  ;;  %v2710_v27 = vld [vmem:[%s3954_s3 + $0x194] ss:$8 sps:$4 sm:$0xff]   ;;  %v2705_v28 = vld [vmem:[%s3954_s3 + $0x90] ss:$8 sps:$4 sm:$0xff]  }
  0x24   :  { %287 = vmatprep.subr.bf16.mxu0 %v2615_v29  ;;  %328 = vmatprep.subr.bf16.mxu1 %v2617_v30  ;;  %v2708_v29 = vld [vmem:[%s3954_s3 + $0x190] ss:$8 sps:$4 sm:$0xff]   ;;  %v2713_v30 = vld [vmem:[%s3954_s3 + $0x84] ss:$8 sps:$4 sm:$0xff]  }
  0x27   :  { %288 = vmatpush1.bf16.msra.mxu0 %v2619_v31  ;;  %329 = vmatpush1.bf16.msra.mxu1 %v2620_v32  ;;  %v2716_v31 = vld [vmem:[%s3954_s3 + $0x184] ss:$8 sps:$4 sm:$0xff]   ;;  %v2711_v32 = vld [vmem:[%s3954_s3 + $0x80] ss:$8 sps:$4 sm:$0xff]  }
  0x28   :  { %755 = vmatprep.subr.bf16.mxu0 %v2623_v33  ;;  %796 = vmatprep.subr.bf16.mxu1 %v2626_v34  ;;  %v2714_v33 = vld [vmem:[%s3954_s3 + $0x180] ss:$8 sps:$4 sm:$0xff]   ;;  %v2719_v34 = vld [vmem:[%s3956_s5 + $0x74] ss:$8 sps:$4 sm:$0xff]  }
  0x2a   :  { %306 = vmatmul.mubr.bf16.vlgmr.msra.gmra.mxu0 %v58_v35  ;;  %347 = vmatmul.mubr.bf16.vlgmr.msra.gmra.mxu1 %v58_v35 }
  0x2b   :  { %756 = vmatpush1.bf16.msra.mxu0 %v2621_v36  ;;  %797 = vmatpush1.bf16.msra.mxu1 %v2624_v37 }
  0x2c   :  { %757 = vmatprep.subr.bf16.mxu0 %v2629_v38  ;;  %798 = vmatprep.subr.bf16.mxu1 %v2632_v39 }
  0x2f   :  { %758 = vmatpush1.bf16.msra.mxu0 %v2627_v40  ;;  %799 = vmatpush1.bf16.msra.mxu1 %v2630_v41 }
  0x30   :  { %759 = vmatprep.subr.bf16.mxu0 %v2635_v42  ;;  %800 = vmatprep.subr.bf16.mxu1 %v2638_v43 }
  0x33   :  { %760 = vmatpush1.bf16.msra.mxu0 %v2633_v44  ;;  %801 = vmatpush1.bf16.msra.mxu1 %v2636_v45 }
  0x34   :  { %761 = vmatprep.subr.bf16.mxu0 %v2641_v46  ;;  %802 = vmatprep.subr.bf16.mxu1 %v2644_v47 }
  0x37   :  { %762 = vmatpush1.bf16.msra.mxu0 %v2639_v48  ;;  %803 = vmatpush1.bf16.msra.mxu1 %v2642_v49 }
  0x38   :  { %763 = vmatprep.subr.bf16.mxu0 %v2647_v50  ;;  %804 = vmatprep.subr.bf16.mxu1 %v2650_v51 }
  0x3b   :  { %764 = vmatpush1.bf16.msra.mxu0 %v2645_v52  ;;  %805 = vmatpush1.bf16.msra.mxu1 %v2648_v53 }
  0x3c   :  { %765 = vmatprep.subr.bf16.mxu0 %v2653_v54  ;;  %806 = vmatprep.subr.bf16.mxu1 %v2656_v55 }
  0x3f   :  { %766 = vmatpush1.bf16.msra.mxu0 %v2651_v56  ;;  %807 = vmatpush1.bf16.msra.mxu1 %v2654_v57 }
  0x40   :  { %767 = vmatprep.subr.bf16.mxu0 %v2659_v58  ;;  %808 = vmatprep.subr.bf16.mxu1 %v2662_v59 }
  0x43   :  { %768 = vmatpush1.bf16.msra.mxu0 %v2657_v60  ;;  %809 = vmatpush1.bf16.msra.mxu1 %v2660_v61 }
  0x44   :  { %769 = vmatprep.subr.bf16.mxu0 %v2665_v62  ;;  %810 = vmatprep.subr.bf16.mxu1 %v2668_v63 }
  0x47   :  { %770 = vmatpush1.bf16.msra.mxu0 %v2663_v0  ;;  %811 = vmatpush1.bf16.msra.mxu1 %v2666_v1 }
  0x48   :  { %771 = vmatprep.subr.bf16.mxu0 %v2671_v2  ;;  %812 = vmatprep.subr.bf16.mxu1 %v2674_v3 }
  0x4b   :  { %772 = vmatpush2.bf16.msra.mxu0 %v2669_v4  ;;  %813 = vmatpush2.bf16.msra.mxu1 %v2672_v5 }
  0x4c   :  { %773 = vmatprep.subr.bf16.mxu0 %v2677_v6  ;;  %814 = vmatprep.subr.bf16.mxu1 %v2680_v7 }
  0x4f   :  { %774 = vmatpush2.bf16.msra.mxu0 %v2675_v8  ;;  %815 = vmatpush2.bf16.msra.mxu1 %v2678_v9 }
  0x50   :  { %775 = vmatprep.subr.bf16.mxu0 %v2683_v10  ;;  %816 = vmatprep.subr.bf16.mxu1 %v2686_v11 }
  0x53   :  { %776 = vmatpush2.bf16.msra.mxu0 %v2681_v12  ;;  %817 = vmatpush2.bf16.msra.mxu1 %v2684_v13 }
  0x54   :  { %777 = vmatprep.subr.bf16.mxu0 %v2689_v14  ;;  %818 = vmatprep.subr.bf16.mxu1 %v2692_v15 }
  0x57   :  { %778 = vmatpush2.bf16.msra.mxu0 %v2687_v16  ;;  %819 = vmatpush2.bf16.msra.mxu1 %v2690_v17 }
  0x58   :  { %779 = vmatprep.subr.bf16.mxu0 %v2695_v18  ;;  %820 = vmatprep.subr.bf16.mxu1 %v2698_v19 }
  0x5b   :  { %780 = vmatpush2.bf16.msra.mxu0 %v2693_v20  ;;  %821 = vmatpush2.bf16.msra.mxu1 %v2696_v21 }
  0x5c   :  { %781 = vmatprep.subr.bf16.mxu0 %v2701_v22  ;;  %822 = vmatprep.subr.bf16.mxu1 %v2704_v23 }
  0x5f   :  { %782 = vmatpush2.bf16.msra.mxu0 %v2699_v24  ;;  %823 = vmatpush2.bf16.msra.mxu1 %v2702_v25 }
  0x60   :  { %783 = vmatprep.subr.bf16.mxu0 %v2707_v26  ;;  %824 = vmatprep.subr.bf16.mxu1 %v2710_v27 }
  0x63   :  { %784 = vmatpush2.bf16.msra.mxu0 %v2705_v28  ;;  %825 = vmatpush2.bf16.msra.mxu1 %v2708_v29 }
  0x64   :  { %785 = vmatprep.subr.bf16.mxu0 %v2713_v30  ;;  %826 = vmatprep.subr.bf16.mxu1 %v2716_v31 }
  0x67   :  { %786 = vmatpush2.bf16.msra.mxu0 %v2711_v32  ;;  %827 = vmatpush2.bf16.msra.mxu1 %v2714_v33 }
  0x68   :  { %1045 = vmatprep.subr.bf16.mxu0 %v2719_v34 }
  0x69   :  { %22 = vsyncpa [#allocation3], 0  ;;  %v93_v35 = vlaneseq  ;;  %v91_v39 = vld [vmem:[%s3953_s2] sm:$0xf]  ;;  %v2717_v59 = vld [vmem:[%s3956_s5 + $0x70] ss:$8 sps:$4 sm:$0xff]  }
  0x6a   :  { %v2722_v63 = vld [vmem:[%s3956_s5 + $0x64] ss:$8 sps:$4 sm:$0xff]   ;;  %v2720_v0 = vld [vmem:[%s3956_s5 + $0x60] ss:$8 sps:$4 sm:$0xff]   ;;  %v2725_v1 = vld [vmem:[%s3956_s5 + $0x54] ss:$8 sps:$4 sm:$0xff]  }
  0x6b   :  { %v94_v36 = vshrl.u32 %v93_v35, 7  ;;  %v2723_v2 = vld [vmem:[%s3956_s5 + $0x50] ss:$8 sps:$4 sm:$0xff]   ;;  %v2728_v3 = vld [vmem:[%s3956_s5 + $0x44] ss:$8 sps:$4 sm:$0xff]   ;;  %s2996_s25 = smov [#allocation2]  }
  0x6c   :  { %v2726_v4 = vld [vmem:[%s3956_s5 + $0x40] ss:$8 sps:$4 sm:$0xff]   ;;  %v2731_v5 = vld [vmem:[%s3956_s5 + $0x34] ss:$8 sps:$4 sm:$0xff]   ;;  %v2729_v6 = vld [vmem:[%s3956_s5 + $0x30] ss:$8 sps:$4 sm:$0xff]  }
  0x6d   :  { %v103_v37 = vsub.s32 2, %v94_v36  ;;  %v3381_v38 = vsub.s32 0, %v94_v36  ;;  %v3386_v40 = vsub.s32 1, %v94_v36  ;;  %v107_v41 = vsub.s32 3, %v94_v36  ;;  %v2734_v7 = vld [vmem:[%s3956_s5 + $0x24] ss:$8 sps:$4 sm:$0xff]  }
  0x6e   :  { %v2732_v8 = vld [vmem:[%s3956_s5 + $0x20] ss:$8 sps:$4 sm:$0xff]   ;;  %v2737_v9 = vld [vmem:[%s3956_s5 + $0x14] ss:$8 sps:$4 sm:$0xff]   ;;  %v2735_v10 = vld [vmem:[%s3956_s5 + $0x10] ss:$8 sps:$4 sm:$0xff]  }
  0x6f   :  { %v104_v42 = vrot.slane %v91_v39, %v103_v37  ;;  %v96_v43 = vrot.slane %v91_v39, %v3381_v38  ;;  %v100_v44 = vrot.slane %v91_v39, %v3386_v40  ;;  %v108_v45 = vrot.slane %v91_v39, %v107_v41  ;;  %v2740_v11 = vld [vmem:[%s3956_s5 + $0x4] ss:$8 sps:$4 sm:$0xff]   ;;  %v2738_v12 = vld [vmem:[%s3956_s5] ss:$8 sps:$4 sm:$0xff]   ;;  %v2743_v13 = vld [vmem:[%s3956_s5 + $0xf4] ss:$8 sps:$4 sm:$0xff]  }
  0x70   :  { %v2741_v14 = vld [vmem:[%s3956_s5 + $0xf0] ss:$8 sps:$4 sm:$0xff]   ;;  %v2746_v15 = vld [vmem:[%s3956_s5 + $0xe4] ss:$8 sps:$4 sm:$0xff]   ;;  %v2744_v16 = vld [vmem:[%s3956_s5 + $0xe0] ss:$8 sps:$4 sm:$0xff]  }
  0x71   :  { %v2749_v17 = vld [vmem:[%s3956_s5 + $0xd4] ss:$8 sps:$4 sm:$0xff]   ;;  %v2747_v18 = vld [vmem:[%s3956_s5 + $0xd0] ss:$8 sps:$4 sm:$0xff]   ;;  %v2752_v19 = vld [vmem:[%s3956_s5 + $0xc4] ss:$8 sps:$4 sm:$0xff]  }
  0x72   :  { %v2750_v20 = vld [vmem:[%s3956_s5 + $0xc0] ss:$8 sps:$4 sm:$0xff]   ;;  %v2755_v21 = vld [vmem:[%s3956_s5 + $0xb4] ss:$8 sps:$4 sm:$0xff]   ;;  %v2753_v22 = vld [vmem:[%s3956_s5 + $0xb0] ss:$8 sps:$4 sm:$0xff]  }
  0x73   :  { %v2758_v23 = vld [vmem:[%s3956_s5 + $0xa4] ss:$8 sps:$4 sm:$0xff]   ;;  %v2756_v24 = vld [vmem:[%s3956_s5 + $0xa0] ss:$8 sps:$4 sm:$0xff]   ;;  %v2761_v25 = vld [vmem:[%s3956_s5 + $0x94] ss:$8 sps:$4 sm:$0xff]  }
  0x74   :  { %v2759_v26 = vld [vmem:[%s3956_s5 + $0x90] ss:$8 sps:$4 sm:$0xff]   ;;  %v2764_v27 = vld [vmem:[%s3956_s5 + $0x84] ss:$8 sps:$4 sm:$0xff]   ;;  %v2762_v28 = vld [vmem:[%s3956_s5 + $0x80] ss:$8 sps:$4 sm:$0xff]  }
  0x75   :  { %v2765_v29 = vld [vmem:[%s3958_s7 + $0x70] ss:$8 sps:$4 sm:$0xff]   ;;  %v2767_v30 = vld [vmem:[%s3958_s7 + $0x74] ss:$8 sps:$4 sm:$0xff]   ;;  %v2770_v31 = vld [vmem:[%s3958_s7 + $0x64] ss:$8 sps:$4 sm:$0xff]  }
  0x76   :  { %1294 = vmatprep.subr.bf16.mxu1 %v2767_v30  ;;  %v2768_v32 = vld [vmem:[%s3958_s7 + $0x60] ss:$8 sps:$4 sm:$0xff]   ;;  %v2773_v33 = vld [vmem:[%s3958_s7 + $0x54] ss:$8 sps:$4 sm:$0xff]   ;;  %v2771_v34 = vld [vmem:[%s3958_s7 + $0x50] ss:$8 sps:$4 sm:$0xff]  }
  0x77   :  { %v2776_v35 = vld [vmem:[%s3958_s7 + $0x44] ss:$8 sps:$4 sm:$0xff]   ;;  %v2774_v36 = vld [vmem:[%s3958_s7 + $0x40] ss:$8 sps:$4 sm:$0xff]   ;;  %v2779_v37 = vld [vmem:[%s3958_s7 + $0x34] ss:$8 sps:$4 sm:$0xff]  }
  0x78   :  { %v2777_v39 = vld [vmem:[%s3958_s7 + $0x30] ss:$8 sps:$4 sm:$0xff]   ;;  %v2782_v41 = vld [vmem:[%s3958_s7 + $0x24] ss:$8 sps:$4 sm:$0xff]   ;;  %v2833_v30 = vld [vmem:[%s3960_s9 + $0x14] ss:$8 sps:$4 sm:$0xff]  }
  0x79   :  { %s2268_s27 = sshll.u32 %s2996_s25, 4  ;;  %s2269_s27 = int_to_ptr.vmem [resolvable:$true] %s2268_s27 }
  0x7a   :  { %s2973_s26 = scalar_lea.vmem %s2269_s27, 32  ;;  %p2978_p1 = scmp.lt.s32.totalorder %s2269_s27, %s2269_s27 }
  0x7b   :  { %p2974_p0 = scmp.ne.s32.totalorder %s2269_s27, %s2973_s26  ;;  %p2979_p2 = scmp.lt.s32.totalorder %s2973_s26, %s2973_s26 }
  0x7d   :  { %p2980_p3 = por %p2979_p2, %p2978_p1 }
  0x7f   :  { %p2981_p4 = pnand %p2980_p3, %p2974_p0 }
  0xea   :  { %v307_v46 = vpop.f32.mrf.mxu0  ;;  %v348_v47 = vpop.f32.mrf.mxu1 }
  0xeb   :  { %v349_v48 = vadd.f32 %v348_v47, %v104_v42  ;;  %v308_v49 = vadd.f32 %v307_v46, %v96_v43  ;;  %v2780_v42 = vld [vmem:[%s3958_s7 + $0x20] ss:$8 sps:$4 sm:$0xff]   ;;  %v2785_v43 = vld [vmem:[%s3958_s7 + $0x14] ss:$8 sps:$4 sm:$0xff]  }
  0xec   :  { %v309_v50 = vpop.f32.mrf.mxu0  ;;  %v350_v51 = vpop.f32.mrf.mxu1  ;;  %v2786_v46 = vld [vmem:[%s3958_s7] ss:$8 sps:$4 sm:$0xff]   ;;  %v2791_v47 = vld [vmem:[%s3958_s7 + $0xf4] ss:$8 sps:$4 sm:$0xff]  }
  0xed   :  { %v310_v52 = vadd.f32 %v309_v50, %v100_v44  ;;  %v351_v53 = vadd.f32 %v350_v51, %v108_v45  ;;  %v422_v54 = vpack.c.bf16 %v349_v48, %v349_v48  ;;  %v420_v60 = vpack.c.bf16 %v308_v49, %v308_v49  ;;  %v2783_v44 = vld [vmem:[%s3958_s7 + $0x10] ss:$8 sps:$4 sm:$0xff]   ;;  %v2788_v45 = vld [vmem:[%s3958_s7 + $0x4] ss:$8 sps:$4 sm:$0xff]   ;;  %v2792_v50 = vld [vmem:[%s3958_s7 + $0xe0] ss:$8 sps:$4 sm:$0xff]  }
  0xee   :  { %v311_v55 = vpop.f32.mrf.mxu0  ;;  %v352_v56 = vpop.f32.mrf.mxu1  ;;  %v2789_v48 = vld [vmem:[%s3958_s7 + $0xf0] ss:$8 sps:$4 sm:$0xff]   ;;  %v2794_v49 = vld [vmem:[%s3958_s7 + $0xe4] ss:$8 sps:$4 sm:$0xff]   ;;  %v2797_v51 = vld [vmem:[%s3958_s7 + $0xd4] ss:$8 sps:$4 sm:$0xff]  }
  0xef   :  { %v421_v57 = vpack.c.bf16 %v310_v52, %v310_v52  ;;  %v423_v58 = vpack.c.bf16 %v351_v53, %v351_v53  ;;  %v2795_v52 = vld [vmem:[%s3958_s7 + $0xd0] ss:$8 sps:$4 sm:$0xff]   ;;  %v2800_v53 = vld [vmem:[%s3958_s7 + $0xc4] ss:$8 sps:$4 sm:$0xff]   ;;  %v2803_v55 = vld [vmem:[%s3958_s7 + $0xb4] ss:$8 sps:$4 sm:$0xff]  }
  0xf0   :  { %v312_v61 = vpop.f32.mrf.mxu0  ;;  %v353_v62 = vpop.f32.mrf.mxu1  ;;  %v2801_v56 = vld [vmem:[%s3958_s7 + $0xb0] ss:$8 sps:$4 sm:$0xff]  }
  0xf1   :  { %787 = vmatprep.mubr.bf16.mxu0 %v421_v57  ;;  %828 = vmatprep.mubr.bf16.mxu1 %v423_v58  ;;  %v2806_v57 = vld [vmem:[%s3958_s7 + $0xa4] ss:$8 sps:$4 sm:$0xff]   ;;  %v2804_v58 = vld [vmem:[%s3958_s7 + $0xa0] ss:$8 sps:$4 sm:$0xff]  }
  0xf2   :  { %788 = vmatmul.mubr.bf16.vlgmr.msra.gmra.mxu0 %v420_v60  ;;  %829 = vmatmul.mubr.bf16.vlgmr.msra.gmra.mxu1 %v422_v54  ;;  %v2798_v54 = vld [vmem:[%s3958_s7 + $0xc0] ss:$8 sps:$4 sm:$0xff]  }
  0xf3   :  { %1046 = vmatpush1.bf16.msra.mxu0 %v2717_v59  ;;  %1295 = vmatpush1.bf16.msra.mxu1 %v2765_v29  ;;  %v419_v59 = vld [vmem:[%s3955_s4] sm:$0x3] }
  0xf4   :  { %1047 = vmatprep.subr.bf16.mxu0 %v2722_v63  ;;  %1296 = vmatprep.subr.bf16.mxu1 %v2770_v31  ;;  %v428_v60 = vrot.slane %v419_v59, %v3381_v38  ;;  %v432_v61 = vrot.slane %v419_v59, %v3386_v40  ;;  %v2828_v29 = vld [vmem:[%s3960_s9 + $0x20] ss:$8 sps:$4 sm:$0xff]   ;;  %v2831_v31 = vld [vmem:[%s3960_s9 + $0x10] ss:$8 sps:$4 sm:$0xff]  }
  0xf7   :  { %1048 = vmatpush1.bf16.msra.mxu0 %v2720_v0  ;;  %1297 = vmatpush1.bf16.msra.mxu1 %v2768_v32  ;;  %v2836_v32 = vld [vmem:[%s3960_s9 + $0x4] ss:$8 sps:$4 sm:$0xff]  }
  0xf8   :  { %1049 = vmatprep.subr.bf16.mxu0 %v2725_v1  ;;  %1298 = vmatprep.subr.bf16.mxu1 %v2773_v33  ;;  %v2834_v33 = vld [vmem:[%s3960_s9] ss:$8 sps:$4 sm:$0xff]  }
  0xfb   :  { %1050 = vmatpush1.bf16.msra.mxu0 %v2723_v2  ;;  %1299 = vmatpush1.bf16.msra.mxu1 %v2771_v34  ;;  %v2839_v34 = vld [vmem:[%s3960_s9 + $0xf4] ss:$8 sps:$4 sm:$0xff]  }
  0xfc   :  { %1051 = vmatprep.subr.bf16.mxu0 %v2728_v3  ;;  %1300 = vmatprep.subr.bf16.mxu1 %v2776_v35  ;;  %v2837_v35 = vld [vmem:[%s3960_s9 + $0xf0] ss:$8 sps:$4 sm:$0xff]  }
  0xff   :  { %1052 = vmatpush1.bf16.msra.mxu0 %v2726_v4  ;;  %1301 = vmatpush1.bf16.msra.mxu1 %v2774_v36  ;;  %v2842_v36 = vld [vmem:[%s3960_s9 + $0xe4] ss:$8 sps:$4 sm:$0xff]  }
 0x100   :  { %1053 = vmatprep.subr.bf16.mxu0 %v2731_v5  ;;  %1302 = vmatprep.subr.bf16.mxu1 %v2779_v37  ;;  %v2840_v37 = vld [vmem:[%s3960_s9 + $0xe0] ss:$8 sps:$4 sm:$0xff]  }
 0x103   :  { %1054 = vmatpush1.bf16.msra.mxu0 %v2729_v6  ;;  %1303 = vmatpush1.bf16.msra.mxu1 %v2777_v39  ;;  %v2845_v39 = vld [vmem:[%s3960_s9 + $0xd4] ss:$8 sps:$4 sm:$0xff]  }
 0x104   :  { %1055 = vmatprep.subr.bf16.mxu0 %v2734_v7  ;;  %1304 = vmatprep.subr.bf16.mxu1 %v2782_v41  ;;  %v2843_v41 = vld [vmem:[%s3960_s9 + $0xd0] ss:$8 sps:$4 sm:$0xff]  }
 0x107   :  { %1056 = vmatpush1.bf16.msra.mxu0 %v2732_v8  ;;  %1305 = vmatpush1.bf16.msra.mxu1 %v2780_v42  ;;  %v2848_v42 = vld [vmem:[%s3960_s9 + $0xc4] ss:$8 sps:$4 sm:$0xff]  }
 0x108   :  { %1057 = vmatprep.subr.bf16.mxu0 %v2737_v9  ;;  %1306 = vmatprep.subr.bf16.mxu1 %v2785_v43  ;;  %v2846_v43 = vld [vmem:[%s3960_s9 + $0xc0] ss:$8 sps:$4 sm:$0xff]  }
 0x10b   :  { %1058 = vmatpush1.bf16.msra.mxu0 %v2735_v10  ;;  %1307 = vmatpush1.bf16.msra.mxu1 %v2783_v44  ;;  %v2851_v44 = vld [vmem:[%s3960_s9 + $0xb4] ss:$8 sps:$4 sm:$0xff]  }
 0x10c   :  { %1059 = vmatprep.subr.bf16.mxu0 %v2740_v11  ;;  %1308 = vmatprep.subr.bf16.mxu1 %v2788_v45  ;;  %v2849_v45 = vld [vmem:[%s3960_s9 + $0xb0] ss:$8 sps:$4 sm:$0xff]  }
 0x10f   :  { %1060 = vmatpush1.bf16.msra.mxu0 %v2738_v12  ;;  %1309 = vmatpush1.bf16.msra.mxu1 %v2786_v46  ;;  %v2854_v46 = vld [vmem:[%s3960_s9 + $0xa4] ss:$8 sps:$4 sm:$0xff]  }
 0x110   :  { %1061 = vmatprep.subr.bf16.mxu0 %v2743_v13  ;;  %1310 = vmatprep.subr.bf16.mxu1 %v2791_v47  ;;  %v2852_v47 = vld [vmem:[%s3960_s9 + $0xa0] ss:$8 sps:$4 sm:$0xff]  }
 0x113   :  { %1062 = vmatpush2.bf16.msra.mxu0 %v2741_v14  ;;  %1311 = vmatpush2.bf16.msra.mxu1 %v2789_v48  ;;  %v2809_v14 = vld [vmem:[%s3958_s7 + $0x94] ss:$8 sps:$4 sm:$0xff]   ;;  %v871_v48 = vld [vmem:[%s3957_s6] sm:$0x3] }
 0x114   :  { %1063 = vmatprep.subr.bf16.mxu0 %v2746_v15  ;;  %1312 = vmatprep.subr.bf16.mxu1 %v2794_v49  ;;  %v2807_v15 = vld [vmem:[%s3958_s7 + $0x90] ss:$8 sps:$4 sm:$0xff]   ;;  %v878_v49 = vrot.slane %v871_v48, %v3381_v38 }
 0x117   :  { %1064 = vmatpush2.bf16.msra.mxu0 %v2744_v16  ;;  %1313 = vmatpush2.bf16.msra.mxu1 %v2792_v50  ;;  %v2812_v16 = vld [vmem:[%s3958_s7 + $0x84] ss:$8 sps:$4 sm:$0xff]   ;;  %v882_v50 = vrot.slane %v871_v48, %v3386_v40  ;;  %v2909_v48 = vld [vmem:[%s3964_s13 + $0x70] ss:$8 sps:$4 sm:$0xff]  }
 0x118   :  { %1065 = vmatprep.subr.bf16.mxu0 %v2749_v17  ;;  %1314 = vmatprep.subr.bf16.mxu1 %v2797_v51  ;;  %v2810_v17 = vld [vmem:[%s3958_s7 + $0x80] ss:$8 sps:$4 sm:$0xff]  }
 0x11b   :  { %1066 = vmatpush2.bf16.msra.mxu0 %v2747_v18  ;;  %1315 = vmatpush2.bf16.msra.mxu1 %v2795_v52  ;;  %v2813_v18 = vld [vmem:[%s3960_s9 + $0x70] ss:$8 sps:$4 sm:$0xff]  }
 0x11c   :  { %1067 = vmatprep.subr.bf16.mxu0 %v2752_v19  ;;  %1316 = vmatprep.subr.bf16.mxu1 %v2800_v53  ;;  %v2815_v19 = vld [vmem:[%s3960_s9 + $0x74] ss:$8 sps:$4 sm:$0xff]  }
 0x11f   :  { %1068 = vmatpush2.bf16.msra.mxu0 %v2750_v20  ;;  %1317 = vmatpush2.bf16.msra.mxu1 %v2798_v54  ;;  %v2818_v20 = vld [vmem:[%s3960_s9 + $0x64] ss:$8 sps:$4 sm:$0xff]  }
 0x120   :  { %1069 = vmatprep.subr.bf16.mxu0 %v2755_v21  ;;  %1318 = vmatprep.subr.bf16.mxu1 %v2803_v55  ;;  %v2816_v21 = vld [vmem:[%s3960_s9 + $0x60] ss:$8 sps:$4 sm:$0xff]  }
 0x123   :  { %1070 = vmatpush2.bf16.msra.mxu0 %v2753_v22  ;;  %1319 = vmatpush2.bf16.msra.mxu1 %v2801_v56  ;;  %v2821_v22 = vld [vmem:[%s3960_s9 + $0x54] ss:$8 sps:$4 sm:$0xff]  }
 0x124   :  { %1071 = vmatprep.subr.bf16.mxu0 %v2758_v23  ;;  %1320 = vmatprep.subr.bf16.mxu1 %v2806_v57  ;;  %v2819_v23 = vld [vmem:[%s3960_s9 + $0x50] ss:$8 sps:$4 sm:$0xff]  }
 0x127   :  { %1072 = vmatpush2.bf16.msra.mxu0 %v2756_v24  ;;  %1321 = vmatpush2.bf16.msra.mxu1 %v2804_v58  ;;  %v2824_v24 = vld [vmem:[%s3960_s9 + $0x44] ss:$8 sps:$4 sm:$0xff]  }
 0x128   :  { %1073 = vmatprep.subr.bf16.mxu0 %v2761_v25  ;;  %1322 = vmatprep.subr.bf16.mxu1 %v2809_v14  ;;  %v2822_v25 = vld [vmem:[%s3960_s9 + $0x40] ss:$8 sps:$4 sm:$0xff]   ;;  %v2879_v14 = vld [vmem:[%s3962_s11 + $0x10] ss:$8 sps:$4 sm:$0xff]  }
 0x12b   :  { %1074 = vmatpush2.bf16.msra.mxu0 %v2759_v26  ;;  %1323 = vmatpush2.bf16.msra.mxu1 %v2807_v15  ;;  %v2827_v26 = vld [vmem:[%s3960_s9 + $0x34] ss:$8 sps:$4 sm:$0xff]   ;;  %v2884_v15 = vld [vmem:[%s3962_s11 + $0x4] ss:$8 sps:$4 sm:$0xff]  }
 0x12c   :  { %1075 = vmatprep.subr.bf16.mxu0 %v2764_v27  ;;  %1324 = vmatprep.subr.bf16.mxu1 %v2812_v16  ;;  %v2825_v27 = vld [vmem:[%s3960_s9 + $0x30] ss:$8 sps:$4 sm:$0xff]   ;;  %v2882_v16 = vld [vmem:[%s3962_s11] ss:$8 sps:$4 sm:$0xff]  }
 0x12f   :  { %1076 = vmatpush2.bf16.msra.mxu0 %v2762_v28  ;;  %1325 = vmatpush2.bf16.msra.mxu1 %v2810_v17  ;;  %v2830_v28 = vld [vmem:[%s3960_s9 + $0x24] ss:$8 sps:$4 sm:$0xff]   ;;  %v2887_v17 = vld [vmem:[%s3962_s11 + $0xf4] ss:$8 sps:$4 sm:$0xff]  }
 0x130   :  { %1543 = vmatprep.subr.bf16.mxu0 %v2815_v19  ;;  %v2890_v19 = vld [vmem:[%s3962_s11 + $0xe4] ss:$8 sps:$4 sm:$0xff]  }
 0x1b2   :  { %v789_v62 = vpop.f32.mrf.mxu0  ;;  %v830_v63 = vpop.f32.mrf.mxu1 }
 0x1b3   :  { %v790_v0 = vadd.f32 %v789_v62, %v428_v60  ;;  %v2855_v62 = vld [vmem:[%s3960_s9 + $0x90] ss:$8 sps:$4 sm:$0xff]  }
 0x1b4   :  { %v791_v1 = vpop.f32.mrf.mxu0  ;;  %v832_v2 = vpop.f32.mrf.mxu1 }
 0x1b5   :  { %v831_v3 = vadd.f32 %v830_v63, %v790_v0  ;;  %v792_v4 = vadd.f32 %v791_v1, %v432_v61  ;;  %v2857_v61 = vld [vmem:[%s3960_s9 + $0x94] ss:$8 sps:$4 sm:$0xff]   ;;  %v2860_v63 = vld [vmem:[%s3960_s9 + $0x84] ss:$8 sps:$4 sm:$0xff]   ;;  %v2858_v0 = vld [vmem:[%s3960_s9 + $0x80] ss:$8 sps:$4 sm:$0xff]  }
 0x1b6   :  { %v793_v5 = vpop.f32.mrf.mxu0  ;;  %v834_v6 = vpop.f32.mrf.mxu1  ;;  %v2861_v1 = vld [vmem:[%s3962_s11 + $0x70] ss:$8 sps:$4 sm:$0xff]  }
 0x1b7   :  { %v833_v7 = vadd.f32 %v832_v2, %v792_v4  ;;  %v837_v8 = vmax.f32 %v831_v3, 0.0  ;;  %v2863_v2 = vld [vmem:[%s3962_s11 + $0x74] ss:$8 sps:$4 sm:$0xff]   ;;  %v2866_v3 = vld [vmem:[%s3962_s11 + $0x64] ss:$8 sps:$4 sm:$0xff]  }
 0x1b8   :  { %v794_v9 = vpop.f32.mrf.mxu0  ;;  %v835_v10 = vpop.f32.mrf.mxu1  ;;  %1792 = vmatprep.subr.bf16.mxu1 %v2863_v2  ;;  %v2864_v4 = vld [vmem:[%s3962_s11 + $0x60] ss:$8 sps:$4 sm:$0xff]   ;;  %v2869_v5 = vld [vmem:[%s3962_s11 + $0x54] ss:$8 sps:$4 sm:$0xff]   ;;  %v2867_v6 = vld [vmem:[%s3962_s11 + $0x50] ss:$8 sps:$4 sm:$0xff]  }
 0x1b9   :  { %v838_v11 = vmax.f32 %v833_v7, 0.0  ;;  %v872_v13 = vpack.c.bf16 %v837_v8, %v837_v8  ;;  %v2872_v7 = vld [vmem:[%s3962_s11 + $0x44] ss:$8 sps:$4 sm:$0xff]   ;;  %v2870_v8 = vld [vmem:[%s3962_s11 + $0x40] ss:$8 sps:$4 sm:$0xff]  }
 0x1ba   :  { %v2875_v9 = vld [vmem:[%s3962_s11 + $0x34] ss:$8 sps:$4 sm:$0xff]   ;;  %v2873_v10 = vld [vmem:[%s3962_s11 + $0x30] ss:$8 sps:$4 sm:$0xff]   ;;  %v2938_v2 = vld [vmem:[%s3964_s13 + $0xe4] ss:$8 sps:$4 sm:$0xff]  }
 0x1bb   :  { %v873_v12 = vpack.c.bf16 %v838_v11, %v838_v11  ;;  %v2878_v11 = vld [vmem:[%s3962_s11 + $0x24] ss:$8 sps:$4 sm:$0xff]  }
 0x1bd   :  { %1077 = vmatprep.mubr.bf16.mxu0 %v873_v12  ;;  %v2876_v12 = vld [vmem:[%s3962_s11 + $0x20] ss:$8 sps:$4 sm:$0xff]  }
 0x1be   :  { %1078 = vmatmul.mubr.bf16.vlgmr.msra.gmra.mxu0 %v872_v13  ;;  %v2881_v13 = vld [vmem:[%s3962_s11 + $0x14] ss:$8 sps:$4 sm:$0xff]  }
 0x1bf   :  { %1544 = vmatpush1.bf16.msra.mxu0 %v2813_v18  ;;  %v2885_v18 = vld [vmem:[%s3962_s11 + $0xf0] ss:$8 sps:$4 sm:$0xff]  }
 0x1c0   :  { %1545 = vmatprep.subr.bf16.mxu0 %v2818_v20  ;;  %v2888_v20 = vld [vmem:[%s3962_s11 + $0xe0] ss:$8 sps:$4 sm:$0xff]  }
 0x1c3   :  { %1546 = vmatpush1.bf16.msra.mxu0 %v2816_v21  ;;  %v2893_v21 = vld [vmem:[%s3962_s11 + $0xd4] ss:$8 sps:$4 sm:$0xff]  }
 0x1c4   :  { %1547 = vmatprep.subr.bf16.mxu0 %v2821_v22  ;;  %v2891_v22 = vld [vmem:[%s3962_s11 + $0xd0] ss:$8 sps:$4 sm:$0xff]  }
 0x1c7   :  { %1548 = vmatpush1.bf16.msra.mxu0 %v2819_v23  ;;  %v2896_v23 = vld [vmem:[%s3962_s11 + $0xc4] ss:$8 sps:$4 sm:$0xff]  }
 0x1c8   :  { %1549 = vmatprep.subr.bf16.mxu0 %v2824_v24  ;;  %v2894_v24 = vld [vmem:[%s3962_s11 + $0xc0] ss:$8 sps:$4 sm:$0xff]  }
 0x1cb   :  { %1550 = vmatpush1.bf16.msra.mxu0 %v2822_v25  ;;  %v2899_v25 = vld [vmem:[%s3962_s11 + $0xb4] ss:$8 sps:$4 sm:$0xff]  }
 0x1cc   :  { %1551 = vmatprep.subr.bf16.mxu0 %v2827_v26  ;;  %v2897_v26 = vld [vmem:[%s3962_s11 + $0xb0] ss:$8 sps:$4 sm:$0xff]  }
 0x1cf   :  { %1552 = vmatpush1.bf16.msra.mxu0 %v2825_v27  ;;  %v2902_v27 = vld [vmem:[%s3962_s11 + $0xa4] ss:$8 sps:$4 sm:$0xff]  }
 0x1d0   :  { %1553 = vmatprep.subr.bf16.mxu0 %v2830_v28  ;;  %v2900_v28 = vld [vmem:[%s3962_s11 + $0xa0] ss:$8 sps:$4 sm:$0xff]  }
 0x1d3   :  { %1554 = vmatpush1.bf16.msra.mxu0 %v2828_v29  ;;  %v1120_v29 = vld [vmem:[%s3959_s8] sm:$0x3] }
 0x1d4   :  { %1555 = vmatprep.subr.bf16.mxu0 %v2833_v30  ;;  %v1127_v30 = vrot.slane %v1120_v29, %v3381_v38 }
 0x1d7   :  { %1556 = vmatpush1.bf16.msra.mxu0 %v2831_v31  ;;  %v1131_v31 = vrot.slane %v1120_v29, %v3386_v40  ;;  %v2957_v29 = vld [vmem:[%s3966_s15 + $0x78] sm:$0xff]  }
 0x1d8   :  { %1557 = vmatprep.subr.bf16.mxu0 %v2836_v32 }
 0x1db   :  { %1558 = vmatpush1.bf16.msra.mxu0 %v2834_v33 }
 0x1dc   :  { %1559 = vmatprep.subr.bf16.mxu0 %v2839_v34 }
 0x1df   :  { %1560 = vmatpush2.bf16.msra.mxu0 %v2837_v35 }
 0x1e0   :  { %1561 = vmatprep.subr.bf16.mxu0 %v2842_v36 }
 0x1e3   :  { %1562 = vmatpush2.bf16.msra.mxu0 %v2840_v37 }
 0x1e4   :  { %1563 = vmatprep.subr.bf16.mxu0 %v2845_v39 }
 0x1e7   :  { %1564 = vmatpush2.bf16.msra.mxu0 %v2843_v41 }
 0x1e8   :  { %1565 = vmatprep.subr.bf16.mxu0 %v2848_v42 }
 0x1eb   :  { %1566 = vmatpush2.bf16.msra.mxu0 %v2846_v43 }
 0x1ec   :  { %1567 = vmatprep.subr.bf16.mxu0 %v2851_v44  ;;  %v2905_v44 = vld [vmem:[%s3962_s11 + $0x94] ss:$8 sps:$4 sm:$0xff]  }
 0x1ef   :  { %1568 = vmatpush2.bf16.msra.mxu0 %v2849_v45  ;;  %v2903_v45 = vld [vmem:[%s3962_s11 + $0x90] ss:$8 sps:$4 sm:$0xff]  }
 0x1f0   :  { %1569 = vmatprep.subr.bf16.mxu0 %v2854_v46  ;;  %v2908_v46 = vld [vmem:[%s3962_s11 + $0x84] ss:$8 sps:$4 sm:$0xff]  }
 0x1f3   :  { %1570 = vmatpush2.bf16.msra.mxu0 %v2852_v47  ;;  %v2906_v47 = vld [vmem:[%s3962_s11 + $0x80] ss:$8 sps:$4 sm:$0xff]  }
 0x1f4   :  { %1571 = vmatprep.subr.bf16.mxu0 %v2857_v61  ;;  %v2927_v61 = vld [vmem:[%s3964_s13 + $0x10] ss:$8 sps:$4 sm:$0xff]  }
 0x1f7   :  { %1572 = vmatpush2.bf16.msra.mxu0 %v2855_v62  ;;  %v2932_v62 = vld [vmem:[%s3964_s13 + $0x4] ss:$8 sps:$4 sm:$0xff]  }
 0x1f8   :  { %1573 = vmatprep.subr.bf16.mxu0 %v2860_v63  ;;  %v2930_v63 = vld [vmem:[%s3964_s13] ss:$8 sps:$4 sm:$0xff]  }
 0x1fb   :  { %1574 = vmatpush2.bf16.msra.mxu0 %v2858_v0  ;;  %v2935_v0 = vld [vmem:[%s3964_s13 + $0xf4] ss:$8 sps:$4 sm:$0xff]  }
 0x27e   :  { %v1079_v51 = vpop.f32.mrf.mxu0 }
 0x27f   :  { %v1080_v52 = vadd.f32 %v1079_v51, %v878_v49  ;;  %v2911_v49 = vld [vmem:[%s3964_s13 + $0x74] ss:$8 sps:$4 sm:$0xff]   ;;  %v2912_v51 = vld [vmem:[%s3964_s13 + $0x60] ss:$8 sps:$4 sm:$0xff]  }
 0x280   :  { %v1081_v53 = vpop.f32.mrf.mxu0  ;;  %2041 = vmatprep.subr.bf16.mxu0 %v2911_v49 }
 0x281   :  { %v1082_v54 = vadd.f32 %v1081_v53, %v882_v50  ;;  %v1086_v55 = vmax.f32 %v1080_v52, 0.0  ;;  %v2914_v50 = vld [vmem:[%s3964_s13 + $0x64] ss:$8 sps:$4 sm:$0xff]   ;;  %v2917_v52 = vld [vmem:[%s3964_s13 + $0x54] ss:$8 sps:$4 sm:$0xff]  }
 0x282   :  { %v1083_v56 = vpop.f32.mrf.mxu0  ;;  %v2915_v53 = vld [vmem:[%s3964_s13 + $0x50] ss:$8 sps:$4 sm:$0xff]  }
 0x283   :  { %v1087_v57 = vmax.f32 %v1082_v54, 0.0  ;;  %v1121_v60 = vpack.c.bf16 %v1086_v55, %v1086_v55  ;;  %v2920_v54 = vld [vmem:[%s3964_s13 + $0x44] ss:$8 sps:$4 sm:$0xff]   ;;  %v2918_v55 = vld [vmem:[%s3964_s13 + $0x40] ss:$8 sps:$4 sm:$0xff]  }
 0x284   :  { %v1084_v58 = vpop.f32.mrf.mxu0  ;;  %v2923_v56 = vld [vmem:[%s3964_s13 + $0x34] ss:$8 sps:$4 sm:$0xff]  }
 0x285   :  { %v1122_v59 = vpack.c.bf16 %v1087_v57, %v1087_v57  ;;  %v2921_v57 = vld [vmem:[%s3964_s13 + $0x30] ss:$8 sps:$4 sm:$0xff]   ;;  %v2926_v58 = vld [vmem:[%s3964_s13 + $0x24] ss:$8 sps:$4 sm:$0xff]  }
 0x287   :  { %1326 = vmatprep.mubr.bf16.mxu1 %v1122_v59  ;;  %v2924_v59 = vld [vmem:[%s3964_s13 + $0x20] ss:$8 sps:$4 sm:$0xff]  }
 0x288   :  { %1327 = vmatmul.mubr.bf16.vlgmr.msra.gmra.mxu1 %v1121_v60  ;;  %v2929_v60 = vld [vmem:[%s3964_s13 + $0x14] ss:$8 sps:$4 sm:$0xff]  }
 0x289   :  { %1793 = vmatpush1.bf16.msra.mxu1 %v2861_v1  ;;  %v2933_v1 = vld [vmem:[%s3964_s13 + $0xf0] ss:$8 sps:$4 sm:$0xff]  }
 0x28a   :  { %1794 = vmatprep.subr.bf16.mxu1 %v2866_v3  ;;  %v2936_v3 = vld [vmem:[%s3964_s13 + $0xe0] ss:$8 sps:$4 sm:$0xff]  }
 0x28d   :  { %1795 = vmatpush1.bf16.msra.mxu1 %v2864_v4  ;;  %v2941_v4 = vld [vmem:[%s3964_s13 + $0xd4] ss:$8 sps:$4 sm:$0xff]  }
 0x28e   :  { %1796 = vmatprep.subr.bf16.mxu1 %v2869_v5  ;;  %v2939_v5 = vld [vmem:[%s3964_s13 + $0xd0] ss:$8 sps:$4 sm:$0xff]  }
 0x291   :  { %1797 = vmatpush1.bf16.msra.mxu1 %v2867_v6  ;;  %v2944_v6 = vld [vmem:[%s3964_s13 + $0xc4] ss:$8 sps:$4 sm:$0xff]  }
 0x292   :  { %1798 = vmatprep.subr.bf16.mxu1 %v2872_v7  ;;  %v2942_v7 = vld [vmem:[%s3964_s13 + $0xc0] ss:$8 sps:$4 sm:$0xff]  }
 0x295   :  { %1799 = vmatpush1.bf16.msra.mxu1 %v2870_v8  ;;  %v2947_v8 = vld [vmem:[%s3964_s13 + $0xb4] ss:$8 sps:$4 sm:$0xff]  }
 0x296   :  { %1800 = vmatprep.subr.bf16.mxu1 %v2875_v9  ;;  %v2945_v9 = vld [vmem:[%s3964_s13 + $0xb0] ss:$8 sps:$4 sm:$0xff]  }
 0x299   :  { %1801 = vmatpush1.bf16.msra.mxu1 %v2873_v10  ;;  %v2950_v10 = vld [vmem:[%s3964_s13 + $0xa4] ss:$8 sps:$4 sm:$0xff]  }
 0x29a   :  { %1802 = vmatprep.subr.bf16.mxu1 %v2878_v11  ;;  %v2948_v11 = vld [vmem:[%s3964_s13 + $0xa0] ss:$8 sps:$4 sm:$0xff]  }
 0x29d   :  { %1803 = vmatpush1.bf16.msra.mxu1 %v2876_v12  ;;  %v1369_v12 = vld [vmem:[%s3961_s10] sm:$0x3] }
 0x29e   :  { %1804 = vmatprep.subr.bf16.mxu1 %v2881_v13  ;;  %v1376_v13 = vrot.slane %v1369_v12, %v3381_v38 }
 0x2a1   :  { %1805 = vmatpush1.bf16.msra.mxu1 %v2879_v14  ;;  %v1380_v14 = vrot.slane %v1369_v12, %v3386_v40 }
 0x2a2   :  { %1806 = vmatprep.subr.bf16.mxu1 %v2884_v15 }
 0x2a5   :  { %1807 = vmatpush1.bf16.msra.mxu1 %v2882_v16 }
 0x2a6   :  { %1808 = vmatprep.subr.bf16.mxu1 %v2887_v17 }
 0x2a9   :  { %1809 = vmatpush2.bf16.msra.mxu1 %v2885_v18 }
 0x2aa   :  { %1810 = vmatprep.subr.bf16.mxu1 %v2890_v19 }
 0x2ad   :  { %1811 = vmatpush2.bf16.msra.mxu1 %v2888_v20 }
 0x2ae   :  { %1812 = vmatprep.subr.bf16.mxu1 %v2893_v21 }
 0x2b1   :  { %1813 = vmatpush2.bf16.msra.mxu1 %v2891_v22 }
 0x2b2   :  { %1814 = vmatprep.subr.bf16.mxu1 %v2896_v23 }
 0x2b5   :  { %1815 = vmatpush2.bf16.msra.mxu1 %v2894_v24 }
 0x2b6   :  { %1816 = vmatprep.subr.bf16.mxu1 %v2899_v25  ;;  %v2953_v25 = vld [vmem:[%s3964_s13 + $0x94] ss:$8 sps:$4 sm:$0xff]  }
 0x2b9   :  { %1817 = vmatpush2.bf16.msra.mxu1 %v2897_v26  ;;  %v2951_v26 = vld [vmem:[%s3964_s13 + $0x90] ss:$8 sps:$4 sm:$0xff]  }
 0x2ba   :  { %1818 = vmatprep.subr.bf16.mxu1 %v2902_v27  ;;  %v2956_v27 = vld [vmem:[%s3964_s13 + $0x84] ss:$8 sps:$4 sm:$0xff]  }
 0x2bd   :  { %1819 = vmatpush2.bf16.msra.mxu1 %v2900_v28  ;;  %v2954_v28 = vld [vmem:[%s3964_s13 + $0x80] ss:$8 sps:$4 sm:$0xff]  }
 0x2be   :  { %1820 = vmatprep.subr.bf16.mxu1 %v2905_v44 }
 0x2c1   :  { %1821 = vmatpush2.bf16.msra.mxu1 %v2903_v45 }
 0x2c2   :  { %1822 = vmatprep.subr.bf16.mxu1 %v2908_v46 }
 0x2c5   :  { %1823 = vmatpush2.bf16.msra.mxu1 %v2906_v47 }
 0x2c6   :  { %2549 = vmatprep.subr.bf16.mxu1 %v2957_v29 }
 0x348   :  { %v1328_v32 = vpop.f32.mrf.mxu1 }
 0x349   :  { %v1329_v33 = vadd.f32 %v1328_v32, %v1127_v30  ;;  %v2958_v30 = vld [vmem:[%s3966_s15 + $0x38] sm:$0xff]   ;;  %v2960_v32 = vld [vmem:[%s3966_s15 + $0x30] sm:$0xff]  }
 0x34a   :  { %v1330_v34 = vpop.f32.mrf.mxu1 }
 0x34b   :  { %v1331_v35 = vadd.f32 %v1330_v34, %v1131_v31  ;;  %v1335_v36 = vmax.f32 %v1329_v33, 0.0  ;;  %v2959_v31 = vld [vmem:[%s3966_s15 + $0x70] sm:$0xff]   ;;  %v2961_v33 = vld [vmem:[%s3966_s15 + $0x68] sm:$0xff]  }
 0x34c   :  { %v1332_v37 = vpop.f32.mrf.mxu1  ;;  %v2962_v34 = vld [vmem:[%s3966_s15 + $0x28] sm:$0xff]  }
 0x34d   :  { %v1336_v39 = vmax.f32 %v1331_v35, 0.0  ;;  %v1370_v43 = vpack.c.bf16 %v1335_v36, %v1335_v36  ;;  %v2963_v35 = vld [vmem:[%s3966_s15 + $0x60] sm:$0xff]   ;;  %v2965_v37 = vld [vmem:[%s3966_s15 + $0x58] sm:$0xff]  }
 0x34e   :  { %v1333_v41 = vpop.f32.mrf.mxu1  ;;  %v2964_v36 = vld [vmem:[%s3966_s15 + $0x20] sm:$0xff]  }
 0x34f   :  { %v1371_v42 = vpack.c.bf16 %v1336_v39, %v1336_v39  ;;  %v2966_v39 = vld [vmem:[%s3966_s15 + $0x18] sm:$0xff]   ;;  %v2967_v41 = vld [vmem:[%s3966_s15 + $0x50] sm:$0xff]  }
 0x351   :  { %1575 = vmatprep.mubr.bf16.mxu0 %v1371_v42  ;;  %v2968_v42 = vld [vmem:[%s3966_s15 + $0x10] sm:$0xff]  }
 0x352   :  { %1576 = vmatmul.mubr.bf16.vlgmr.msra.gmra.mxu0 %v1370_v43  ;;  %v1618_v43 = vld [vmem:[%s3963_s12] sm:$0x3] }
 0x353   :  { %2042 = vmatpush1.bf16.msra.mxu0 %v2909_v48  ;;  %v1625_v44 = vrot.slane %v1618_v43, %v3381_v38  ;;  %v1629_v45 = vrot.slane %v1618_v43, %v3386_v40 }
 0x354   :  { %2043 = vmatprep.subr.bf16.mxu0 %v2914_v50 }
 0x357   :  { %2044 = vmatpush1.bf16.msra.mxu0 %v2912_v51 }
 0x358   :  { %2045 = vmatprep.subr.bf16.mxu0 %v2917_v52 }
 0x35b   :  { %2046 = vmatpush1.bf16.msra.mxu0 %v2915_v53 }
 0x35c   :  { %2047 = vmatprep.subr.bf16.mxu0 %v2920_v54 }
 0x35f   :  { %2048 = vmatpush1.bf16.msra.mxu0 %v2918_v55 }
 0x360   :  { %2049 = vmatprep.subr.bf16.mxu0 %v2923_v56  ;;  %v2969_v56 = vld [vmem:[%s3966_s15 + $0x48] sm:$0xff]  }
 0x363   :  { %2050 = vmatpush1.bf16.msra.mxu0 %v2921_v57  ;;  %v2970_v57 = vld [vmem:[%s3966_s15 + $0x8] sm:$0xff]  }
 0x364   :  { %2051 = vmatprep.subr.bf16.mxu0 %v2926_v58  ;;  %v2971_v58 = vld [vmem:[%s3966_s15 + $0x40] sm:$0xff]  }
 0x367   :  { %2052 = vmatpush1.bf16.msra.mxu0 %v2924_v59  ;;  %v2972_v59 = vld [vmem:[%s3966_s15] sm:$0xff]  }
 0x368   :  { %2053 = vmatprep.subr.bf16.mxu0 %v2929_v60  ;;  %v1867_v60 = vld [vmem:[%s3965_s14] sm:$0x3] }
 0x36b   :  { %2054 = vmatpush1.bf16.msra.mxu0 %v2927_v61  ;;  %v1874_v61 = vrot.slane %v1867_v60, %v3381_v38  ;;  %v2532_v38 = vld [vmem:[%s3967_s16] ss:$0 sm:$0xff] }
 0x36c   :  { %2055 = vmatprep.subr.bf16.mxu0 %v2932_v62  ;;  %v1878_v62 = vrot.slane %v1867_v60, %v3386_v40 }
 0x36f   :  { %2056 = vmatpush1.bf16.msra.mxu0 %v2930_v63 }
 0x370   :  { %2057 = vmatprep.subr.bf16.mxu0 %v2935_v0 }
 0x373   :  { %2058 = vmatpush2.bf16.msra.mxu0 %v2933_v1 }
 0x374   :  { %2059 = vmatprep.subr.bf16.mxu0 %v2938_v2 }
 0x377   :  { %2060 = vmatpush2.bf16.msra.mxu0 %v2936_v3 }
 0x378   :  { %2061 = vmatprep.subr.bf16.mxu0 %v2941_v4 }
 0x37b   :  { %2062 = vmatpush2.bf16.msra.mxu0 %v2939_v5 }
 0x37c   :  { %2063 = vmatprep.subr.bf16.mxu0 %v2944_v6 }
 0x37f   :  { %2064 = vmatpush2.bf16.msra.mxu0 %v2942_v7 }
 0x380   :  { %2065 = vmatprep.subr.bf16.mxu0 %v2947_v8 }
 0x383   :  { %2066 = vmatpush2.bf16.msra.mxu0 %v2945_v9 }
 0x384   :  { %2067 = vmatprep.subr.bf16.mxu0 %v2950_v10 }
 0x387   :  { %2068 = vmatpush2.bf16.msra.mxu0 %v2948_v11 }
 0x388   :  { %2069 = vmatprep.subr.bf16.mxu0 %v2953_v25 }
 0x38b   :  { %2070 = vmatpush2.bf16.msra.mxu0 %v2951_v26 }
 0x38c   :  { %2071 = vmatprep.subr.bf16.mxu0 %v2956_v27 }
 0x38f   :  { %2072 = vmatpush2.bf16.msra.mxu0 %v2954_v28 }
 0x412   :  { %v1577_v15 = vpop.f32.mrf.mxu0 }
 0x413   :  { %v1578_v16 = vadd.f32 %v1577_v15, %v1376_v13 }
 0x414   :  { %v1579_v17 = vpop.f32.mrf.mxu0 }
 0x415   :  { %v1580_v18 = vadd.f32 %v1579_v17, %v1380_v14  ;;  %v1584_v19 = vmax.f32 %v1578_v16, 0.0 }
 0x416   :  { %v1581_v20 = vpop.f32.mrf.mxu0 }
 0x417   :  { %v1585_v21 = vmax.f32 %v1580_v18, 0.0  ;;  %v1619_v24 = vpack.c.bf16 %v1584_v19, %v1584_v19 }
 0x418   :  { %v1582_v22 = vpop.f32.mrf.mxu0 }
 0x419   :  { %v1620_v23 = vpack.c.bf16 %v1585_v21, %v1585_v21 }
 0x41b   :  { %1824 = vmatprep.mubr.bf16.mxu1 %v1620_v23 }
 0x41c   :  { %1825 = vmatmul.mubr.bf16.vlgmr.msra.gmra.mxu1 %v1619_v24 }
 0x41d   :  { %2550 = vmatpush3.bf16.msra.mxu1 %v2958_v30 }
 0x41e   :  { %2551 = vmatprep.subr.bf16.mxu1 %v2959_v31 }
 0x421   :  { %2552 = vmatpush3.bf16.msra.mxu1 %v2960_v32 }
 0x422   :  { %2553 = vmatprep.subr.bf16.mxu1 %v2961_v33 }
 0x425   :  { %2554 = vmatpush3.bf16.msra.mxu1 %v2962_v34 }
 0x426   :  { %2555 = vmatprep.subr.bf16.mxu1 %v2963_v35 }
 0x429   :  { %2556 = vmatpush3.bf16.msra.mxu1 %v2964_v36 }
 0x42a   :  { %2557 = vmatprep.subr.bf16.mxu1 %v2965_v37 }
 0x42d   :  { %2558 = vmatpush3.bf16.msra.mxu1 %v2966_v39 }
 0x42e   :  { %2559 = vmatprep.subr.bf16.mxu1 %v2967_v41 }
 0x431   :  { %2560 = vmatpush3.bf16.msra.mxu1 %v2968_v42 }
 0x432   :  { %2561 = vmatprep.subr.bf16.mxu1 %v2969_v56 }
 0x435   :  { %2562 = vmatpush3.bf16.msra.mxu1 %v2970_v57 }
 0x436   :  { %2563 = vmatprep.subr.bf16.mxu1 %v2971_v58 }
 0x439   :  { %2564 = vmatpush3.bf16.msra.mxu1 %v2972_v59 }
 0x4dc   :  { %v1826_v46 = vpop.f32.mrf.mxu1 }
 0x4dd   :  { %v1827_v47 = vadd.f32 %v1826_v46, %v1625_v44 }
 0x4de   :  { %v1828_v48 = vpop.f32.mrf.mxu1 }
 0x4df   :  { %v1829_v49 = vadd.f32 %v1828_v48, %v1629_v45  ;;  %v1833_v50 = vmax.f32 %v1827_v47, 0.0 }
 0x4e0   :  { %v1830_v51 = vpop.f32.mrf.mxu1 }
 0x4e1   :  { %v1834_v52 = vmax.f32 %v1829_v49, 0.0  ;;  %v1868_v55 = vpack.c.bf16 %v1833_v50, %v1833_v50 }
 0x4e2   :  { %v1831_v53 = vpop.f32.mrf.mxu1 }
 0x4e3   :  { %v1869_v54 = vpack.c.bf16 %v1834_v52, %v1834_v52 }
 0x4e5   :  { %2073 = vmatprep.mubr.bf16.mxu0 %v1869_v54 }
 0x4e6   :  { %2074 = vmatmul.mubr.bf16.vlgmr.msra.gmra.mxu0 %v1868_v55 }
 0x5a6   :  { %v2075_v63 = vpop.f32.mrf.mxu0 }
 0x5a7   :  { %v2076_v0 = vadd.f32 %v2075_v63, %v1874_v61 }
 0x5a8   :  { %v2077_v1 = vpop.f32.mrf.mxu0 }
 0x5a9   :  { %v2078_v2 = vadd.f32 %v2077_v1, %v1878_v62  ;;  %v2082_v3 = vmax.f32 %v2076_v0, 0.0 }
 0x5aa   :  { %v2079_v4 = vpop.f32.mrf.mxu0 }
 0x5ab   :  { %v2083_v5 = vmax.f32 %v2078_v2, 0.0  ;;  %v2117_v8 = vpack.c.bf16 %v2082_v3, %v2082_v3 }
 0x5ac   :  { %v2080_v6 = vpop.f32.mrf.mxu0 }
 0x5ad   :  { %v2118_v7 = vpack.c.bf16 %v2083_v5, %v2083_v5 }
 0x5af   :  { %2253 = vmatprep.mubr.bf16.mxu1 %v2118_v7 }
 0x5b0   :  { %2254 = vmatmul.mubr.bf16.vlgmr.msra.gmra.mxu1 %v2117_v8 }
 0x670   :  { %v2565_v9 = vpop.f32.mrf.mxu1 }
 0x672   :  { %v2566_v10 = vpop.f32.mrf.mxu1 }
 0x673   :  { %v2567_v40 = vadd.f32 %v2566_v10, %v2565_v9 }
 0x674   :  { %v2568_v11 = vpop.f32.mrf.mxu1 }
 0x675   :  { %v2256_v12 = vadd.f32 %v2567_v40, %v2532_v38 }
 0x676   :  { %v2569_v13 = vpop.f32.mrf.mxu1 }
 0x677   :  { %2261 = vst [vmem:[#allocation2] sm:$0x3] %v2256_v12 }
 0x678   :  { %2984 = shalt.err (!%p2981_p4)
}
 0x679   :  { %2271 = dma.vmem_to_hbm [thread:$0]  %s2269_s27, 32, %s3968_s17, [#allocation3]  }
 0x67a   :  { %2993 = dma.done.wait [#allocation3], 32  }
 0x67b   :  { %2994 = vsyncadd [#allocation3], 4294967264 }
 0x67c   :  { %2275 = vsyncpa [#allocation3], 1 }

</bundles_post_ra>
